<compile_context>
chip_gen: v5e
topology: v5e:2x2
jax: 0.10.0
libtpu: 0.0.40
codegen_flags: <defaults>
</compile_context>

<pallas_src>
import jax
import jax.numpy as jnp
import numpy as np
from jax.experimental import pallas as pl
from jax.experimental.pallas import tpu as pltpu


def _round_up(x, m):
    return ((x + m - 1) // m) * m


def _char_decoder_kernel(x_ref, h0_ref, c0_ref, wih_ref, whh_ref, b_ref,
                         wout_ref, bout_ref,
                         scores_ref, hn_ref, cn_ref,
                         xw_scr, hstack_scr):
    Bp, Hp = h0_ref.shape                       # padded batch (8), padded H (128)
    L = x_ref.shape[0] // Bp                    # static sequence length

    # Hoisted input projection for ALL timesteps: one big MXU matmul, off the
    # sequential recurrence critical path. Combined bias folded in here once.
    xw_scr[...] = (jnp.dot(x_ref[...], wih_ref[...],
                           preferred_element_type=jnp.float32)
                   + b_ref[...])

    h = h0_ref[...]                             # (Bp, Hp) carried in vregs
    c = c0_ref[...]
    for t in range(L):                          # L is small & static: full unroll
        gates = xw_scr[t * Bp:(t + 1) * Bp, :] + jnp.dot(
            h, whh_ref[...], preferred_element_type=jnp.float32)
        # PyTorch LSTM gate order [i, f, g, o]; each gate occupies its own
        # 128-lane block, so every slice below is a full, lane-aligned vreg.
        i_g = jax.nn.sigmoid(gates[:, 0 * Hp:1 * Hp])
        f_g = jax.nn.sigmoid(gates[:, 1 * Hp:2 * Hp])
        g_g = jnp.tanh(gates[:, 2 * Hp:3 * Hp])
        o_g = jax.nn.sigmoid(gates[:, 3 * Hp:4 * Hp])
        c = f_g * c + i_g * g_g
        h = o_g * jnp.tanh(c)
        hstack_scr[t * Bp:(t + 1) * Bp, :] = h  # stage h_t for the projection

    hn_ref[...] = h
    cn_ref[...] = c

    # Single lane-dense vocab projection for all L*Bp hidden states.
    scores_ref[...] = (jnp.dot(hstack_scr[...], wout_ref[...],
                               preferred_element_type=jnp.float32)
                       + bout_ref[...])


def char_decoder_forward(input_ids, params, dec_hidden=None):
    """Equivalent of CharDecoder.forward.

    input_ids: (L, B) int32
    returns scores (L, B, V), (h, c) each (1, B, H)
    """
    emb = params["embedding"]          # (Vchar, E)
    w_ih = params["w_ih"]              # (4H, E)   PyTorch layout
    w_hh = params["w_hh"]              # (4H, H)
    b_ih = params["b_ih"]              # (4H,)
    b_hh = params["b_hh"]              # (4H,)
    w_out = params["w_out"]            # (V, H)
    b_out = params["b_out"]            # (V,)

    L, B = input_ids.shape
    E = emb.shape[1]
    H = w_hh.shape[1]
    V = w_out.shape[0]

    # Lane/sublane-aligned padded sizes.
    Bp = _round_up(B, 8)               # sublane height
    Ep = _round_up(E, 128)             # lane width of x
    Hp = _round_up(H, 128)             # per-gate lane block
    Vp = _round_up(V, 128)             # lane-dense output stores

    f32 = jnp.float32

    # glue: embedding lookup (padding_idx row is already zero in the table)
    x = jnp.take(emb, input_ids, axis=0).astype(f32)             # (L, B, E)
    x = jnp.pad(x, ((0, 0), (0, Bp - B), (0, Ep - E)))
    x2d = x.reshape(L * Bp, Ep)

    if dec_hidden is None:
        h0 = jnp.zeros((B, H), f32)
        c0 = jnp.zeros((B, H), f32)
    else:
        h0 = dec_hidden[0].reshape(B, H).astype(f32)
        c0 = dec_hidden[1].reshape(B, H).astype(f32)
    h0p = jnp.pad(h0, ((0, Bp - B), (0, Hp - H)))
    c0p = jnp.pad(c0, ((0, Bp - B), (0, Hp - H)))

    def pad_gate_mat(w, in_dim, in_pad):
        # w: (4H, in) PyTorch layout -> (in_pad, 4*Hp), each gate its own
        # 128-lane block; zero padding so padded lanes/rows contribute nothing.
        w4 = w.T.reshape(in_dim, 4, H)
        w4 = jnp.pad(w4, ((0, in_pad - in_dim), (0, 0), (0, Hp - H)))
        return w4.reshape(in_pad, 4 * Hp).astype(f32)

    wih_p = pad_gate_mat(w_ih, E, Ep)                            # (Ep, 4Hp)
    whh_p = pad_gate_mat(w_hh, H, Hp)                            # (Hp, 4Hp)
    b4 = (b_ih + b_hh).reshape(4, H)
    b_p = jnp.pad(b4, ((0, 0), (0, Hp - H))).reshape(1, 4 * Hp).astype(f32)

    wout_p = jnp.pad(w_out.T, ((0, Hp - H), (0, Vp - V))).astype(f32)   # (Hp, Vp)
    bout_p = jnp.pad(b_out.reshape(1, V), ((0, 0), (0, Vp - V))).astype(f32)

    vmem = pltpu.MemorySpace.VMEM
    scores2d, h_n, c_n = pl.pallas_call(
        _char_decoder_kernel,
        out_shape=(
            jax.ShapeDtypeStruct((L * Bp, Vp), f32),
            jax.ShapeDtypeStruct((Bp, Hp), f32),
            jax.ShapeDtypeStruct((Bp, Hp), f32),
        ),
        in_specs=[pl.BlockSpec(memory_space=vmem)] * 8,
        out_specs=(
            pl.BlockSpec(memory_space=vmem),
            pl.BlockSpec(memory_space=vmem),
            pl.BlockSpec(memory_space=vmem),
        ),
        scratch_shapes=[
            pltpu.VMEM((L * Bp, 4 * Hp), f32),   # hoisted input projection
            pltpu.VMEM((L * Bp, Hp), f32),       # stacked per-step hidden states
        ],
    )(x2d, h0p, c0p, wih_p, whh_p, b_p, wout_p, bout_p)

    scores = scores2d.reshape(L, Bp, Vp)[:, :B, :V]
    h_n = h_n[:B, :H].reshape(1, B, H)
    c_n = c_n[:B, :H].reshape(1, B, H)
    return scores, (h_n, c_n)


def _reference_forward(input_ids, params, dec_hidden=None):
    """Pure-JAX reference (mirrors PyTorch semantics) for verification."""
    emb = params["embedding"]
    w_ih, w_hh = params["w_ih"], params["w_hh"]
    b_ih, b_hh = params["b_ih"], params["b_hh"]
    w_out, b_out = params["w_out"], params["b_out"]
    L, B = input_ids.shape
    H = w_hh.shape[1]
    x = jnp.take(emb, input_ids, axis=0)
    if dec_hidden is None:
        h = jnp.zeros((B, H), jnp.float32)
        c = jnp.zeros((B, H), jnp.float32)
    else:
        h = dec_hidden[0].reshape(B, H)
        c = dec_hidden[1].reshape(B, H)

    def step(carry, x_t):
        h, c = carry
        gates = x_t @ w_ih.T + b_ih + h @ w_hh.T + b_hh
        i, f, g, o = jnp.split(gates, 4, axis=-1)
        c = jax.nn.sigmoid(f) * c + jax.nn.sigmoid(i) * jnp.tanh(g)
        h = jax.nn.sigmoid(o) * jnp.tanh(c)
        return (h, c), h @ w_out.T + b_out

    (h, c), scores = jax.lax.scan(step, (h, c), x)
    return scores, (h[None], c[None])


def _init_params(key, vocab_size, char_emb_size, hidden_size, pad_idx=0):
    ks = jax.random.split(key, 7)
    s = 0.1
    emb = s * jax.random.normal(ks[0], (vocab_size, char_emb_size), jnp.float32)
    emb = emb.at[pad_idx].set(0.0)  # nn.Embedding padding_idx row is zero
    return {
        "embedding": emb,
        "w_ih": s * jax.random.normal(ks[1], (4 * hidden_size, char_emb_size), jnp.float32),
        "w_hh": s * jax.random.normal(ks[2], (4 * hidden_size, hidden_size), jnp.float32),
        "b_ih": s * jax.random.normal(ks[3], (4 * hidden_size,), jnp.float32),
        "b_hh": s * jax.random.normal(ks[4], (4 * hidden_size,), jnp.float32),
        "w_out": s * jax.random.normal(ks[5], (vocab_size, hidden_size), jnp.float32),
        "b_out": s * jax.random.normal(ks[6], (vocab_size,), jnp.float32),
    }


if __name__ == "__main__":
    # small, module-consistent shapes
    LENGTH, BATCH = 8, 4
    HIDDEN, CHAR_EMB, VOCAB = 32, 50, 30   # len(target_vocab.char2id) = 30

    key = jax.random.PRNGKey(0)
    kp, ki, kh, kc = jax.random.split(key, 4)

    params = _init_params(kp, VOCAB, CHAR_EMB, HIDDEN)
    input_ids = jax.random.randint(ki, (LENGTH, BATCH), 0, VOCAB, jnp.int32)
    dec_hidden = (
        0.1 * jax.random.normal(kh, (1, BATCH, HIDDEN), jnp.float32),
        0.1 * jax.random.normal(kc, (1, BATCH, HIDDEN), jnp.float32),
    )

    scores, (h_n, c_n) = char_decoder_forward(input_ids, params, dec_hidden)
    jax.block_until_ready((scores, h_n, c_n))

    # verify against pure-JAX reference
    ref_scores, (ref_h, ref_c) = _reference_forward(input_ids, params, dec_hidden)
    np.testing.assert_allclose(np.asarray(scores), np.asarray(ref_scores),
                               rtol=2e-5, atol=2e-5)
    np.testing.assert_allclose(np.asarray(h_n), np.asarray(ref_h),
                               rtol=2e-5, atol=2e-5)
    np.testing.assert_allclose(np.asarray(c_n), np.asarray(ref_c),
                               rtol=2e-5, atol=2e-5)

    print("KERNEL_OK")
</pallas_src>

<mosaic_0001>
module attributes {stable_mosaic.version = 11 : i64} {
  func.func @_char_decoder_kernel(%arg0: memref<64x128xf32, #tpu.memory_space<vmem>>, %arg1: memref<8x128xf32, #tpu.memory_space<vmem>>, %arg2: memref<8x128xf32, #tpu.memory_space<vmem>>, %arg3: memref<128x512xf32, #tpu.memory_space<vmem>>, %arg4: memref<128x512xf32, #tpu.memory_space<vmem>>, %arg5: memref<1x512xf32, #tpu.memory_space<vmem>>, %arg6: memref<128x128xf32, #tpu.memory_space<vmem>>, %arg7: memref<1x128xf32, #tpu.memory_space<vmem>>, %arg8: memref<64x128xf32, #tpu.memory_space<vmem>>, %arg9: memref<8x128xf32, #tpu.memory_space<vmem>>, %arg10: memref<8x128xf32, #tpu.memory_space<vmem>>, %arg11: memref<64x512xf32, #tpu.memory_space<vmem>>, %arg12: memref<64x128xf32, #tpu.memory_space<vmem>>) attributes {dimension_semantics = [], scalar_prefetch = 0 : i64, scratch_operands = 2 : i64, tpu.core_type = #tpu.core_type<tc>} {
    %c0 = arith.constant 0 : index
    %c0_0 = arith.constant 0 : index
    %0 = vector.load %arg0[%c0, %c0_0] : memref<64x128xf32, #tpu.memory_space<vmem>>, vector<64x128xf32>
    %c0_1 = arith.constant 0 : index
    %c0_2 = arith.constant 0 : index
    %1 = vector.load %arg3[%c0_1, %c0_2] : memref<128x512xf32, #tpu.memory_space<vmem>>, vector<128x512xf32>
    %cst = arith.constant dense<0.000000e+00> : vector<64x512xf32>
    %2 = tpu.matmul %0, %1, %cst {dimension_numbers = #tpu.dot_dimension_numbers<[1], [0], [0], [1], [0, 0, 1, 1], [], []>} : vector<64x128xf32>, vector<128x512xf32>, vector<64x512xf32> -> vector<64x512xf32>
    %c0_3 = arith.constant 0 : index
    %c0_4 = arith.constant 0 : index
    %3 = vector.load %arg5[%c0_3, %c0_4] : memref<1x512xf32, #tpu.memory_space<vmem>>, vector<1x512xf32>
    %4 = vector.broadcast %3 : vector<1x512xf32> to vector<64x512xf32>
    %5 = arith.addf %2, %4 : vector<64x512xf32>
    %c0_5 = arith.constant 0 : index
    %c0_6 = arith.constant 0 : index
    %6 = vector.load %arg11[%c0_5, %c0_6] : memref<64x512xf32, #tpu.memory_space<vmem>>, vector<64x512xf32>
    tpu.vector_store %arg11[%c0_5, %c0_6], %5 {strides = array<i32>} : memref<64x512xf32, #tpu.memory_space<vmem>>, vector<64x512xf32>,
    %c0_7 = arith.constant 0 : index
    %c0_8 = arith.constant 0 : index
    %7 = vector.load %arg1[%c0_7, %c0_8] : memref<8x128xf32, #tpu.memory_space<vmem>>, vector<8x128xf32>
    %c0_9 = arith.constant 0 : index
    %c0_10 = arith.constant 0 : index
    %8 = vector.load %arg2[%c0_9, %c0_10] : memref<8x128xf32, #tpu.memory_space<vmem>>, vector<8x128xf32>
    %c0_11 = arith.constant 0 : index
    %c0_12 = arith.constant 0 : index
    %9 = vector.load %arg11[%c0_11, %c0_12] : memref<64x512xf32, #tpu.memory_space<vmem>>, vector<8x512xf32>
    %c0_13 = arith.constant 0 : index
    %c0_14 = arith.constant 0 : index
    %10 = vector.load %arg4[%c0_13, %c0_14] : memref<128x512xf32, #tpu.memory_space<vmem>>, vector<128x512xf32>
    %cst_15 = arith.constant dense<0.000000e+00> : vector<8x512xf32>
    %11 = tpu.matmul %7, %10, %cst_15 {dimension_numbers = #tpu.dot_dimension_numbers<[1], [0], [0], [1], [0, 0, 1, 1], [], []>} : vector<8x128xf32>, vector<128x512xf32>, vector<8x512xf32> -> vector<8x512xf32>
    %12 = arith.addf %9, %11 : vector<8x512xf32>
    %13 = vector.extract_strided_slice %12 {offsets = [0, 0], sizes = [8, 128], strides = [1, 1]} : vector<8x512xf32> to vector<8x128xf32>
    %14 = arith.negf %13 : vector<8x128xf32>
    %15 = math.exp %14 : vector<8x128xf32>
    %cst_16 = arith.constant 1.000000e+00 : f32
    %16 = vector.broadcast %cst_16 : f32 to vector<8x128xf32>
    %17 = arith.addf %16, %15 : vector<8x128xf32>
    %18 = arith.divf %16, %17 : vector<8x128xf32>
    %19 = vector.extract_strided_slice %12 {offsets = [0, 128], sizes = [8, 128], strides = [1, 1]} : vector<8x512xf32> to vector<8x128xf32>
    %20 = arith.negf %19 : vector<8x128xf32>
    %21 = math.exp %20 : vector<8x128xf32>
    %cst_17 = arith.constant 1.000000e+00 : f32
    %22 = vector.broadcast %cst_17 : f32 to vector<8x128xf32>
    %23 = arith.addf %22, %21 : vector<8x128xf32>
    %24 = arith.divf %22, %23 : vector<8x128xf32>
    %25 = vector.extract_strided_slice %12 {offsets = [0, 256], sizes = [8, 128], strides = [1, 1]} : vector<8x512xf32> to vector<8x128xf32>
    %26 = math.tanh %25 : vector<8x128xf32>
    %27 = vector.extract_strided_slice %12 {offsets = [0, 384], sizes = [8, 128], strides = [1, 1]} : vector<8x512xf32> to vector<8x128xf32>
    %28 = arith.negf %27 : vector<8x128xf32>
    %29 = math.exp %28 : vector<8x128xf32>
    %cst_18 = arith.constant 1.000000e+00 : f32
    %30 = vector.broadcast %cst_18 : f32 to vector<8x128xf32>
    %31 = arith.addf %30, %29 : vector<8x128xf32>
    %32 = arith.divf %30, %31 : vector<8x128xf32>
    %33 = arith.mulf %24, %8 : vector<8x128xf32>
    %34 = arith.mulf %18, %26 : vector<8x128xf32>
    %35 = arith.addf %33, %34 : vector<8x128xf32>
    %36 = math.tanh %35 : vector<8x128xf32>
    %37 = arith.mulf %32, %36 : vector<8x128xf32>
    %c0_19 = arith.constant 0 : index
    %c0_20 = arith.constant 0 : index
    %38 = vector.load %arg12[%c0_19, %c0_20] : memref<64x128xf32, #tpu.memory_space<vmem>>, vector<8x128xf32>
    tpu.vector_store %arg12[%c0_19, %c0_20], %37 {strides = array<i32>} : memref<64x128xf32, #tpu.memory_space<vmem>>, vector<8x128xf32>,
    %c8 = arith.constant 8 : index
    %c0_21 = arith.constant 0 : index
    %39 = vector.load %arg11[%c8, %c0_21] : memref<64x512xf32, #tpu.memory_space<vmem>>, vector<8x512xf32>
    %c0_22 = arith.constant 0 : index
    %c0_23 = arith.constant 0 : index
    %40 = vector.load %arg4[%c0_22, %c0_23] : memref<128x512xf32, #tpu.memory_space<vmem>>, vector<128x512xf32>
    %cst_24 = arith.constant dense<0.000000e+00> : vector<8x512xf32>
    %41 = tpu.matmul %37, %40, %cst_24 {dimension_numbers = #tpu.dot_dimension_numbers<[1], [0], [0], [1], [0, 0, 1, 1], [], []>} : vector<8x128xf32>, vector<128x512xf32>, vector<8x512xf32> -> vector<8x512xf32>
    %42 = arith.addf %39, %41 : vector<8x512xf32>
    %43 = vector.extract_strided_slice %42 {offsets = [0, 0], sizes = [8, 128], strides = [1, 1]} : vector<8x512xf32> to vector<8x128xf32>
    %44 = arith.negf %43 : vector<8x128xf32>
    %45 = math.exp %44 : vector<8x128xf32>
    %cst_25 = arith.constant 1.000000e+00 : f32
    %46 = vector.broadcast %cst_25 : f32 to vector<8x128xf32>
    %47 = arith.addf %46, %45 : vector<8x128xf32>
    %48 = arith.divf %46, %47 : vector<8x128xf32>
    %49 = vector.extract_strided_slice %42 {offsets = [0, 128], sizes = [8, 128], strides = [1, 1]} : vector<8x512xf32> to vector<8x128xf32>
    %50 = arith.negf %49 : vector<8x128xf32>
    %51 = math.exp %50 : vector<8x128xf32>
    %cst_26 = arith.constant 1.000000e+00 : f32
    %52 = vector.broadcast %cst_26 : f32 to vector<8x128xf32>
    %53 = arith.addf %52, %51 : vector<8x128xf32>
    %54 = arith.divf %52, %53 : vector<8x128xf32>
    %55 = vector.extract_strided_slice %42 {offsets = [0, 256], sizes = [8, 128], strides = [1, 1]} : vector<8x512xf32> to vector<8x128xf32>
    %56 = math.tanh %55 : vector<8x128xf32>
    %57 = vector.extract_strided_slice %42 {offsets = [0, 384], sizes = [8, 128], strides = [1, 1]} : vector<8x512xf32> to vector<8x128xf32>
    %58 = arith.negf %57 : vector<8x128xf32>
    %59 = math.exp %58 : vector<8x128xf32>
    %cst_27 = arith.constant 1.000000e+00 : f32
    %60 = vector.broadcast %cst_27 : f32 to vector<8x128xf32>
    %61 = arith.addf %60, %59 : vector<8x128xf32>
    %62 = arith.divf %60, %61 : vector<8x128xf32>
    %63 = arith.mulf %54, %35 : vector<8x128xf32>
    %64 = arith.mulf %48, %56 : vector<8x128xf32>
    %65 = arith.addf %63, %64 : vector<8x128xf32>
    %66 = math.tanh %65 : vector<8x128xf32>
    %67 = arith.mulf %62, %66 : vector<8x128xf32>
    %c8_28 = arith.constant 8 : index
    %c0_29 = arith.constant 0 : index
    %68 = vector.load %arg12[%c8_28, %c0_29] : memref<64x128xf32, #tpu.memory_space<vmem>>, vector<8x128xf32>
    tpu.vector_store %arg12[%c8_28, %c0_29], %67 {strides = array<i32>} : memref<64x128xf32, #tpu.memory_space<vmem>>, vector<8x128xf32>,
    %c16 = arith.constant 16 : index
    %c0_30 = arith.constant 0 : index
    %69 = vector.load %arg11[%c16, %c0_30] : memref<64x512xf32, #tpu.memory_space<vmem>>, vector<8x512xf32>
    %c0_31 = arith.constant 0 : index
    %c0_32 = arith.constant 0 : index
    %70 = vector.load %arg4[%c0_31, %c0_32] : memref<128x512xf32, #tpu.memory_space<vmem>>, vector<128x512xf32>
    %cst_33 = arith.constant dense<0.000000e+00> : vector<8x512xf32>
    %71 = tpu.matmul %67, %70, %cst_33 {dimension_numbers = #tpu.dot_dimension_numbers<[1], [0], [0], [1], [0, 0, 1, 1], [], []>} : vector<8x128xf32>, vector<128x512xf32>, vector<8x512xf32> -> vector<8x512xf32>
    %72 = arith.addf %69, %71 : vector<8x512xf32>
    %73 = vector.extract_strided_slice %72 {offsets = [0, 0], sizes = [8, 128], strides = [1, 1]} : vector<8x512xf32> to vector<8x128xf32>
    %74 = arith.negf %73 : vector<8x128xf32>
    %75 = math.exp %74 : vector<8x128xf32>
    %cst_34 = arith.constant 1.000000e+00 : f32
    %76 = vector.broadcast %cst_34 : f32 to vector<8x128xf32>
    %77 = arith.addf %76, %75 : vector<8x128xf32>
    %78 = arith.divf %76, %77 : vector<8x128xf32>
    %79 = vector.extract_strided_slice %72 {offsets = [0, 128], sizes = [8, 128], strides = [1, 1]} : vector<8x512xf32> to vector<8x128xf32>
    %80 = arith.negf %79 : vector<8x128xf32>
    %81 = math.exp %80 : vector<8x128xf32>
    %cst_35 = arith.constant 1.000000e+00 : f32
    %82 = vector.broadcast %cst_35 : f32 to vector<8x128xf32>
    %83 = arith.addf %82, %81 : vector<8x128xf32>
    %84 = arith.divf %82, %83 : vector<8x128xf32>
    %85 = vector.extract_strided_slice %72 {offsets = [0, 256], sizes = [8, 128], strides = [1, 1]} : vector<8x512xf32> to vector<8x128xf32>
    %86 = math.tanh %85 : vector<8x128xf32>
    %87 = vector.extract_strided_slice %72 {offsets = [0, 384], sizes = [8, 128], strides = [1, 1]} : vector<8x512xf32> to vector<8x128xf32>
    %88 = arith.negf %87 : vector<8x128xf32>
    %89 = math.exp %88 : vector<8x128xf32>
    %cst_36 = arith.constant 1.000000e+00 : f32
    %90 = vector.broadcast %cst_36 : f32 to vector<8x128xf32>
    %91 = arith.addf %90, %89 : vector<8x128xf32>
    %92 = arith.divf %90, %91 : vector<8x128xf32>
    %93 = arith.mulf %84, %65 : vector<8x128xf32>
    %94 = arith.mulf %78, %86 : vector<8x128xf32>
    %95 = arith.addf %93, %94 : vector<8x128xf32>
    %96 = math.tanh %95 : vector<8x128xf32>
    %97 = arith.mulf %92, %96 : vector<8x128xf32>
    %c16_37 = arith.constant 16 : index
    %c0_38 = arith.constant 0 : index
    %98 = vector.load %arg12[%c16_37, %c0_38] : memref<64x128xf32, #tpu.memory_space<vmem>>, vector<8x128xf32>
    tpu.vector_store %arg12[%c16_37, %c0_38], %97 {strides = array<i32>} : memref<64x128xf32, #tpu.memory_space<vmem>>, vector<8x128xf32>,
    %c24 = arith.constant 24 : index
    %c0_39 = arith.constant 0 : index
    %99 = vector.load %arg11[%c24, %c0_39] : memref<64x512xf32, #tpu.memory_space<vmem>>, vector<8x512xf32>
    %c0_40 = arith.constant 0 : index
    %c0_41 = arith.constant 0 : index
    %100 = vector.load %arg4[%c0_40, %c0_41] : memref<128x512xf32, #tpu.memory_space<vmem>>, vector<128x512xf32>
    %cst_42 = arith.constant dense<0.000000e+00> : vector<8x512xf32>
    %101 = tpu.matmul %97, %100, %cst_42 {dimension_numbers = #tpu.dot_dimension_numbers<[1], [0], [0], [1], [0, 0, 1, 1], [], []>} : vector<8x128xf32>, vector<128x512xf32>, vector<8x512xf32> -> vector<8x512xf32>
    %102 = arith.addf %99, %101 : vector<8x512xf32>
    %103 = vector.extract_strided_slice %102 {offsets = [0, 0], sizes = [8, 128], strides = [1, 1]} : vector<8x512xf32> to vector<8x128xf32>
    %104 = arith.negf %103 : vector<8x128xf32>
    %105 = math.exp %104 : vector<8x128xf32>
    %cst_43 = arith.constant 1.000000e+00 : f32
    %106 = vector.broadcast %cst_43 : f32 to vector<8x128xf32>
    %107 = arith.addf %106, %105 : vector<8x128xf32>
    %108 = arith.divf %106, %107 : vector<8x128xf32>
    %109 = vector.extract_strided_slice %102 {offsets = [0, 128], sizes = [8, 128], strides = [1, 1]} : vector<8x512xf32> to vector<8x128xf32>
    %110 = arith.negf %109 : vector<8x128xf32>
    %111 = math.exp %110 : vector<8x128xf32>
    %cst_44 = arith.constant 1.000000e+00 : f32
    %112 = vector.broadcast %cst_44 : f32 to vector<8x128xf32>
    %113 = arith.addf %112, %111 : vector<8x128xf32>
    %114 = arith.divf %112, %113 : vector<8x128xf32>
    %115 = vector.extract_strided_slice %102 {offsets = [0, 256], sizes = [8, 128], strides = [1, 1]} : vector<8x512xf32> to vector<8x128xf32>
    %116 = math.tanh %115 : vector<8x128xf32>
    %117 = vector.extract_strided_slice %102 {offsets = [0, 384], sizes = [8, 128], strides = [1, 1]} : vector<8x512xf32> to vector<8x128xf32>
    %118 = arith.negf %117 : vector<8x128xf32>
    %119 = math.exp %118 : vector<8x128xf32>
    %cst_45 = arith.constant 1.000000e+00 : f32
    %120 = vector.broadcast %cst_45 : f32 to vector<8x128xf32>
    %121 = arith.addf %120, %119 : vector<8x128xf32>
    %122 = arith.divf %120, %121 : vector<8x128xf32>
    %123 = arith.mulf %114, %95 : vector<8x128xf32>
    %124 = arith.mulf %108, %116 : vector<8x128xf32>
    %125 = arith.addf %123, %124 : vector<8x128xf32>
    %126 = math.tanh %125 : vector<8x128xf32>
    %127 = arith.mulf %122, %126 : vector<8x128xf32>
    %c24_46 = arith.constant 24 : index
    %c0_47 = arith.constant 0 : index
    %128 = vector.load %arg12[%c24_46, %c0_47] : memref<64x128xf32, #tpu.memory_space<vmem>>, vector<8x128xf32>
    tpu.vector_store %arg12[%c24_46, %c0_47], %127 {strides = array<i32>} : memref<64x128xf32, #tpu.memory_space<vmem>>, vector<8x128xf32>,
    %c32 = arith.constant 32 : index
    %c0_48 = arith.constant 0 : index
    %129 = vector.load %arg11[%c32, %c0_48] : memref<64x512xf32, #tpu.memory_space<vmem>>, vector<8x512xf32>
    %c0_49 = arith.constant 0 : index
    %c0_50 = arith.constant 0 : index
    %130 = vector.load %arg4[%c0_49, %c0_50] : memref<128x512xf32, #tpu.memory_space<vmem>>, vector<128x512xf32>
    %cst_51 = arith.constant dense<0.000000e+00> : vector<8x512xf32>
    %131 = tpu.matmul %127, %130, %cst_51 {dimension_numbers = #tpu.dot_dimension_numbers<[1], [0], [0], [1], [0, 0, 1, 1], [], []>} : vector<8x128xf32>, vector<128x512xf32>, vector<8x512xf32> -> vector<8x512xf32>
    %132 = arith.addf %129, %131 : vector<8x512xf32>
    %133 = vector.extract_strided_slice %132 {offsets = [0, 0], sizes = [8, 128], strides = [1, 1]} : vector<8x512xf32> to vector<8x128xf32>
    %134 = arith.negf %133 : vector<8x128xf32>
    %135 = math.exp %134 : vector<8x128xf32>
    %cst_52 = arith.constant 1.000000e+00 : f32
    %136 = vector.broadcast %cst_52 : f32 to vector<8x128xf32>
    %137 = arith.addf %136, %135 : vector<8x128xf32>
    %138 = arith.divf %136, %137 : vector<8x128xf32>
    %139 = vector.extract_strided_slice %132 {offsets = [0, 128], sizes = [8, 128], strides = [1, 1]} : vector<8x512xf32> to vector<8x128xf32>
    %140 = arith.negf %139 : vector<8x128xf32>
    %141 = math.exp %140 : vector<8x128xf32>
    %cst_53 = arith.constant 1.000000e+00 : f32
    %142 = vector.broadcast %cst_53 : f32 to vector<8x128xf32>
    %143 = arith.addf %142, %141 : vector<8x128xf32>
    %144 = arith.divf %142, %143 : vector<8x128xf32>
    %145 = vector.extract_strided_slice %132 {offsets = [0, 256], sizes = [8, 128], strides = [1, 1]} : vector<8x512xf32> to vector<8x128xf32>
    %146 = math.tanh %145 : vector<8x128xf32>
    %147 = vector.extract_strided_slice %132 {offsets = [0, 384], sizes = [8, 128], strides = [1, 1]} : vector<8x512xf32> to vector<8x128xf32>
    %148 = arith.negf %147 : vector<8x128xf32>
    %149 = math.exp %148 : vector<8x128xf32>
    %cst_54 = arith.constant 1.000000e+00 : f32
    %150 = vector.broadcast %cst_54 : f32 to vector<8x128xf32>
    %151 = arith.addf %150, %149 : vector<8x128xf32>
    %152 = arith.divf %150, %151 : vector<8x128xf32>
    %153 = arith.mulf %144, %125 : vector<8x128xf32>
    %154 = arith.mulf %138, %146 : vector<8x128xf32>
    %155 = arith.addf %153, %154 : vector<8x128xf32>
    %156 = math.tanh %155 : vector<8x128xf32>
    %157 = arith.mulf %152, %156 : vector<8x128xf32>
    %c32_55 = arith.constant 32 : index
    %c0_56 = arith.constant 0 : index
    %158 = vector.load %arg12[%c32_55, %c0_56] : memref<64x128xf32, #tpu.memory_space<vmem>>, vector<8x128xf32>
    tpu.vector_store %arg12[%c32_55, %c0_56], %157 {strides = array<i32>} : memref<64x128xf32, #tpu.memory_space<vmem>>, vector<8x128xf32>,
    %c40 = arith.constant 40 : index
    %c0_57 = arith.constant 0 : index
    %159 = vector.load %arg11[%c40, %c0_57] : memref<64x512xf32, #tpu.memory_space<vmem>>, vector<8x512xf32>
    %c0_58 = arith.constant 0 : index
    %c0_59 = arith.constant 0 : index
    %160 = vector.load %arg4[%c0_58, %c0_59] : memref<128x512xf32, #tpu.memory_space<vmem>>, vector<128x512xf32>
    %cst_60 = arith.constant dense<0.000000e+00> : vector<8x512xf32>
    %161 = tpu.matmul %157, %160, %cst_60 {dimension_numbers = #tpu.dot_dimension_numbers<[1], [0], [0], [1], [0, 0, 1, 1], [], []>} : vector<8x128xf32>, vector<128x512xf32>, vector<8x512xf32> -> vector<8x512xf32>
    %162 = arith.addf %159, %161 : vector<8x512xf32>
    %163 = vector.extract_strided_slice %162 {offsets = [0, 0], sizes = [8, 128], strides = [1, 1]} : vector<8x512xf32> to vector<8x128xf32>
    %164 = arith.negf %163 : vector<8x128xf32>
    %165 = math.exp %164 : vector<8x128xf32>
    %cst_61 = arith.constant 1.000000e+00 : f32
    %166 = vector.broadcast %cst_61 : f32 to vector<8x128xf32>
    %167 = arith.addf %166, %165 : vector<8x128xf32>
    %168 = arith.divf %166, %167 : vector<8x128xf32>
    %169 = vector.extract_strided_slice %162 {offsets = [0, 128], sizes = [8, 128], strides = [1, 1]} : vector<8x512xf32> to vector<8x128xf32>
    %170 = arith.negf %169 : vector<8x128xf32>
    %171 = math.exp %170 : vector<8x128xf32>
    %cst_62 = arith.constant 1.000000e+00 : f32
    %172 = vector.broadcast %cst_62 : f32 to vector<8x128xf32>
    %173 = arith.addf %172, %171 : vector<8x128xf32>
    %174 = arith.divf %172, %173 : vector<8x128xf32>
    %175 = vector.extract_strided_slice %162 {offsets = [0, 256], sizes = [8, 128], strides = [1, 1]} : vector<8x512xf32> to vector<8x128xf32>
    %176 = math.tanh %175 : vector<8x128xf32>
    %177 = vector.extract_strided_slice %162 {offsets = [0, 384], sizes = [8, 128], strides = [1, 1]} : vector<8x512xf32> to vector<8x128xf32>
    %178 = arith.negf %177 : vector<8x128xf32>
    %179 = math.exp %178 : vector<8x128xf32>
    %cst_63 = arith.constant 1.000000e+00 : f32
    %180 = vector.broadcast %cst_63 : f32 to vector<8x128xf32>
    %181 = arith.addf %180, %179 : vector<8x128xf32>
    %182 = arith.divf %180, %181 : vector<8x128xf32>
    %183 = arith.mulf %174, %155 : vector<8x128xf32>
    %184 = arith.mulf %168, %176 : vector<8x128xf32>
    %185 = arith.addf %183, %184 : vector<8x128xf32>
    %186 = math.tanh %185 : vector<8x128xf32>
    %187 = arith.mulf %182, %186 : vector<8x128xf32>
    %c40_64 = arith.constant 40 : index
    %c0_65 = arith.constant 0 : index
    %188 = vector.load %arg12[%c40_64, %c0_65] : memref<64x128xf32, #tpu.memory_space<vmem>>, vector<8x128xf32>
    tpu.vector_store %arg12[%c40_64, %c0_65], %187 {strides = array<i32>} : memref<64x128xf32, #tpu.memory_space<vmem>>, vector<8x128xf32>,
    %c48 = arith.constant 48 : index
    %c0_66 = arith.constant 0 : index
    %189 = vector.load %arg11[%c48, %c0_66] : memref<64x512xf32, #tpu.memory_space<vmem>>, vector<8x512xf32>
    %c0_67 = arith.constant 0 : index
    %c0_68 = arith.constant 0 : index
    %190 = vector.load %arg4[%c0_67, %c0_68] : memref<128x512xf32, #tpu.memory_space<vmem>>, vector<128x512xf32>
    %cst_69 = arith.constant dense<0.000000e+00> : vector<8x512xf32>
    %191 = tpu.matmul %187, %190, %cst_69 {dimension_numbers = #tpu.dot_dimension_numbers<[1], [0], [0], [1], [0, 0, 1, 1], [], []>} : vector<8x128xf32>, vector<128x512xf32>, vector<8x512xf32> -> vector<8x512xf32>
    %192 = arith.addf %189, %191 : vector<8x512xf32>
    %193 = vector.extract_strided_slice %192 {offsets = [0, 0], sizes = [8, 128], strides = [1, 1]} : vector<8x512xf32> to vector<8x128xf32>
    %194 = arith.negf %193 : vector<8x128xf32>
    %195 = math.exp %194 : vector<8x128xf32>
    %cst_70 = arith.constant 1.000000e+00 : f32
    %196 = vector.broadcast %cst_70 : f32 to vector<8x128xf32>
    %197 = arith.addf %196, %195 : vector<8x128xf32>
    %198 = arith.divf %196, %197 : vector<8x128xf32>
    %199 = vector.extract_strided_slice %192 {offsets = [0, 128], sizes = [8, 128], strides = [1, 1]} : vector<8x512xf32> to vector<8x128xf32>
    %200 = arith.negf %199 : vector<8x128xf32>
    %201 = math.exp %200 : vector<8x128xf32>
    %cst_71 = arith.constant 1.000000e+00 : f32
    %202 = vector.broadcast %cst_71 : f32 to vector<8x128xf32>
    %203 = arith.addf %202, %201 : vector<8x128xf32>
    %204 = arith.divf %202, %203 : vector<8x128xf32>
    %205 = vector.extract_strided_slice %192 {offsets = [0, 256], sizes = [8, 128], strides = [1, 1]} : vector<8x512xf32> to vector<8x128xf32>
    %206 = math.tanh %205 : vector<8x128xf32>
    %207 = vector.extract_strided_slice %192 {offsets = [0, 384], sizes = [8, 128], strides = [1, 1]} : vector<8x512xf32> to vector<8x128xf32>
    %208 = arith.negf %207 : vector<8x128xf32>
    %209 = math.exp %208 : vector<8x128xf32>
    %cst_72 = arith.constant 1.000000e+00 : f32
    %210 = vector.broadcast %cst_72 : f32 to vector<8x128xf32>
    %211 = arith.addf %210, %209 : vector<8x128xf32>
    %212 = arith.divf %210, %211 : vector<8x128xf32>
    %213 = arith.mulf %204, %185 : vector<8x128xf32>
    %214 = arith.mulf %198, %206 : vector<8x128xf32>
    %215 = arith.addf %213, %214 : vector<8x128xf32>
    %216 = math.tanh %215 : vector<8x128xf32>
    %217 = arith.mulf %212, %216 : vector<8x128xf32>
    %c48_73 = arith.constant 48 : index
    %c0_74 = arith.constant 0 : index
    %218 = vector.load %arg12[%c48_73, %c0_74] : memref<64x128xf32, #tpu.memory_space<vmem>>, vector<8x128xf32>
    tpu.vector_store %arg12[%c48_73, %c0_74], %217 {strides = array<i32>} : memref<64x128xf32, #tpu.memory_space<vmem>>, vector<8x128xf32>,
    %c56 = arith.constant 56 : index
    %c0_75 = arith.constant 0 : index
    %219 = vector.load %arg11[%c56, %c0_75] : memref<64x512xf32, #tpu.memory_space<vmem>>, vector<8x512xf32>
    %c0_76 = arith.constant 0 : index
    %c0_77 = arith.constant 0 : index
    %220 = vector.load %arg4[%c0_76, %c0_77] : memref<128x512xf32, #tpu.memory_space<vmem>>, vector<128x512xf32>
    %cst_78 = arith.constant dense<0.000000e+00> : vector<8x512xf32>
    %221 = tpu.matmul %217, %220, %cst_78 {dimension_numbers = #tpu.dot_dimension_numbers<[1], [0], [0], [1], [0, 0, 1, 1], [], []>} : vector<8x128xf32>, vector<128x512xf32>, vector<8x512xf32> -> vector<8x512xf32>
    %222 = arith.addf %219, %221 : vector<8x512xf32>
    %223 = vector.extract_strided_slice %222 {offsets = [0, 0], sizes = [8, 128], strides = [1, 1]} : vector<8x512xf32> to vector<8x128xf32>
    %224 = arith.negf %223 : vector<8x128xf32>
    %225 = math.exp %224 : vector<8x128xf32>
    %cst_79 = arith.constant 1.000000e+00 : f32
    %226 = vector.broadcast %cst_79 : f32 to vector<8x128xf32>
    %227 = arith.addf %226, %225 : vector<8x128xf32>
    %228 = arith.divf %226, %227 : vector<8x128xf32>
    %229 = vector.extract_strided_slice %222 {offsets = [0, 128], sizes = [8, 128], strides = [1, 1]} : vector<8x512xf32> to vector<8x128xf32>
    %230 = arith.negf %229 : vector<8x128xf32>
    %231 = math.exp %230 : vector<8x128xf32>
    %cst_80 = arith.constant 1.000000e+00 : f32
    %232 = vector.broadcast %cst_80 : f32 to vector<8x128xf32>
    %233 = arith.addf %232, %231 : vector<8x128xf32>
    %234 = arith.divf %232, %233 : vector<8x128xf32>
    %235 = vector.extract_strided_slice %222 {offsets = [0, 256], sizes = [8, 128], strides = [1, 1]} : vector<8x512xf32> to vector<8x128xf32>
    %236 = math.tanh %235 : vector<8x128xf32>
    %237 = vector.extract_strided_slice %222 {offsets = [0, 384], sizes = [8, 128], strides = [1, 1]} : vector<8x512xf32> to vector<8x128xf32>
    %238 = arith.negf %237 : vector<8x128xf32>
    %239 = math.exp %238 : vector<8x128xf32>
    %cst_81 = arith.constant 1.000000e+00 : f32
    %240 = vector.broadcast %cst_81 : f32 to vector<8x128xf32>
    %241 = arith.addf %240, %239 : vector<8x128xf32>
    %242 = arith.divf %240, %241 : vector<8x128xf32>
    %243 = arith.mulf %234, %215 : vector<8x128xf32>
    %244 = arith.mulf %228, %236 : vector<8x128xf32>
    %245 = arith.addf %243, %244 : vector<8x128xf32>
    %246 = math.tanh %245 : vector<8x128xf32>
    %247 = arith.mulf %242, %246 : vector<8x128xf32>
    %c56_82 = arith.constant 56 : index
    %c0_83 = arith.constant 0 : index
    %248 = vector.load %arg12[%c56_82, %c0_83] : memref<64x128xf32, #tpu.memory_space<vmem>>, vector<8x128xf32>
    tpu.vector_store %arg12[%c56_82, %c0_83], %247 {strides = array<i32>} : memref<64x128xf32, #tpu.memory_space<vmem>>, vector<8x128xf32>,
    %c0_84 = arith.constant 0 : index
    %c0_85 = arith.constant 0 : index
    %249 = vector.load %arg9[%c0_84, %c0_85] : memref<8x128xf32, #tpu.memory_space<vmem>>, vector<8x128xf32>
    tpu.vector_store %arg9[%c0_84, %c0_85], %247 {strides = array<i32>} : memref<8x128xf32, #tpu.memory_space<vmem>>, vector<8x128xf32>,
    %c0_86 = arith.constant 0 : index
    %c0_87 = arith.constant 0 : index
    %250 = vector.load %arg10[%c0_86, %c0_87] : memref<8x128xf32, #tpu.memory_space<vmem>>, vector<8x128xf32>
    tpu.vector_store %arg10[%c0_86, %c0_87], %245 {strides = array<i32>} : memref<8x128xf32, #tpu.memory_space<vmem>>, vector<8x128xf32>,
    %c0_88 = arith.constant 0 : index
    %c0_89 = arith.constant 0 : index
    %251 = vector.load %arg12[%c0_88, %c0_89] : memref<64x128xf32, #tpu.memory_space<vmem>>, vector<64x128xf32>
    %c0_90 = arith.constant 0 : index
    %c0_91 = arith.constant 0 : index
    %252 = vector.load %arg6[%c0_90, %c0_91] : memref<128x128xf32, #tpu.memory_space<vmem>>, vector<128x128xf32>
    %cst_92 = arith.constant dense<0.000000e+00> : vector<64x128xf32>
    %253 = tpu.matmul %251, %252, %cst_92 {dimension_numbers = #tpu.dot_dimension_numbers<[1], [0], [0], [1], [0, 0, 1, 1], [], []>} : vector<64x128xf32>, vector<128x128xf32>, vector<64x128xf32> -> vector<64x128xf32>
    %c0_93 = arith.constant 0 : index
    %c0_94 = arith.constant 0 : index
    %254 = vector.load %arg7[%c0_93, %c0_94] : memref<1x128xf32, #tpu.memory_space<vmem>>, vector<1x128xf32>
    %255 = vector.broadcast %254 : vector<1x128xf32> to vector<64x128xf32>
    %256 = arith.addf %253, %255 : vector<64x128xf32>
    %c0_95 = arith.constant 0 : index
    %c0_96 = arith.constant 0 : index
    %257 = vector.load %arg8[%c0_95, %c0_96] : memref<64x128xf32, #tpu.memory_space<vmem>>, vector<64x128xf32>
    tpu.vector_store %arg8[%c0_95, %c0_96], %256 {strides = array<i32>} : memref<64x128xf32, #tpu.memory_space<vmem>>, vector<64x128xf32>,
    return
  }
}

</mosaic_0001>

<bundles_post_ra>
// kernel: tpu_custom_call.1
= control target key start
LH: loop header
LB: loop body
LE: loop exit
PB: predicated region body
PF: predicated region fallthrough
CT: control target
= control target key end

     0   :  { %16 = vsyncpa [#allocation5], 0  ;;  %s3943_s0 = inlined_call_operand.hbm [shape: f32[64,128], index: 0, kind: input, shape index: {}]   ;;  %s3944_s1 = inlined_call_operand.hbm [shape: f32[8,128], index: 1, kind: input, shape index: {}]   ;;  %s3945_s2 = inlined_call_operand.hbm [shape: f32[8,128], index: 2, kind: input, shape index: {}]   ;;  %s3946_s3 = inlined_call_operand.hbm [shape: f32[128,512], index: 3, kind: input, shape index: {}]   ;;  %s3947_s4 = inlined_call_operand.hbm [shape: f32[128,512], index: 4, kind: input, shape index: {}]   ;;  %s3948_s5 = inlined_call_operand.vmem [shape: f32[1,512], index: 5, kind: input, shape index: {}]   ;;  %s3949_s6 = inlined_call_operand.hbm [shape: f32[128,128], index: 6, kind: input, shape index: {}]   ;;  %s3950_s7 = inlined_call_operand.vmem [shape: f32[1,128], index: 7, kind: input, shape index: {}]   ;;  %s3951_s8 = inlined_call_operand.hbm [shape: f32[64,128], index: 8, kind: output, shape index: {0}]   ;;  %s3952_s9 = inlined_call_operand.hbm [shape: f32[8,128], index: 9, kind: output, shape index: {1}]   ;;  %s3953_s10 = inlined_call_operand.hbm [shape: f32[8,128], index: 10, kind: output, shape index: {2}]  }
   0x1   :  { %17 = vsyncpa [#allocation8], 0 }
   0x2   :  { %18 = vsyncpa [#allocation11], 0 }
   0x3   :  { %19 = vsyncpa [#allocation14], 0 }
   0x4   :  { %20 = vsyncpa [#allocation6], 0  ;;  %s40_s15 = sshll.u32 %s3944_s1, 4  ;;  %s41_s15 = int_to_ptr.hbm [resolvable:$true] %s40_s15 }
   0x5   :  { %21 = vsyncpa [#allocation17], 0  ;;  %s2674_s16 = smov [#allocation7]   ;;  %s61_s20 = sshll.u32 %s3946_s3, 4  ;;  %s62_s20 = int_to_ptr.hbm [resolvable:$true] %s61_s20 }
   0x6   :  { %s42_s17 = sshll.u32 %s2674_s16, 4  ;;  %s2675_s21 = smov [#allocation10]   ;;  %s43_s17 = int_to_ptr.vmem [resolvable:$true] %s42_s17 }
   0x7   :  { %45 = dma.hbm_to_vmem [thread:$0]  %s41_s15, 128, %s43_s17, [#allocation8]  }
   0x8   :  { %s63_s22 = sshll.u32 %s2675_s21, 4  ;;  %s2676_s23 = smov 512   ;;  %s64_s22 = int_to_ptr.vmem [resolvable:$true] %s63_s22 }
   0x9   :  { %s2677_s24 = smov 32   ;;  %s26_s1 = sshll.u32 %s3943_s0, 4  ;;  %s27_s1 = int_to_ptr.hbm [resolvable:$true] %s26_s1 }
   0xa   :  { %69 = dma.hbm_to_vmem [thread:$0]  %s62_s20, 8192, %s64_s22, [#allocation11], %s2676_s23, %s2676_s23, %s2677_s24  }
   0xb   :  { %s2678_s27 = smov [#allocation4]   ;;  %s51_s3 = sshll.u32 %s3945_s2, 4  ;;  %s52_s3 = int_to_ptr.hbm [resolvable:$true] %s51_s3 }
   0xc   :  { %s28_s28 = sshll.u32 %s2678_s27, 4  ;;  %s2679_s11 = smov 128   ;;  %s29_s28 = int_to_ptr.vmem [resolvable:$true] %s28_s28 }
   0xd   :  { %s2680_s12 = smov 8   ;;  %s2681_s13 = smov [#allocation9]  }
   0xe   :  { %34 = dma.hbm_to_vmem [thread:$0]  %s27_s1, 1024, %s29_s28, [#allocation5], %s2679_s11, %s2679_s11, %s2680_s12  }
   0xf   :  { %s53_s14 = sshll.u32 %s2681_s13, 4  ;;  %s74_s0 = sshll.u32 %s3947_s4, 4  ;;  %s54_s14 = int_to_ptr.vmem [resolvable:$true] %s53_s14  ;;  %s75_s0 = int_to_ptr.hbm [resolvable:$true] %s74_s0 }
  0x10   :  { %56 = dma.hbm_to_vmem [thread:$0]  %s52_s3, 128, %s54_s14, [#allocation8]  }
  0x11   :  { %s89_s2 = sshll.u32 %s3949_s6, 4  ;;  %s2682_s19 = smov [#allocation12]   ;;  %s90_s2 = int_to_ptr.hbm [resolvable:$true] %s89_s2 }
  0x12   :  { %s76_s20 = sshll.u32 %s2682_s19, 4  ;;  %s2683_s21 = smov [#allocation13]   ;;  %s77_s20 = int_to_ptr.vmem [resolvable:$true] %s76_s20 }
  0x13   :  { %82 = dma.hbm_to_vmem [thread:$0]  %s75_s0, 8192, %s77_s20, [#allocation11], %s2676_s23, %s2676_s23, %s2677_s24  }
  0x14   :  { %s91_s22 = sshll.u32 %s2683_s21, 4  ;;  %s92_s22 = int_to_ptr.vmem [resolvable:$true] %s91_s22 }
  0x15   :  { %97 = dma.hbm_to_vmem [thread:$0]  %s90_s2, 2048, %s92_s22, [#allocation14], %s2679_s11, %s2679_s11, %s2680_s12  }
  0x16   :  { %2662 = dma.done.wait [#allocation5], 1024  }
  0x17   :  { %2663 = vsyncadd [#allocation5], 4294966272 }
  0x18   :  { %2664 = dma.done.wait [#allocation8], 256  }
  0x19   :  { %2665 = vsyncadd [#allocation8], 4294967040 }
  0x1a   :  { %2666 = dma.done.wait [#allocation11], 16384  }
  0x1b   :  { %2667 = vsyncadd [#allocation11], 4294950912 }
  0x1c   :  { %2668 = dma.done.wait [#allocation14], 2048  }
  0x1d   :  { %2669 = vsyncadd [#allocation14], 4294965248  ;;  %v192_v0 = vld [vmem:[#allocation10 + $0x1e0] sm:$0xff]  ;;  %v195_v1 = vld [vmem:[#allocation10 + $0x1f8] sm:$0xff]  ;;  %s2231_s1 = sshll.u32 %s3952_s9, 4  ;;  %s2685_s27 = smov [#allocation18]   ;;  %s2232_s1 = int_to_ptr.hbm [resolvable:$true] %s2231_s1 }
  0x1e   :  { %v188_v2 = vld [vmem:[#allocation10 + $0x1c0] sm:$0xff]  ;;  %206 = vmatpush.msra.mxu1 %v192_v0  ;;  %2288 = vmatpush.msra.mxu2 %v192_v0  ;;  %v191_v3 = vld [vmem:[#allocation10 + $0x1d8] sm:$0xff]  ;;  %v2810_v47 = vld [vmem:[#allocation4] sm:$0xff]  ;;  %s2240_s28 = sshll.u32 %s2685_s27, 4  ;;  %s2242_s3 = sshll.u32 %s3953_s10, 4  ;;  %s2241_s28 = int_to_ptr.vmem [resolvable:$true] %s2240_s28  ;;  %s2243_s3 = int_to_ptr.hbm [resolvable:$true] %s2242_s3 }
  0x1f   :  { %v2766_v4 = vld [vmem:[#allocation12 + $0x1e0] sm:$0xff]  ;;  %329 = vmatpush.msra.mxu3 %v195_v1  ;;  %v187_v7 = vld [vmem:[#allocation10 + $0x1b8] sm:$0xff]  ;;  %v2813_v48 = vld [vmem:[#allocation4 + $0x20] sm:$0xff]  ;;  %s2686_s9 = smov [#allocation15]   ;;  %s2217_s16 = sshll.u32 %s3951_s8, 4  ;;  %s2218_s16 = int_to_ptr.hbm [resolvable:$true] %s2217_s16 }
  0x20   :  { %472 = vmatpush.msra.mxu0 %v2766_v4  ;;  %v184_v5 = vld [vmem:[#allocation10 + $0x1a0] sm:$0xff]  ;;  %207 = vmatpush.msra.mxu1 %v188_v2  ;;  %v183_v10 = vld [vmem:[#allocation10 + $0x198] sm:$0xff]  ;;  %v193_v49 = vld [vmem:[#allocation10 + $0x1e8] sm:$0xff]  ;;  %s2215_s13 = sshll.u32 %s2686_s9, 4  ;;  %s2216_s13 = int_to_ptr.vmem [resolvable:$true] %s2215_s13 }
  0x21   :  { %v2769_v6 = vld [vmem:[#allocation12 + $0x1c0] sm:$0xff]  ;;  %2289 = vmatpush.msra.mxu2 %v188_v2  ;;  %330 = vmatpush.msra.mxu3 %v191_v3  ;;  %v179_v13 = vld [vmem:[#allocation10 + $0x178] sm:$0xff]  ;;  %v194_v50 = vld [vmem:[#allocation10 + $0x1f0] sm:$0xff] }
  0x22   :  { %v2771_v8 = vld [vmem:[#allocation12 + $0x1a0] sm:$0xff]  ;;  %473 = vmatpush.msra.mxu0 %v2769_v6  ;;  %208 = vmatpush.msra.mxu1 %v184_v5  ;;  %v175_v16 = vld [vmem:[#allocation10 + $0x158] sm:$0xff]  ;;  %v189_v52 = vld [vmem:[#allocation10 + $0x1c8] sm:$0xff] }
  0x23   :  { %v180_v9 = vld [vmem:[#allocation10 + $0x180] sm:$0xff]  ;;  %2290 = vmatpush.msra.mxu2 %v184_v5  ;;  %331 = vmatpush.msra.mxu3 %v187_v7  ;;  %v171_v19 = vld [vmem:[#allocation10 + $0x138] sm:$0xff]  ;;  %v2819_v53 = vld [vmem:[#allocation7] sm:$0xff] }
  0x24   :  { %v2774_v11 = vld [vmem:[#allocation12 + $0x180] sm:$0xff]  ;;  %474 = vmatpush.msra.mxu0 %v2771_v8  ;;  %209 = vmatpush.msra.mxu1 %v180_v9  ;;  %v167_v22 = vld [vmem:[#allocation10 + $0x118] sm:$0xff]  ;;  %v190_v54 = vld [vmem:[#allocation10 + $0x1d0] sm:$0xff] }
  0x25   :  { %v176_v12 = vld [vmem:[#allocation10 + $0x160] sm:$0xff]  ;;  %2291 = vmatpush.msra.mxu2 %v180_v9  ;;  %332 = vmatpush.msra.mxu3 %v183_v10  ;;  %v163_v25 = vld [vmem:[#allocation10 + $0xf8] sm:$0xff]  ;;  %v185_v55 = vld [vmem:[#allocation10 + $0x1a8] sm:$0xff] }
  0x26   :  { %v2777_v14 = vld [vmem:[#allocation12 + $0x160] sm:$0xff]  ;;  %475 = vmatpush.msra.mxu0 %v2774_v11  ;;  %210 = vmatpush.msra.mxu1 %v176_v12  ;;  %v159_v28 = vld [vmem:[#allocation10 + $0xd8] sm:$0xff]  ;;  %v186_v57 = vld [vmem:[#allocation10 + $0x1b0] sm:$0xff] }
  0x27   :  { %v172_v15 = vld [vmem:[#allocation10 + $0x140] sm:$0xff]  ;;  %2292 = vmatpush.msra.mxu2 %v176_v12  ;;  %333 = vmatpush.msra.mxu3 %v179_v13  ;;  %v155_v31 = vld [vmem:[#allocation10 + $0xb8] sm:$0xff]  ;;  %v181_v58 = vld [vmem:[#allocation10 + $0x188] sm:$0xff] }
  0x28   :  { %v2780_v17 = vld [vmem:[#allocation12 + $0x140] sm:$0xff]  ;;  %476 = vmatpush.msra.mxu0 %v2777_v14  ;;  %211 = vmatpush.msra.mxu1 %v172_v15  ;;  %v151_v34 = vld [vmem:[#allocation10 + $0x98] sm:$0xff]  ;;  %v182_v60 = vld [vmem:[#allocation10 + $0x190] sm:$0xff] }
  0x29   :  { %v168_v18 = vld [vmem:[#allocation10 + $0x120] sm:$0xff]  ;;  %2293 = vmatpush.msra.mxu2 %v172_v15  ;;  %334 = vmatpush.msra.mxu3 %v175_v16  ;;  %v147_v37 = vld [vmem:[#allocation10 + $0x78] sm:$0xff]  ;;  %v177_v63 = vld [vmem:[#allocation10 + $0x168] sm:$0xff] }
  0x2a   :  { %v2783_v20 = vld [vmem:[#allocation12 + $0x120] sm:$0xff]  ;;  %477 = vmatpush.msra.mxu0 %v2780_v17  ;;  %212 = vmatpush.msra.mxu1 %v168_v18  ;;  %v143_v40 = vld [vmem:[#allocation10 + $0x58] sm:$0xff]  ;;  %v178_v0 = vld [vmem:[#allocation10 + $0x170] sm:$0xff] }
  0x2b   :  { %v164_v21 = vld [vmem:[#allocation10 + $0x100] sm:$0xff]  ;;  %2294 = vmatpush.msra.mxu2 %v168_v18  ;;  %335 = vmatpush.msra.mxu3 %v171_v19  ;;  %v139_v43 = vld [vmem:[#allocation10 + $0x38] sm:$0xff]  ;;  %v173_v1 = vld [vmem:[#allocation10 + $0x148] sm:$0xff] }
  0x2c   :  { %v2786_v23 = vld [vmem:[#allocation12 + $0x100] sm:$0xff]  ;;  %478 = vmatpush.msra.mxu0 %v2783_v20  ;;  %213 = vmatpush.msra.mxu1 %v164_v21  ;;  %v135_v46 = vld [vmem:[#allocation10 + $0x18] sm:$0xff]  ;;  %v174_v3 = vld [vmem:[#allocation10 + $0x150] sm:$0xff] }
  0x2d   :  { %v160_v24 = vld [vmem:[#allocation10 + $0xe0] sm:$0xff]  ;;  %2295 = vmatpush.msra.mxu2 %v164_v21  ;;  %336 = vmatpush.msra.mxu3 %v167_v22  ;;  %v2822_v56 = vld [vmem:[#allocation12 + $0x1f8] sm:$0xff]  ;;  %v169_v5 = vld [vmem:[#allocation10 + $0x128] sm:$0xff] }
  0x2e   :  { %v2789_v26 = vld [vmem:[#allocation12 + $0xe0] sm:$0xff]  ;;  %479 = vmatpush.msra.mxu0 %v2786_v23  ;;  %214 = vmatpush.msra.mxu1 %v160_v24  ;;  %v2826_v59 = vld [vmem:[#allocation12 + $0x1d8] sm:$0xff]  ;;  %v165_v9 = vld [vmem:[#allocation10 + $0x108] sm:$0xff] }
  0x2f   :  { %v156_v27 = vld [vmem:[#allocation10 + $0xc0] sm:$0xff]  ;;  %2296 = vmatpush.msra.mxu2 %v160_v24  ;;  %337 = vmatpush.msra.mxu3 %v163_v25  ;;  %v2828_v61 = vld [vmem:[#allocation4 + $0x8] sm:$0xff]  ;;  %v166_v12 = vld [vmem:[#allocation10 + $0x110] sm:$0xff] }
  0x30   :  { %v2792_v29 = vld [vmem:[#allocation12 + $0xc0] sm:$0xff]  ;;  %480 = vmatpush.msra.mxu0 %v2789_v26  ;;  %215 = vmatpush.msra.mxu1 %v156_v27  ;;  %v2831_v62 = vld [vmem:[#allocation4 + $0x28] sm:$0xff]  ;;  %v161_v16 = vld [vmem:[#allocation10 + $0xe8] sm:$0xff] }
  0x31   :  { %v152_v30 = vld [vmem:[#allocation10 + $0xa0] sm:$0xff]  ;;  %2297 = vmatpush.msra.mxu2 %v156_v27  ;;  %338 = vmatpush.msra.mxu3 %v159_v28  ;;  %v2836_v2 = vld [vmem:[#allocation12 + $0x1b8] sm:$0xff]  ;;  %v162_v18 = vld [vmem:[#allocation10 + $0xf0] sm:$0xff] }
  0x32   :  { %v2795_v32 = vld [vmem:[#allocation12 + $0xa0] sm:$0xff]  ;;  %481 = vmatpush.msra.mxu0 %v2792_v29  ;;  %216 = vmatpush.msra.mxu1 %v152_v30  ;;  %v2840_v7 = vld [vmem:[#allocation12 + $0x198] sm:$0xff]  ;;  %v158_v21 = vld [vmem:[#allocation10 + $0xd0] sm:$0xff] }
  0x33   :  { %v148_v33 = vld [vmem:[#allocation10 + $0x80] sm:$0xff]  ;;  %2298 = vmatpush.msra.mxu2 %v152_v30  ;;  %339 = vmatpush.msra.mxu3 %v155_v31  ;;  %v2843_v10 = vld [vmem:[#allocation12 + $0x178] sm:$0xff]  ;;  %v153_v22 = vld [vmem:[#allocation10 + $0xa8] sm:$0xff] }
  0x34   :  { %v2798_v35 = vld [vmem:[#allocation12 + $0x80] sm:$0xff]  ;;  %482 = vmatpush.msra.mxu0 %v2795_v32  ;;  %217 = vmatpush.msra.mxu1 %v148_v33  ;;  %v2854_v19 = vld [vmem:[#allocation12 + $0x158] sm:$0xff]  ;;  %v149_v25 = vld [vmem:[#allocation10 + $0x88] sm:$0xff] }
  0x35   :  { %v144_v36 = vld [vmem:[#allocation10 + $0x60] sm:$0xff]  ;;  %2299 = vmatpush.msra.mxu2 %v148_v33  ;;  %340 = vmatpush.msra.mxu3 %v151_v34  ;;  %v2858_v24 = vld [vmem:[#allocation12 + $0x138] sm:$0xff]  ;;  %v150_v28 = vld [vmem:[#allocation10 + $0x90] sm:$0xff] }
  0x36   :  { %v2801_v38 = vld [vmem:[#allocation12 + $0x60] sm:$0xff]  ;;  %483 = vmatpush.msra.mxu0 %v2798_v35  ;;  %218 = vmatpush.msra.mxu1 %v144_v36  ;;  %v2861_v27 = vld [vmem:[#allocation12 + $0x118] sm:$0xff]  ;;  %v2864_v30 = vld [vmem:[#allocation4 + $0x18] sm:$0xff] }
  0x37   :  { %v140_v39 = vld [vmem:[#allocation10 + $0x40] sm:$0xff]  ;;  %2300 = vmatpush.msra.mxu2 %v144_v36  ;;  %341 = vmatpush.msra.mxu3 %v147_v37  ;;  %v2867_v31 = vld [vmem:[#allocation4 + $0x38] sm:$0xff]  ;;  %v146_v34 = vld [vmem:[#allocation10 + $0x70] sm:$0xff] }
  0x38   :  { %v2804_v41 = vld [vmem:[#allocation12 + $0x40] sm:$0xff]  ;;  %484 = vmatpush.msra.mxu0 %v2801_v38  ;;  %219 = vmatpush.msra.mxu1 %v140_v39  ;;  %v145_v33 = vld [vmem:[#allocation10 + $0x68] sm:$0xff]  ;;  %v2872_v36 = vld [vmem:[#allocation12 + $0xf8] sm:$0xff] }
  0x39   :  { %v136_v42 = vld [vmem:[#allocation10 + $0x20] sm:$0xff]  ;;  %2301 = vmatpush.msra.mxu2 %v140_v39  ;;  %342 = vmatpush.msra.mxu3 %v143_v40  ;;  %v142_v37 = vld [vmem:[#allocation10 + $0x50] sm:$0xff]  ;;  %v137_v39 = vld [vmem:[#allocation10 + $0x28] sm:$0xff] }
  0x3a   :  { %v2807_v44 = vld [vmem:[#allocation12 + $0x20] sm:$0xff]  ;;  %485 = vmatpush.msra.mxu0 %v2804_v41  ;;  %220 = vmatpush.msra.mxu1 %v136_v42  ;;  %v2876_v40 = vld [vmem:[#allocation12 + $0xd8] sm:$0xff] }
  0x3b   :  { %v132_v45 = vld [vmem:[#allocation10] sm:$0xff]  ;;  %2302 = vmatpush.msra.mxu2 %v136_v42  ;;  %343 = vmatpush.msra.mxu3 %v139_v43  ;;  %v133_v42 = vld [vmem:[#allocation10 + $0x8] sm:$0xff]  ;;  %v2879_v43 = vld [vmem:[#allocation12 + $0xb8] sm:$0xff] }
  0x3c   :  { %486 = vmatpush.msra.mxu0 %v2807_v44  ;;  %221 = vmatpush.msra.mxu1 %v132_v45  ;;  %v2816_v51 = vld [vmem:[#allocation12] sm:$0xff] }
  0x3d   :  { %2303 = vmatpush.msra.mxu2 %v132_v45  ;;  %344 = vmatpush.msra.mxu3 %v135_v46  ;;  %v2846_v13 = vld [vmem:[#allocation4 + $0x10] sm:$0xff]  ;;  %v134_v45 = vld [vmem:[#allocation10 + $0x10] sm:$0xff]  ;;  %v2883_v46 = vld [vmem:[#allocation12 + $0x1e8] sm:$0xff] }
  0x3e   :  { %222 = vmatmul.f32.vlgmr.msra.gmra.mxu1 %v2810_v47  ;;  %234 = vmatmul.f32.vlgmr.msra.gmra.mxu2 %v2813_v48  ;;  %v2849_v15 = vld [vmem:[#allocation4 + $0x30] sm:$0xff] }
  0x3f   :  { %247 = vmatpush.msrb.mxu1 %v193_v49  ;;  %345 = vmatmul.f32.vlgmr.msra.gmra.mxu3 %v2810_v47  ;;  %v2886_v49 = vld [vmem:[#allocation12 + $0x1f0] sm:$0xff] }
  0x40   :  { %288 = vmatpush.msrb.mxu2 %v194_v50  ;;  %487 = vmatpush.msra.mxu0 %v2816_v51  ;;  %v2890_v50 = vld [vmem:[#allocation12 + $0x1c8] sm:$0xff] }
  0x41   :  { %248 = vmatpush.msrb.mxu1 %v189_v52  ;;  %488 = vmatmul.f32.vlgmr.msra.gmra.mxu0 %v2819_v53  ;;  %v2896_v52 = vld [vmem:[#allocation12 + $0x1d0] sm:$0xff] }
  0x42   :  { %289 = vmatpush.msrb.mxu2 %v190_v54  ;;  %532 = vmatpush.msrb.mxu3 %v2822_v56  ;;  %v2902_v54 = vld [vmem:[#allocation12 + $0x78] sm:$0xff] }
  0x43   :  { %249 = vmatpush.msrb.mxu1 %v185_v55  ;;  %688 = vmatpush.msrb.mxu0 %v2766_v4  ;;  %v170_v4 = vld [vmem:[#allocation10 + $0x130] sm:$0xff] }
  0x44   :  { %290 = vmatpush.msrb.mxu2 %v186_v57  ;;  %533 = vmatpush.msrb.mxu3 %v2826_v59  ;;  %v2905_v55 = vld [vmem:[#allocation12 + $0x1b0] sm:$0xff]  ;;  %v2908_v57 = vld [vmem:[#allocation12 + $0x188] sm:$0xff] }
  0x45   :  { %250 = vmatpush.msrb.mxu1 %v181_v58  ;;  %689 = vmatpush.msrb.mxu0 %v2769_v6  ;;  %v157_v6 = vld [vmem:[#allocation10 + $0xc8] sm:$0xff]  ;;  %v2916_v58 = vld [vmem:[#allocation12 + $0x190] sm:$0xff] }
  0x46   :  { %291 = vmatpush.msrb.mxu2 %v182_v60  ;;  %225 = vmatmul.f32.gmra.mxu1 %v2828_v61  ;;  %v2918_v60 = vld [vmem:[#allocation12 + $0x168] sm:$0xff] }
  0x47   :  { %237 = vmatmul.f32.gmra.mxu2 %v2831_v62  ;;  %251 = vmatpush.msrb.mxu1 %v177_v63  ;;  %v2924_v63 = vld [vmem:[#allocation12 + $0x170] sm:$0xff] }
  0x48   :  { %348 = vmatmul.f32.gmra.mxu3 %v2828_v61  ;;  %292 = vmatpush.msrb.mxu2 %v178_v0  ;;  %v2930_v0 = vld [vmem:[#allocation12 + $0x38] sm:$0xff] }
  0x49   :  { %252 = vmatpush.msrb.mxu1 %v173_v1  ;;  %534 = vmatpush.msrb.mxu3 %v2836_v2  ;;  %v2934_v1 = vld [vmem:[#allocation12 + $0x150] sm:$0xff] }
  0x4a   :  { %293 = vmatpush.msrb.mxu2 %v174_v3  ;;  %690 = vmatpush.msrb.mxu0 %v2771_v8  ;;  %v154_v8 = vld [vmem:[#allocation10 + $0xb0] sm:$0xff]  ;;  %v2940_v3 = vld [vmem:[#allocation12 + $0x18] sm:$0xff] }
  0x4b   :  { %253 = vmatpush.msrb.mxu1 %v169_v5  ;;  %535 = vmatpush.msrb.mxu3 %v2840_v7  ;;  %v2944_v5 = vld [vmem:[#allocation12 + $0x130] sm:$0xff] }
  0x4c   :  { %294 = vmatpush.msrb.mxu2 %v170_v4  ;;  %691 = vmatpush.msrb.mxu0 %v2774_v11  ;;  %v141_v11 = vld [vmem:[#allocation10 + $0x48] sm:$0xff] }
  0x4d   :  { %254 = vmatpush.msrb.mxu1 %v165_v9  ;;  %536 = vmatpush.msrb.mxu3 %v2843_v10  ;;  %v2946_v4 = vld [vmem:[#allocation12 + $0x108] sm:$0xff] }
  0x4e   :  { %295 = vmatpush.msrb.mxu2 %v166_v12  ;;  %228 = vmatmul.f32.gmra.mxu1 %v2846_v13  ;;  %v2954_v9 = vld [vmem:[#allocation12 + $0xe8] sm:$0xff]  ;;  %v2959_v12 = vld [vmem:[#allocation12 + $0xf0] sm:$0xff] }
  0x4f   :  { %240 = vmatmul.f32.gmra.mxu2 %v2849_v15  ;;  %255 = vmatpush.msrb.mxu1 %v161_v16  ;;  %v2968_v16 = vld [vmem:[#allocation12 + $0xd0] sm:$0xff] }
  0x50   :  { %351 = vmatmul.f32.gmra.mxu3 %v2846_v13  ;;  %296 = vmatpush.msrb.mxu2 %v162_v18  ;;  %v2971_v18 = vld [vmem:[#allocation12 + $0xa8] sm:$0xff] }
  0x51   :  { %256 = vmatpush.msrb.mxu1 %v157_v6  ;;  %537 = vmatpush.msrb.mxu3 %v2854_v19  ;;  %v2978_v6 = vld [vmem:[#allocation12 + $0x88] sm:$0xff] }
  0x52   :  { %297 = vmatpush.msrb.mxu2 %v158_v21  ;;  %692 = vmatpush.msrb.mxu0 %v2777_v14  ;;  %v138_v14 = vld [vmem:[#allocation10 + $0x30] sm:$0xff]  ;;  %v2986_v21 = vld [vmem:[#allocation12 + $0x68] sm:$0xff] }
  0x53   :  { %257 = vmatpush.msrb.mxu1 %v153_v22  ;;  %538 = vmatpush.msrb.mxu3 %v2858_v24  ;;  %v2993_v22 = vld [vmem:[#allocation12 + $0x48] sm:$0xff] }
  0x54   :  { %298 = vmatpush.msrb.mxu2 %v154_v8  ;;  %693 = vmatpush.msrb.mxu0 %v2780_v17  ;;  %v2892_v17 = vld [vmem:[#allocation12 + $0x98] sm:$0xff]  ;;  %v3000_v8 = vld [vmem:[#allocation12 + $0x50] sm:$0xff] }
  0x55   :  { %258 = vmatpush.msrb.mxu1 %v149_v25  ;;  %539 = vmatpush.msrb.mxu3 %v2861_v27  ;;  %v3007_v25 = vld [vmem:[#allocation12 + $0x30] sm:$0xff] }
  0x56   :  { %299 = vmatpush.msrb.mxu2 %v150_v28  ;;  %231 = vmatmul.f32.gmra.mxu1 %v2864_v30  ;;  %v3011_v28 = vld [vmem:[#allocation12 + $0x8] sm:$0xff] }
  0x57   :  { %243 = vmatmul.f32.gmra.mxu2 %v2867_v31  ;;  %259 = vmatpush.msrb.mxu1 %v145_v33 }
  0x58   :  { %354 = vmatmul.f32.gmra.mxu3 %v2864_v30  ;;  %300 = vmatpush.msrb.mxu2 %v146_v34 }
  0x59   :  { %260 = vmatpush.msrb.mxu1 %v141_v11  ;;  %540 = vmatpush.msrb.mxu3 %v2872_v36 }
  0x5a   :  { %301 = vmatpush.msrb.mxu2 %v142_v37  ;;  %694 = vmatpush.msrb.mxu0 %v2783_v20  ;;  %v2899_v20 = vld [vmem:[#allocation12 + $0x1a8] sm:$0xff] }
  0x5b   :  { %261 = vmatpush.msrb.mxu1 %v137_v39  ;;  %541 = vmatpush.msrb.mxu3 %v2876_v40 }
  0x5c   :  { %302 = vmatpush.msrb.mxu2 %v138_v14  ;;  %695 = vmatpush.msrb.mxu0 %v2786_v23  ;;  %v2927_v23 = vld [vmem:[#allocation12 + $0x148] sm:$0xff] }
  0x5d   :  { %262 = vmatpush.msrb.mxu1 %v133_v42  ;;  %542 = vmatpush.msrb.mxu3 %v2879_v43 }
  0x5e   :  { %303 = vmatpush.msrb.mxu2 %v134_v45  ;;  %263 = vmatmul.f32.vlgmr.msrb.gmra.mxu1 %v2810_v47 }
  0x5f   :  { %304 = vmatmul.f32.vlgmr.msrb.gmra.mxu2 %v2810_v47  ;;  %492 = vmatpush.msra.mxu1 %v2883_v46  ;;  %v2911_v47 = vld [vmem:[#allocation12 + $0x58] sm:$0xff] }
  0x60   :  { %357 = vmatmul.f32.gmra.mxu3 %v2813_v48  ;;  %512 = vmatpush.msra.mxu2 %v2886_v49 }
  0x61   :  { %493 = vmatpush.msra.mxu1 %v2890_v50  ;;  %543 = vmatpush.msrb.mxu3 %v2892_v17 }
  0x62   :  { %513 = vmatpush.msra.mxu2 %v2896_v52  ;;  %696 = vmatpush.msrb.mxu0 %v2789_v26  ;;  %v2937_v26 = vld [vmem:[#allocation12 + $0x128] sm:$0xff] }
  0x63   :  { %494 = vmatpush.msra.mxu1 %v2899_v20  ;;  %544 = vmatpush.msrb.mxu3 %v2902_v54 }
  0x64   :  { %514 = vmatpush.msra.mxu2 %v2905_v55  ;;  %697 = vmatpush.msrb.mxu0 %v2792_v29  ;;  %v2963_v29 = vld [vmem:[#allocation12 + $0xc8] sm:$0xff] }
  0x65   :  { %495 = vmatpush.msra.mxu1 %v2908_v57  ;;  %545 = vmatpush.msrb.mxu3 %v2911_v47 }
  0x66   :  { %266 = vmatmul.f32.gmra.mxu1 %v2828_v61  ;;  %515 = vmatpush.msra.mxu2 %v2916_v58 }
  0x67   :  { %307 = vmatmul.f32.gmra.mxu2 %v2828_v61  ;;  %496 = vmatpush.msra.mxu1 %v2918_v60  ;;  %v2952_v61 = vld [vmem:[#allocation12 + $0x110] sm:$0xff] }
  0x68   :  { %360 = vmatmul.f32.gmra.mxu3 %v2831_v62  ;;  %516 = vmatpush.msra.mxu2 %v2924_v63 }
  0x69   :  { %497 = vmatpush.msra.mxu1 %v2927_v23  ;;  %546 = vmatpush.msrb.mxu3 %v2930_v0 }
  0x6a   :  { %517 = vmatpush.msra.mxu2 %v2934_v1  ;;  %698 = vmatpush.msrb.mxu0 %v2795_v32  ;;  %v2975_v32 = vld [vmem:[#allocation12 + $0xb0] sm:$0xff] }
  0x6b   :  { %498 = vmatpush.msra.mxu1 %v2937_v26  ;;  %547 = vmatpush.msrb.mxu3 %v2940_v3 }
  0x6c   :  { %518 = vmatpush.msra.mxu2 %v2944_v5  ;;  %699 = vmatpush.msrb.mxu0 %v2798_v35  ;;  %v2998_v35 = vld [vmem:[#allocation12 + $0x70] sm:$0xff] }
  0x6d   :  { %748 = vmatpush.msra.mxu3 %v2822_v56  ;;  %499 = vmatpush.msra.mxu1 %v2946_v4 }
  0x6e   :  { %269 = vmatmul.f32.gmra.mxu1 %v2846_v13  ;;  %519 = vmatpush.msra.mxu2 %v2952_v61 }
  0x6f   :  { %310 = vmatmul.f32.gmra.mxu2 %v2846_v13  ;;  %500 = vmatpush.msra.mxu1 %v2954_v9  ;;  %v2983_v13 = vld [vmem:[#allocation12 + $0x90] sm:$0xff] }
  0x70   :  { %363 = vmatmul.f32.gmra.mxu3 %v2849_v15  ;;  %520 = vmatpush.msra.mxu2 %v2959_v12 }
  0x71   :  { %501 = vmatpush.msra.mxu1 %v2963_v29  ;;  %749 = vmatpush.msra.mxu3 %v2826_v59 }
  0x72   :  { %521 = vmatpush.msra.mxu2 %v2968_v16  ;;  %700 = vmatpush.msrb.mxu0 %v2801_v38  ;;  %v3003_v38 = vld [vmem:[#allocation12 + $0x28] sm:$0xff] }
  0x73   :  { %502 = vmatpush.msra.mxu1 %v2971_v18  ;;  %750 = vmatpush.msra.mxu3 %v2836_v2 }
  0x74   :  { %522 = vmatpush.msra.mxu2 %v2975_v32  ;;  %701 = vmatpush.msrb.mxu0 %v2804_v41 }
  0x75   :  { %503 = vmatpush.msra.mxu1 %v2978_v6  ;;  %751 = vmatpush.msra.mxu3 %v2840_v7 }
  0x76   :  { %272 = vmatmul.f32.gmra.mxu1 %v2864_v30  ;;  %523 = vmatpush.msra.mxu2 %v2983_v13 }
  0x77   :  { %313 = vmatmul.f32.gmra.mxu2 %v2864_v30  ;;  %504 = vmatpush.msra.mxu1 %v2986_v21  ;;  %v3015_v30 = vld [vmem:[#allocation12 + $0x10] sm:$0xff] }
  0x78   :  { %366 = vmatmul.f32.gmra.mxu3 %v2867_v31  ;;  %524 = vmatpush.msra.mxu2 %v2998_v35 }
  0x79   :  { %505 = vmatpush.msra.mxu1 %v2993_v22  ;;  %752 = vmatpush.msra.mxu3 %v2843_v10 }
  0x7a   :  { %525 = vmatpush.msra.mxu2 %v3000_v8  ;;  %702 = vmatpush.msrb.mxu0 %v2807_v44  ;;  %v196_v44 = vld [vmem:[%s3948_s5] sm:$0xf] }
  0x7b   :  { %506 = vmatpush.msra.mxu1 %v3003_v38  ;;  %753 = vmatpush.msra.mxu3 %v2854_v19  ;;  %v199_v45 = vperm.slane %v196_v44, 1 }
  0x7c   :  { %526 = vmatpush.msra.mxu2 %v3007_v25  ;;  %703 = vmatpush.msrb.mxu0 %v2816_v51 }
  0x7d   :  { %507 = vmatpush.msra.mxu1 %v3011_v28  ;;  %754 = vmatpush.msra.mxu3 %v2858_v24 }
  0x7e   :  { %275 = vmatmul.f32.gmra.mxu1 %v2813_v48  ;;  %527 = vmatpush.msra.mxu2 %v3015_v30 }
  0x7f   :  { %316 = vmatmul.f32.gmra.mxu2 %v2813_v48  ;;  %708 = vmatpush.msrb.mxu1 %v2883_v46  ;;  %v198_v48 = vperm.slane %v196_v44, 0 }
  0x80   :  { %548 = vmatmul.f32.vlgmr.msrb.gmra.mxu3 %v2819_v53  ;;  %728 = vmatpush.msrb.mxu2 %v2886_v49 }
  0x81   :  { %709 = vmatpush.msrb.mxu1 %v2890_v50  ;;  %755 = vmatpush.msra.mxu3 %v2861_v27 }
  0x82   :  { %729 = vmatpush.msrb.mxu2 %v2896_v52 }
  0x83   :  { %710 = vmatpush.msrb.mxu1 %v2899_v20  ;;  %756 = vmatpush.msra.mxu3 %v2872_v36 }
  0x84   :  { %730 = vmatpush.msrb.mxu2 %v2905_v55 }
  0x85   :  { %711 = vmatpush.msrb.mxu1 %v2908_v57  ;;  %757 = vmatpush.msra.mxu3 %v2876_v40 }
  0x86   :  { %278 = vmatmul.f32.gmra.mxu1 %v2831_v62  ;;  %731 = vmatpush.msrb.mxu2 %v2916_v58 }
  0x87   :  { %319 = vmatmul.f32.gmra.mxu2 %v2831_v62  ;;  %712 = vmatpush.msrb.mxu1 %v2918_v60 }
  0x88   :  { %732 = vmatpush.msrb.mxu2 %v2924_v63  ;;  %758 = vmatpush.msra.mxu3 %v2879_v43 }
  0x89   :  { %713 = vmatpush.msrb.mxu1 %v2927_v23 }
  0x8a   :  { %733 = vmatpush.msrb.mxu2 %v2934_v1  ;;  %759 = vmatpush.msra.mxu3 %v2892_v17 }
  0x8b   :  { %714 = vmatpush.msrb.mxu1 %v2937_v26 }
  0x8c   :  { %734 = vmatpush.msrb.mxu2 %v2944_v5  ;;  %760 = vmatpush.msra.mxu3 %v2902_v54 }
  0x8d   :  { %715 = vmatpush.msrb.mxu1 %v2946_v4 }
  0x8e   :  { %281 = vmatmul.f32.gmra.mxu1 %v2849_v15  ;;  %735 = vmatpush.msrb.mxu2 %v2952_v61 }
  0x8f   :  { %322 = vmatmul.f32.gmra.mxu2 %v2849_v15  ;;  %716 = vmatpush.msrb.mxu1 %v2954_v9 }
  0x90   :  { %736 = vmatpush.msrb.mxu2 %v2959_v12  ;;  %761 = vmatpush.msra.mxu3 %v2911_v47 }
  0x91   :  { %717 = vmatpush.msrb.mxu1 %v2963_v29 }
  0x92   :  { %737 = vmatpush.msrb.mxu2 %v2968_v16  ;;  %762 = vmatpush.msra.mxu3 %v2930_v0 }
  0x93   :  { %718 = vmatpush.msrb.mxu1 %v2971_v18 }
  0x94   :  { %738 = vmatpush.msrb.mxu2 %v2975_v32  ;;  %763 = vmatpush.msra.mxu3 %v2940_v3 }
  0x95   :  { %719 = vmatpush.msrb.mxu1 %v2978_v6 }
  0x96   :  { %964 = vmatpush.msrb.mxu3 %v2822_v56  ;;  %284 = vmatmul.f32.gmra.mxu1 %v2867_v31 }
  0x97   :  { %739 = vmatpush.msrb.mxu2 %v2983_v13  ;;  %720 = vmatpush.msrb.mxu1 %v2986_v21 }
  0x98   :  { %325 = vmatmul.f32.gmra.mxu2 %v2867_v31  ;;  %965 = vmatpush.msrb.mxu3 %v2826_v59 }
  0x99   :  { %740 = vmatpush.msrb.mxu2 %v2998_v35  ;;  %721 = vmatpush.msrb.mxu1 %v2993_v22 }
  0x9a   :  { %966 = vmatpush.msrb.mxu3 %v2836_v2  ;;  %v201_v2 = vperm.slane %v196_v44, 3 }
  0x9b   :  { %741 = vmatpush.msrb.mxu2 %v3000_v8  ;;  %722 = vmatpush.msrb.mxu1 %v3003_v38 }
  0x9c   :  { %967 = vmatpush.msrb.mxu3 %v2840_v7 }
  0x9d   :  { %742 = vmatpush.msrb.mxu2 %v3007_v25  ;;  %723 = vmatpush.msrb.mxu1 %v3011_v28 }
  0x9e   :  { %508 = vmatmul.f32.vlgmr.msra.gmra.mxu1 %v2819_v53  ;;  %968 = vmatpush.msrb.mxu3 %v2843_v10 }
  0x9f   :  { %743 = vmatpush.msrb.mxu2 %v3015_v30  ;;  %924 = vmatpush.msra.mxu1 %v2883_v46 }
  0xa0   :  { %528 = vmatmul.f32.vlgmr.msra.gmra.mxu2 %v2819_v53  ;;  %969 = vmatpush.msrb.mxu3 %v2854_v19 }
  0xa1   :  { %944 = vmatpush.msra.mxu2 %v2886_v49  ;;  %925 = vmatpush.msra.mxu1 %v2890_v50 }
  0xa2   :  { %970 = vmatpush.msrb.mxu3 %v2858_v24 }
  0xa3   :  { %945 = vmatpush.msra.mxu2 %v2896_v52  ;;  %926 = vmatpush.msra.mxu1 %v2899_v20  ;;  %v200_v20 = vperm.slane %v196_v44, 2 }
  0xa4   :  { %971 = vmatpush.msrb.mxu3 %v2861_v27 }
  0xa5   :  { %946 = vmatpush.msra.mxu2 %v2905_v55  ;;  %927 = vmatpush.msra.mxu1 %v2908_v57 }
  0xa6   :  { %972 = vmatpush.msrb.mxu3 %v2872_v36 }
  0xa7   :  { %947 = vmatpush.msra.mxu2 %v2916_v58  ;;  %928 = vmatpush.msra.mxu1 %v2918_v60 }
  0xa8   :  { %973 = vmatpush.msrb.mxu3 %v2876_v40 }
  0xa9   :  { %948 = vmatpush.msra.mxu2 %v2924_v63  ;;  %929 = vmatpush.msra.mxu1 %v2927_v23 }
  0xaa   :  { %974 = vmatpush.msrb.mxu3 %v2879_v43 }
  0xab   :  { %949 = vmatpush.msra.mxu2 %v2934_v1  ;;  %930 = vmatpush.msra.mxu1 %v2937_v26 }
  0xac   :  { %975 = vmatpush.msrb.mxu3 %v2892_v17 }
  0xad   :  { %950 = vmatpush.msra.mxu2 %v2944_v5  ;;  %931 = vmatpush.msra.mxu1 %v2946_v4 }
  0xae   :  { %976 = vmatpush.msrb.mxu3 %v2902_v54 }
  0xaf   :  { %951 = vmatpush.msra.mxu2 %v2952_v61  ;;  %932 = vmatpush.msra.mxu1 %v2954_v9 }
  0xb0   :  { %977 = vmatpush.msrb.mxu3 %v2911_v47 }
  0xb1   :  { %952 = vmatpush.msra.mxu2 %v2959_v12  ;;  %933 = vmatpush.msra.mxu1 %v2963_v29 }
  0xb2   :  { %978 = vmatpush.msrb.mxu3 %v2930_v0 }
  0xb3   :  { %953 = vmatpush.msra.mxu2 %v2968_v16  ;;  %934 = vmatpush.msra.mxu1 %v2971_v18 }
  0xb4   :  { %979 = vmatpush.msrb.mxu3 %v2940_v3 }
  0xb5   :  { %954 = vmatpush.msra.mxu2 %v2975_v32  ;;  %935 = vmatpush.msra.mxu1 %v2978_v6 }
  0xb7   :  { %955 = vmatpush.msra.mxu2 %v2983_v13  ;;  %936 = vmatpush.msra.mxu1 %v2986_v21 }
  0xb9   :  { %956 = vmatpush.msra.mxu2 %v2998_v35  ;;  %937 = vmatpush.msra.mxu1 %v2993_v22 }
  0xbb   :  { %957 = vmatpush.msra.mxu2 %v3000_v8  ;;  %v223_v41 = vpop.f32.mrf.mxu1  ;;  %938 = vmatpush.msra.mxu1 %v3003_v38 }
  0xbc   :  { %v224_v6 = vadd.f32 %v223_v41, %v198_v48 }
  0xbd   :  { %958 = vmatpush.msra.mxu2 %v3007_v25  ;;  %939 = vmatpush.msra.mxu1 %v3011_v28 }
  0xbe   :  { %v489_v21 = vpop.f32.mrf.mxu0 }
  0xbf   :  { %959 = vmatpush.msra.mxu2 %v3015_v30  ;;  %v552_v22 = vadd.f32 %v489_v21, %v224_v6 }
  0xc1   :  { %v235_v51 = vpop.f32.mrf.mxu2  ;;  %v2264_v25 = vmul.f32 -1.442695, %v552_v22 }
  0xc2   :  { %v3127_v53 = vadd.f32 %v235_v51, %v198_v48  ;;  %v346_v56 = vpop.f32.mrf.mxu3 }
  0xc3   :  { %v226_v59 = vpop.f32.mrf.mxu1  ;;  %2318 = vpow2.f32 %v2264_v25  ;;  %v347_v44 = vadd.f32 %v346_v56, %v201_v2 }
  0xc4   :  { %3960 = vst [vmem:[#allocation25_spill] sm:$0xff] %v3127_v53  ;;  %v3129_v62 = vadd.f32 %v226_v59, %v198_v48 }
  0xca   :  { %v238_v7 = vpop.f32.mrf.mxu2 }
  0xcb   :  { %v3131_v10 = vadd.f32 %v238_v7, %v198_v48  ;;  %v349_v15 = vpop.f32.mrf.mxu3  ;;  %v229_v19 = vpop.f32.mrf.mxu1 }
  0xcc   :  { %v3133_v24 = vadd.f32 %v349_v15, %v201_v2  ;;  %v3135_v27 = vadd.f32 %v229_v19, %v198_v48 }
  0xcd   :  { %3961 = vst [vmem:[#allocation26_spill] sm:$0xff] %v3131_v10 }
  0xd2   :  { %v241_v31 = vpop.f32.mrf.mxu2 }
  0xd3   :  { %v3137_v33 = vadd.f32 %v241_v31, %v198_v48  ;;  %v352_v34 = vpop.f32.mrf.mxu3  ;;  %v232_v11 = vpop.f32.mrf.mxu1 }
  0xd4   :  { %v3139_v36 = vadd.f32 %v352_v34, %v201_v2  ;;  %v3141_v37 = vadd.f32 %v232_v11, %v198_v48 }
  0xd5   :  { %3962 = vst [vmem:[#allocation27_spill] sm:$0xff] %v3137_v33  ;;  %v3424_v33 = vld [vmem:[#allocation12 + $0x8] sm:$0xff] }
  0xd6   :  { %3963 = vst [vmem:[#allocation28_spill] sm:$0xff] %v3141_v37 }
  0xda   :  { %v244_v39 = vpop.f32.mrf.mxu2 }
  0xdb   :  { %v3143_v40 = vadd.f32 %v244_v39, %v198_v48  ;;  %v355_v14 = vpop.f32.mrf.mxu3  ;;  %v264_v42 = vpop.f32.mrf.mxu1 }
  0xdc   :  { %v3145_v43 = vadd.f32 %v355_v14, %v201_v2  ;;  %v2319_v48 = vpop.eup %2318  ;;  %v265_v34 = vadd.f32 %v264_v42, %v199_v45 }
  0xdd   :  { %3964 = vst [vmem:[#allocation29_spill] sm:$0xff] %v3143_v40  ;;  %v559_v31 = vadd.f32 1.0, %v2319_v48  ;;  %v3407_v40 = vld [vmem:[#allocation12 + $0x50] sm:$0xff] }
  0xde   :  { %3965 = vst [vmem:[#allocation30_spill] sm:$0xff] %v3145_v43 }
  0xdf   :  { %vm565_vm1 = vweird.f32 %v559_v31  ;;  %v569_v25 = vand.u32 2147483647, %v559_v31 }
  0xe1   :  { %vm570_vm6 = vcmp.eq.f32.partialorder %v569_v25, 8.507059e+37 }
  0xe2   :  { %v3147_v46 = vpop.f32.mrf.mxu2 }
  0xe3   :  { %v358_v49 = vpop.f32.mrf.mxu3  ;;  %v267_v50 = vpop.f32.mrf.mxu1  ;;  %v306_v42 = vadd.f32 %v3147_v46, %v200_v20 }
  0xe4   :  { %v3149_v17 = vadd.f32 %v358_v49, %v201_v2  ;;  %v3151_v52 = vadd.f32 %v267_v50, %v199_v45 }
  0xe6   :  { %3966 = vst [vmem:[#allocation31_spill] sm:$0xff] %v3149_v17 }
  0xea   :  { %v308_v54 = vpop.f32.mrf.mxu2 }
  0xeb   :  { %v3153_v55 = vadd.f32 %v308_v54, %v200_v20  ;;  %v361_v57 = vpop.f32.mrf.mxu3  ;;  %v270_v47 = vpop.f32.mrf.mxu1 }
  0xec   :  { %v3155_v58 = vadd.f32 %v361_v57, %v201_v2  ;;  %v3157_v60 = vadd.f32 %v270_v47, %v199_v45 }
  0xee   :  { %3967 = vst [vmem:[#allocation32_spill] sm:$0xff] %v3155_v58 }
  0xf2   :  { %v311_v63 = vpop.f32.mrf.mxu2 }
  0xf3   :  { %v3159_v23 = vadd.f32 %v311_v63, %v200_v20  ;;  %v364_v0 = vpop.f32.mrf.mxu3  ;;  %v273_v1 = vpop.f32.mrf.mxu1 }
  0xf4   :  { %v3161_v26 = vadd.f32 %v364_v0, %v201_v2  ;;  %v3163_v3 = vadd.f32 %v273_v1, %v199_v45 }
  0xf6   :  { %3968 = vst [vmem:[#allocation33_spill] sm:$0xff] %v3161_v26  ;;  %v3421_v26 = vld [vmem:[#allocation12 + $0x38] sm:$0xff] }
  0xf7   :  { %3969 = vst [vmem:[#allocation34_spill] sm:$0xff] %v3163_v3 }
  0xfa   :  { %v314_v5 = vpop.f32.mrf.mxu2 }
  0xfb   :  { %v3165_v4 = vadd.f32 %v314_v5, %v200_v20  ;;  %v367_v61 = vpop.f32.mrf.mxu3  ;;  %v276_v9 = vpop.f32.mrf.mxu1 }
  0xfc   :  { %v3167_v12 = vadd.f32 %v367_v61, %v201_v2  ;;  %v3169_v29 = vadd.f32 %v276_v9, %v199_v45 }
  0xfd   :  { %3970 = vst [vmem:[#allocation35_spill] sm:$0xff] %v3165_v4 }
  0xfe   :  { %3971 = vst [vmem:[#allocation36_spill] sm:$0xff] %v3167_v12 }
  0xff   :  { %3972 = vst [vmem:[#allocation37_spill] sm:$0xff] %v3169_v29 }
 0x102   :  { %v317_v16 = vpop.f32.mrf.mxu2 }
 0x103   :  { %v3171_v18 = vadd.f32 %v317_v16, %v200_v20  ;;  %v279_v32 = vpop.f32.mrf.mxu1  ;;  %v549_v30 = vpop.f32.mrf.mxu3 }
 0x104   :  { %v3173_v13 = vadd.f32 %v279_v32, %v199_v45  ;;  %v555_v59 = vadd.f32 %v549_v30, %v347_v44 }
 0x105   :  { %3973 = vst [vmem:[#allocation38_spill] sm:$0xff] %v3171_v18 }
 0x106   :  { %3974 = vst [vmem:[#allocation39_spill] sm:$0xff] %v3173_v13  ;;  %v2266_v19 = vmul.f32 -1.442695, %v555_v59 }
 0x108   :  { %2320 = vpow2.f32 %v2266_v19 }
 0x109   :  { %2322 = vrcp.f32 %v559_v31 }
 0x10a   :  { %v320_v35 = vpop.f32.mrf.mxu2 }
 0x10b   :  { %v3175_v8 = vadd.f32 %v320_v35, %v200_v20  ;;  %v282_v38 = vpop.f32.mrf.mxu1  ;;  %v571_v35 = vand.u32 2147483648, %v559_v31 }
 0x10c   :  { %v3177_v28 = vadd.f32 %v282_v38, %v199_v45 }
 0x10d   :  { %3975 = vst [vmem:[#allocation40_spill] sm:$0xff] %v3175_v8  ;;  %v572_v48 = vor.u32 1.1754944e-38, %v571_v35  ;;  %v3426_v8 = vld [vmem:[#allocation12 + $0x10] sm:$0xff] }
 0x10e   :  { %3976 = vst [vmem:[#allocation41_spill] sm:$0xff] %v3177_v28  ;;  %v2321_v56 = vpop.eup %2320 }
 0x10f   :  { %v2323_v2 = vpop.eup %2322  ;;  %v598_v54 = vadd.f32 1.0, %v2321_v56 }
 0x110   :  { %v561_v47 = vmul.f32 %v2323_v2, %v559_v31  ;;  %vm566_vm0 = vweird.f32 %v2323_v2 }
 0x111   :  { %vm567_vm3 = vmor %vm565_vm1, %vm566_vm0  ;;  %vm604_vm9 = vweird.f32 %v598_v54 }
 0x112   :  { %v323_v51 = vpop.f32.mrf.mxu2  ;;  %v562_v0 = vsub.f32 1.0, %v561_v47 }
 0x113   :  { %v3179_v7 = vadd.f32 %v323_v51, %v200_v20  ;;  %v285_v15 = vpop.f32.mrf.mxu1 }
 0x114   :  { %v3181_v41 = vadd.f32 %v285_v15, %v199_v45  ;;  %v563_v61 = vmul.f32 %v2323_v2, %v562_v0  ;;  %v403_v15 = vld [vmem:[#allocation9] sm:$0xff] }
 0x115   :  { %3977 = vst [vmem:[#allocation42_spill] sm:$0xff] %v3179_v7  ;;  %v3415_v7 = vld [vmem:[#allocation12 + $0x28] sm:$0xff] }
 0x116   :  { %3978 = vst [vmem:[#allocation43_spill] sm:$0xff] %v3181_v41  ;;  %v564_v21 = vadd.f32 %v2323_v2, %v563_v61  ;;  %v3204_v61 = vld [vmem:[#allocation12 + $0x180] sm:$0xff]  ;;  %v3405_v41 = vld [vmem:[#allocation12 + $0x48] sm:$0xff] }
 0x118   :  { %v568_v46 = vsel %vm567_vm3, %v2323_v2, %v564_v21  ;;  %v608_v2 = vand.u32 2147483647, %v598_v54  ;;  %v3219_v21 = vld [vmem:[#allocation12 + $0xe0] sm:$0xff] }
 0x11a   :  { %vm609_vm11 = vcmp.eq.f32.partialorder %v608_v2, 8.507059e+37 }
 0x11b   :  { %v326_v11 = vpop.f32.mrf.mxu2  ;;  %v509_v14 = vpop.f32.mrf.mxu1 }
 0x11c   :  { %v3183_v39 = vadd.f32 %v326_v11, %v200_v20  ;;  %v553_v49 = vadd.f32 %v509_v14, %v265_v34  ;;  %v573_v11 = vsel %vm570_vm6, %v572_v48, %v568_v46  ;;  %v3239_v48 = vld [vmem:[#allocation12 + $0x20] sm:$0xff] }
 0x11e   :  { %3979 = vst [vmem:[#allocation44_spill] sm:$0xff] %v3183_v39  ;;  %v2265_v50 = vmul.f32 -1.442695, %v553_v49 }
 0x120   :  { %2324 = vpow2.f32 %v2265_v50 }
 0x121   :  { %2326 = vrcp.f32 %v598_v54 }
 0x123   :  { %v529_v1 = vpop.f32.mrf.mxu2 }
 0x124   :  { %v554_v45 = vadd.f32 %v529_v1, %v306_v42 }
 0x126   :  { %v2325_v57 = vpop.eup %2324 }
 0x127   :  { %v578_v63 = vadd.f32 1.0, %v2325_v57  ;;  %v2327_v5 = vpop.eup %2326  ;;  %v610_v57 = vand.u32 2147483648, %v598_v54 }
 0x128   :  { %v600_v32 = vmul.f32 %v2327_v5, %v598_v54  ;;  %vm605_vm8 = vweird.f32 %v2327_v5  ;;  %v3198_v54 = vld [vmem:[#allocation12 + $0x1c0] sm:$0xff] }
 0x129   :  { %2328 = vrcp.f32 %v578_v63  ;;  %v590_v22 = vand.u32 2147483648, %v578_v63  ;;  %v588_v30 = vand.u32 2147483647, %v578_v63  ;;  %vm584_vm4 = vweird.f32 %v578_v63  ;;  %vm606_vm10 = vmor %vm604_vm9, %vm605_vm8 }
 0x12a   :  { %2330 = vtanh.f32 %v554_v45  ;;  %v601_v44 = vsub.f32 1.0, %v600_v32  ;;  %v3195_v45 = vld [vmem:[#allocation12 + $0x1e0] sm:$0xff] }
 0x12b   :  { %v591_v59 = vor.u32 1.1754944e-38, %v590_v22  ;;  %vm589_vm7 = vcmp.eq.f32.partialorder %v588_v30, 8.507059e+37  ;;  %904 = vmatpush.msra.mxu0 %v3195_v45  ;;  %v3213_v32 = vld [vmem:[#allocation12 + $0x120] sm:$0xff] }
 0x12c   :  { %v602_v34 = vmul.f32 %v2327_v5, %v601_v44  ;;  %v3227_v44 = vld [vmem:[#allocation12 + $0xa0] sm:$0xff] }
 0x12d   :  { %905 = vmatpush.msra.mxu0 %v3198_v54 }
 0x12e   :  { %v603_v56 = vadd.f32 %v2327_v5, %v602_v34  ;;  %v3242_v34 = vld [vmem:[#allocation12] sm:$0xff] }
 0x12f   :  { %v2329_v9 = vpop.eup %2328 }
 0x130   :  { %v580_v16 = vmul.f32 %v2329_v9, %v578_v63  ;;  %vm585_vm2 = vweird.f32 %v2329_v9  ;;  %v2331_v51 = vpop.eup %2330  ;;  %v607_v47 = vsel %vm606_vm10, %v2327_v5, %v603_v56  ;;  %v611_v63 = vor.u32 1.1754944e-38, %v610_v57  ;;  %v3201_v5 = vld [vmem:[#allocation12 + $0x1a0] sm:$0xff] }
 0x131   :  { %vm586_vm5 = vmor %vm584_vm4, %vm585_vm2  ;;  %v615_v50 = vmul.f32 %v2331_v51, %v573_v11  ;;  %906 = vmatpush.msra.mxu0 %v3201_v5  ;;  %v3230_v51 = vld [vmem:[#allocation12 + $0x80] sm:$0xff] }
 0x132   :  { %v581_v6 = vsub.f32 1.0, %v580_v16  ;;  %v612_v1 = vsel %vm609_vm11, %v611_v63, %v607_v47  ;;  %v3210_v16 = vld [vmem:[#allocation12 + $0x140] sm:$0xff] }
 0x133   :  { %907 = vmatpush.msra.mxu0 %v3204_v61 }
 0x134   :  { %v582_v38 = vmul.f32 %v2329_v9, %v581_v6  ;;  %v3216_v6 = vld [vmem:[#allocation12 + $0x100] sm:$0xff] }
 0x136   :  { %v583_v20 = vadd.f32 %v2329_v9, %v582_v38  ;;  %v3222_v38 = vld [vmem:[#allocation12 + $0xc0] sm:$0xff] }
 0x138   :  { %v587_v19 = vsel %vm586_vm5, %v2329_v9, %v583_v20  ;;  %v3207_v9 = vld [vmem:[#allocation12 + $0x160] sm:$0xff] }
 0x139   :  { %v592_v14 = vsel %vm589_vm7, %v591_v59, %v587_v19  ;;  %908 = vmatpush.msra.mxu0 %v3207_v9  ;;  %v3232_v59 = vld [vmem:[#allocation12 + $0x60] sm:$0xff] }
 0x13a   :  { %v614_v49 = vmul.f32 %v592_v14, %v403_v15  ;;  %v3235_v15 = vld [vmem:[#allocation12 + $0x40] sm:$0xff] }
 0x13b   :  { %909 = vmatpush.msra.mxu0 %v3210_v16 }
 0x13c   :  { %v3186_v31 = vadd.f32 %v615_v50, %v614_v49 }
 0x13d   :  { %910 = vmatpush.msra.mxu0 %v3213_v32 }
 0x13e   :  { %2332 = vtanh.f32 %v3186_v31 }
 0x13f   :  { %911 = vmatpush.msra.mxu0 %v3216_v6 }
 0x141   :  { %912 = vmatpush.msra.mxu0 %v3219_v21 }
 0x143   :  { %913 = vmatpush.msra.mxu0 %v3222_v38 }
 0x144   :  { %v2333_v0 = vpop.eup %2332 }
 0x145   :  { %v3189_v42 = vmul.f32 %v2333_v0, %v612_v1  ;;  %914 = vmatpush.msra.mxu0 %v3227_v44 }
 0x147   :  { %3980 = vst [vmem:[#allocation45_spill] sm:$0xff] %v3189_v42  ;;  %704 = vmatmul.f32.vlgmr.msrb.gmra.mxu0 %v3189_v42  ;;  %724 = vmatmul.f32.vlgmr.msrb.gmra.mxu1 %v3189_v42 }
 0x148   :  { %744 = vmatmul.f32.vlgmr.msrb.gmra.mxu2 %v3189_v42  ;;  %764 = vmatmul.f32.vlgmr.msra.gmra.mxu3 %v3189_v42 }
 0x149   :  { %915 = vmatpush.msra.mxu0 %v3230_v51 }
 0x14b   :  { %916 = vmatpush.msra.mxu0 %v3232_v59 }
 0x14d   :  { %917 = vmatpush.msra.mxu0 %v3235_v15 }
 0x14f   :  { %918 = vmatpush.msra.mxu0 %v3239_v48 }
 0x151   :  { %919 = vmatpush.msra.mxu0 %v3242_v34 }
 0x153   :  { %1120 = vmatpush.msrb.mxu0 %v3195_v45 }
 0x155   :  { %1121 = vmatpush.msrb.mxu0 %v3198_v54 }
 0x157   :  { %1122 = vmatpush.msrb.mxu0 %v3201_v5 }
 0x159   :  { %1123 = vmatpush.msrb.mxu0 %v3204_v61 }
 0x15b   :  { %1124 = vmatpush.msrb.mxu0 %v3207_v9 }
 0x15d   :  { %1125 = vmatpush.msrb.mxu0 %v3210_v16 }
 0x15f   :  { %1126 = vmatpush.msrb.mxu0 %v3213_v32 }
 0x161   :  { %1127 = vmatpush.msrb.mxu0 %v3216_v6 }
 0x163   :  { %1128 = vmatpush.msrb.mxu0 %v3219_v21 }
 0x165   :  { %1129 = vmatpush.msrb.mxu0 %v3222_v38 }
 0x167   :  { %1130 = vmatpush.msrb.mxu0 %v3227_v44 }
 0x169   :  { %1131 = vmatpush.msrb.mxu0 %v3230_v51 }
 0x16b   :  { %1132 = vmatpush.msrb.mxu0 %v3232_v59 }
 0x16d   :  { %1133 = vmatpush.msrb.mxu0 %v3235_v15 }
 0x16f   :  { %1134 = vmatpush.msrb.mxu0 %v3239_v48 }
 0x171   :  { %1135 = vmatpush.msrb.mxu0 %v3242_v34 }
 0x1c4   :  { %v705_v22 = vpop.f32.mrf.mxu0  ;;  %v725_v35 = vpop.f32.mrf.mxu1 }
 0x1c5   :  { %v768_v25 = vadd.f32 %v705_v22, %v3129_v62  ;;  %v769_v30 = vadd.f32 %v725_v35, %v3151_v52 }
 0x1c7   :  { %v2267_v46 = vmul.f32 -1.442695, %v768_v25  ;;  %v2268_v20 = vmul.f32 -1.442695, %v769_v30 }
 0x1c9   :  { %2334 = vpow2.f32 %v2267_v46 }
 0x1ca   :  { %2336 = vpow2.f32 %v2268_v20 }
 0x1cb   :  { %v765_v62 = vpop.f32.mrf.mxu3 }
 0x1cc   :  { %v771_v52 = vadd.f32 %v765_v62, %v3133_v24  ;;  %v745_v24 = vpop.f32.mrf.mxu2 }
 0x1cd   :  { %v770_v47 = vadd.f32 %v745_v24, %v3153_v55 }
 0x1ce   :  { %v2269_v19 = vmul.f32 -1.442695, %v771_v52 }
 0x1cf   :  { %v2335_v11 = vpop.eup %2334 }
 0x1d0   :  { %v2337_v14 = vpop.eup %2336  ;;  %v775_v49 = vadd.f32 1.0, %v2335_v11  ;;  %2338 = vpow2.f32 %v2269_v19 }
 0x1d1   :  { %v794_v50 = vadd.f32 1.0, %v2337_v14 }
 0x1d2   :  { %2340 = vrcp.f32 %v775_v49  ;;  %v787_v25 = vand.u32 2147483648, %v775_v49  ;;  %v785_v20 = vand.u32 2147483647, %v775_v49  ;;  %vm781_vm14 = vweird.f32 %v775_v49 }
 0x1d3   :  { %2342 = vrcp.f32 %v794_v50  ;;  %v806_v30 = vand.u32 2147483648, %v794_v50  ;;  %v804_v55 = vand.u32 2147483647, %v794_v50  ;;  %vm800_vm15 = vweird.f32 %v794_v50 }
 0x1d4   :  { %v788_v11 = vor.u32 1.1754944e-38, %v787_v25  ;;  %vm786_vm2 = vcmp.eq.f32.partialorder %v785_v20, 8.507059e+37 }
 0x1d5   :  { %vm805_vm3 = vcmp.eq.f32.partialorder %v804_v55, 8.507059e+37 }
 0x1d6   :  { %v2339_v56 = vpop.eup %2338 }
 0x1d7   :  { %v814_v57 = vadd.f32 1.0, %v2339_v56  ;;  %v807_v56 = vor.u32 1.1754944e-38, %v806_v30 }
 0x1d8   :  { %v2341_v2 = vpop.eup %2340 }
 0x1d9   :  { %v2343_v63 = vpop.eup %2342  ;;  %v777_v0 = vmul.f32 %v2341_v2, %v775_v49  ;;  %2344 = vrcp.f32 %v814_v57  ;;  %vm782_vm12 = vweird.f32 %v2341_v2  ;;  %vm820_vm5 = vweird.f32 %v814_v57 }
 0x1da   :  { %v796_v1 = vmul.f32 %v2343_v63, %v794_v50  ;;  %2346 = vtanh.f32 %v770_v47  ;;  %vm801_vm13 = vweird.f32 %v2343_v63  ;;  %vm783_vm0 = vmor %vm781_vm14, %vm782_vm12  ;;  %v824_v30 = vand.u32 2147483647, %v814_v57 }
 0x1db   :  { %v778_v22 = vsub.f32 1.0, %v777_v0  ;;  %vm802_vm1 = vmor %vm800_vm15, %vm801_vm13 }
 0x1dc   :  { %v797_v35 = vsub.f32 1.0, %v796_v1  ;;  %vm825_vm7 = vcmp.eq.f32.partialorder %v824_v30, 8.507059e+37 }
 0x1dd   :  { %v779_v46 = vmul.f32 %v2341_v2, %v778_v22 }
 0x1de   :  { %v798_v62 = vmul.f32 %v2343_v63, %v797_v35 }
 0x1df   :  { %v2345_v52 = vpop.eup %2344  ;;  %v780_v19 = vadd.f32 %v2341_v2, %v779_v46 }
 0x1e0   :  { %v799_v14 = vadd.f32 %v2343_v63, %v798_v62  ;;  %v816_v24 = vmul.f32 %v2345_v52, %v814_v57  ;;  %v2347_v0 = vpop.eup %2346  ;;  %vm821_vm4 = vweird.f32 %v2345_v52 }
 0x1e1   :  { %v784_v47 = vsel %vm783_vm0, %v2341_v2, %v780_v19  ;;  %vm822_vm6 = vmor %vm820_vm5, %vm821_vm4 }
 0x1e2   :  { %v789_v1 = vsel %vm786_vm2, %v788_v11, %v784_v47  ;;  %v803_v22 = vsel %vm802_vm1, %v2343_v63, %v799_v14  ;;  %v817_v35 = vsub.f32 1.0, %v816_v24  ;;  %v826_v63 = vand.u32 2147483648, %v814_v57  ;;  %v3336_v57 = vld [vmem:[#allocation12 + $0x150] sm:$0xff]  ;;  %v3343_v14 = vld [vmem:[#allocation12 + $0x128] sm:$0xff] }
 0x1e3   :  { %v808_v46 = vsel %vm805_vm3, %v807_v56, %v803_v22  ;;  %v831_v49 = vmul.f32 %v2347_v0, %v789_v1  ;;  %3982 = vst [vmem:[#allocation47_spill] sm:$0xff] %v3336_v57  ;;  %v3345_v24 = vld [vmem:[#allocation12 + $0x130] sm:$0xff]  ;;  %v3347_v56 = vld [vmem:[#allocation12 + $0x138] sm:$0xff]  ;;  %v3352_v47 = vld [vmem:[#allocation12 + $0x108] sm:$0xff] }
 0x1e4   :  { %v830_v50 = vmul.f32 %v808_v46, %v3186_v31  ;;  %v818_v25 = vmul.f32 %v2345_v52, %v817_v35  ;;  %v827_v20 = vor.u32 1.1754944e-38, %v826_v63  ;;  %3984 = vst [vmem:[#allocation49_spill] sm:$0xff] %v3343_v14  ;;  %v3354_v0 = vld [vmem:[#allocation12 + $0x110] sm:$0xff]  ;;  %v3356_v1 = vld [vmem:[#allocation12 + $0x118] sm:$0xff]  ;;  %v3361_v22 = vld [vmem:[#allocation12 + $0xe8] sm:$0xff] }
 0x1e5   :  { %3985 = vst [vmem:[#allocation50_spill] sm:$0xff] %v3347_v56  ;;  %v3363_v35 = vld [vmem:[#allocation12 + $0xf0] sm:$0xff]  ;;  %v3365_v46 = vld [vmem:[#allocation12 + $0xf8] sm:$0xff] }
 0x1e6   :  { %v3258_v62 = vadd.f32 %v831_v49, %v830_v50  ;;  %v819_v2 = vadd.f32 %v2345_v52, %v818_v25  ;;  %v3370_v25 = vld [vmem:[#allocation12 + $0xc8] sm:$0xff]  ;;  %v3374_v63 = vld [vmem:[#allocation12 + $0xd8] sm:$0xff] }
 0x1e8   :  { %2348 = vtanh.f32 %v3258_v62  ;;  %v823_v31 = vsel %vm822_vm6, %v2345_v52, %v819_v2  ;;  %v3338_v52 = vld [vmem:[#allocation12 + $0x158] sm:$0xff]  ;;  %v3372_v2 = vld [vmem:[#allocation12 + $0xd0] sm:$0xff] }
 0x1e9   :  { %v828_v19 = vsel %vm825_vm7, %v827_v20, %v823_v31  ;;  %3983 = vst [vmem:[#allocation48_spill] sm:$0xff] %v3338_v52  ;;  %v3381_v20 = vld [vmem:[#allocation12 + $0xa8] sm:$0xff] }
 0x1ee   :  { %v2349_v55 = vpop.eup %2348 }
 0x1ef   :  { %v3266_v11 = vmul.f32 %v2349_v55, %v828_v19  ;;  %v3383_v55 = vld [vmem:[#allocation12 + $0xb0] sm:$0xff]  ;;  %v3385_v19 = vld [vmem:[#allocation12 + $0xb8] sm:$0xff] }
 0x1f1   :  { %3981 = vst [vmem:[#allocation46_spill] sm:$0xff] %v3266_v11  ;;  %920 = vmatmul.f32.vlgmr.msra.gmra.mxu0 %v3266_v11  ;;  %940 = vmatmul.f32.vlgmr.msra.gmra.mxu1 %v3266_v11 }
 0x1f2   :  { %960 = vmatmul.f32.vlgmr.msra.gmra.mxu2 %v3266_v11  ;;  %980 = vmatmul.f32.vlgmr.msrb.gmra.mxu3 %v3266_v11 }
 0x1f3   :  { %1336 = vmatpush.msra.mxu0 %v3195_v45  ;;  %v3289_v45 = vld [vmem:[#allocation12 + $0x1e8] sm:$0xff] }
 0x1f4   :  { %1140 = vmatpush.msrb.mxu1 %v3289_v45 }
 0x1f5   :  { %1337 = vmatpush.msra.mxu0 %v3198_v54  ;;  %v3291_v54 = vld [vmem:[#allocation12 + $0x1f0] sm:$0xff] }
 0x1f6   :  { %1160 = vmatpush.msrb.mxu2 %v3291_v54 }
 0x1f7   :  { %1338 = vmatpush.msra.mxu0 %v3201_v5  ;;  %v3293_v5 = vld [vmem:[#allocation12 + $0x1f8] sm:$0xff] }
 0x1f8   :  { %1180 = vmatpush.msra.mxu3 %v3293_v5 }
 0x1f9   :  { %1339 = vmatpush.msra.mxu0 %v3204_v61  ;;  %v3298_v61 = vld [vmem:[#allocation12 + $0x1c8] sm:$0xff] }
 0x1fa   :  { %1141 = vmatpush.msrb.mxu1 %v3298_v61 }
 0x1fb   :  { %1340 = vmatpush.msra.mxu0 %v3207_v9  ;;  %v3300_v9 = vld [vmem:[#allocation12 + $0x1d0] sm:$0xff] }
 0x1fc   :  { %1161 = vmatpush.msrb.mxu2 %v3300_v9 }
 0x1fd   :  { %1341 = vmatpush.msra.mxu0 %v3210_v16  ;;  %v3302_v16 = vld [vmem:[#allocation12 + $0x1d8] sm:$0xff] }
 0x1fe   :  { %1181 = vmatpush.msra.mxu3 %v3302_v16 }
 0x1ff   :  { %1342 = vmatpush.msra.mxu0 %v3213_v32  ;;  %v3307_v32 = vld [vmem:[#allocation12 + $0x1a8] sm:$0xff] }
 0x200   :  { %1142 = vmatpush.msrb.mxu1 %v3307_v32 }
 0x201   :  { %1343 = vmatpush.msra.mxu0 %v3216_v6  ;;  %v3309_v6 = vld [vmem:[#allocation12 + $0x1b0] sm:$0xff] }
 0x202   :  { %1162 = vmatpush.msrb.mxu2 %v3309_v6 }
 0x203   :  { %1344 = vmatpush.msra.mxu0 %v3219_v21  ;;  %v3311_v21 = vld [vmem:[#allocation12 + $0x1b8] sm:$0xff] }
 0x204   :  { %1182 = vmatpush.msra.mxu3 %v3311_v21 }
 0x205   :  { %1345 = vmatpush.msra.mxu0 %v3222_v38  ;;  %v3316_v38 = vld [vmem:[#allocation12 + $0x188] sm:$0xff] }
 0x206   :  { %1143 = vmatpush.msrb.mxu1 %v3316_v38 }
 0x207   :  { %1346 = vmatpush.msra.mxu0 %v3227_v44  ;;  %v3318_v44 = vld [vmem:[#allocation12 + $0x190] sm:$0xff] }
 0x208   :  { %1163 = vmatpush.msrb.mxu2 %v3318_v44 }
 0x209   :  { %1347 = vmatpush.msra.mxu0 %v3230_v51  ;;  %v3320_v51 = vld [vmem:[#allocation12 + $0x198] sm:$0xff] }
 0x20a   :  { %1183 = vmatpush.msra.mxu3 %v3320_v51 }
 0x20b   :  { %1348 = vmatpush.msra.mxu0 %v3232_v59  ;;  %v3325_v59 = vld [vmem:[#allocation12 + $0x168] sm:$0xff] }
 0x20c   :  { %1144 = vmatpush.msrb.mxu1 %v3325_v59 }
 0x20d   :  { %1349 = vmatpush.msra.mxu0 %v3235_v15  ;;  %v3327_v15 = vld [vmem:[#allocation12 + $0x170] sm:$0xff] }
 0x20e   :  { %1164 = vmatpush.msrb.mxu2 %v3327_v15 }
 0x20f   :  { %1350 = vmatpush.msra.mxu0 %v3239_v48  ;;  %v3329_v48 = vld [vmem:[#allocation12 + $0x178] sm:$0xff] }
 0x210   :  { %1184 = vmatpush.msra.mxu3 %v3329_v48  ;;  %1165 = vmatpush.msrb.mxu2 %v3336_v57 }
 0x211   :  { %1351 = vmatpush.msra.mxu0 %v3242_v34  ;;  %v3334_v34 = vld [vmem:[#allocation12 + $0x148] sm:$0xff] }
 0x212   :  { %1145 = vmatpush.msrb.mxu1 %v3334_v34  ;;  %1185 = vmatpush.msra.mxu3 %v3338_v52 }
 0x213   :  { %1166 = vmatpush.msrb.mxu2 %v3345_v24 }
 0x214   :  { %1146 = vmatpush.msrb.mxu1 %v3343_v14  ;;  %1186 = vmatpush.msra.mxu3 %v3347_v56 }
 0x215   :  { %1167 = vmatpush.msrb.mxu2 %v3354_v0 }
 0x216   :  { %1147 = vmatpush.msrb.mxu1 %v3352_v47  ;;  %1187 = vmatpush.msra.mxu3 %v3356_v1 }
 0x217   :  { %1168 = vmatpush.msrb.mxu2 %v3363_v35 }
 0x218   :  { %1148 = vmatpush.msrb.mxu1 %v3361_v22  ;;  %1188 = vmatpush.msra.mxu3 %v3365_v46 }
 0x219   :  { %1169 = vmatpush.msrb.mxu2 %v3372_v2 }
 0x21a   :  { %1149 = vmatpush.msrb.mxu1 %v3370_v25  ;;  %1189 = vmatpush.msra.mxu3 %v3374_v63 }
 0x21b   :  { %1170 = vmatpush.msrb.mxu2 %v3383_v55 }
 0x21c   :  { %1150 = vmatpush.msrb.mxu1 %v3381_v20  ;;  %1190 = vmatpush.msra.mxu3 %v3385_v19 }
 0x26e   :  { %v921_v49 = vpop.f32.mrf.mxu0  ;;  %v941_v50 = vpop.f32.mrf.mxu1 }
 0x26f   :  { %v984_v30 = vadd.f32 %v921_v49, %v3135_v27  ;;  %v985_v31 = vadd.f32 %v941_v50, %v3157_v60  ;;  %v3390_v27 = vld [vmem:[#allocation12 + $0x88] sm:$0xff]  ;;  %v3392_v60 = vld [vmem:[#allocation12 + $0x90] sm:$0xff]  ;;  %v3394_v49 = vld [vmem:[#allocation12 + $0x98] sm:$0xff] }
 0x270   :  { %1151 = vmatpush.msrb.mxu1 %v3390_v27  ;;  %1171 = vmatpush.msrb.mxu2 %v3392_v60  ;;  %v3398_v50 = vld [vmem:[#allocation12 + $0x68] sm:$0xff] }
 0x271   :  { %v2270_v39 = vmul.f32 -1.442695, %v984_v30  ;;  %v2271_v12 = vmul.f32 -1.442695, %v985_v31  ;;  %v3400_v30 = vld [vmem:[#allocation12 + $0x70] sm:$0xff]  ;;  %v3402_v31 = vld [vmem:[#allocation12 + $0x78] sm:$0xff]  ;;  %1191 = vmatpush.msra.mxu3 %v3394_v49 }
 0x272   :  { %1152 = vmatpush.msrb.mxu1 %v3398_v50  ;;  %1172 = vmatpush.msrb.mxu2 %v3400_v30 }
 0x273   :  { %2350 = vpow2.f32 %v2270_v39  ;;  %v3411_v39 = vld [vmem:[#allocation12 + $0x58] sm:$0xff]  ;;  %1192 = vmatpush.msra.mxu3 %v3402_v31 }
 0x274   :  { %2352 = vpow2.f32 %v2271_v12  ;;  %v3417_v12 = vld [vmem:[#allocation12 + $0x30] sm:$0xff]  ;;  %1153 = vmatpush.msrb.mxu1 %v3405_v41  ;;  %1173 = vmatpush.msrb.mxu2 %v3407_v40 }
 0x275   :  { %v981_v11 = vpop.f32.mrf.mxu3  ;;  %1193 = vmatpush.msra.mxu3 %v3411_v39 }
 0x276   :  { %v987_v42 = vadd.f32 %v981_v11, %v3139_v36  ;;  %1154 = vmatpush.msrb.mxu1 %v3415_v7  ;;  %1174 = vmatpush.msrb.mxu2 %v3417_v12  ;;  %v3430_v11 = vld [vmem:[#allocation12 + $0x18] sm:$0xff] }
 0x277   :  { %1194 = vmatpush.msra.mxu3 %v3421_v26 }
 0x278   :  { %v2272_v28 = vmul.f32 -1.442695, %v987_v42  ;;  %1155 = vmatpush.msrb.mxu1 %v3424_v33  ;;  %1175 = vmatpush.msrb.mxu2 %v3426_v8 }
 0x279   :  { %v2351_v36 = vpop.eup %2350  ;;  %1195 = vmatpush.msra.mxu3 %v3430_v11 }
 0x27a   :  { %v2353_v58 = vpop.eup %2352  ;;  %v3432_v13 = vadd.f32 1.0, %v2351_v36  ;;  %2354 = vpow2.f32 %v2272_v28  ;;  %1356 = vmatpush.msra.mxu1 %v3289_v45  ;;  %1376 = vmatpush.msra.mxu2 %v3291_v54 }
 0x27b   :  { %v3435_v42 = vadd.f32 1.0, %v2353_v58  ;;  %1396 = vmatpush.msrb.mxu3 %v3293_v5  ;;  %v961_v58 = vpop.f32.mrf.mxu2 }
 0x27c   :  { %2356 = vrcp.f32 %v3432_v13  ;;  %1357 = vmatpush.msra.mxu1 %v3298_v61  ;;  %1377 = vmatpush.msra.mxu2 %v3300_v9  ;;  %v986_v18 = vadd.f32 %v961_v58, %v3159_v23  ;;  %v1003_v58 = vand.u32 2147483648, %v3432_v13  ;;  %v1001_v3 = vand.u32 2147483647, %v3432_v13 }
 0x27d   :  { %2358 = vrcp.f32 %v3435_v42  ;;  %1397 = vmatpush.msrb.mxu3 %v3302_v16  ;;  %v1022_v4 = vand.u32 2147483648, %v3435_v42  ;;  %v1020_v37 = vand.u32 2147483647, %v3435_v42  ;;  %vm997_vm10 = vweird.f32 %v3432_v13 }
 0x27e   :  { %1358 = vmatpush.msra.mxu1 %v3307_v32  ;;  %1378 = vmatpush.msra.mxu2 %v3309_v6  ;;  %vm1016_vm11 = vweird.f32 %v3435_v42  ;;  %vm1002_vm14 = vcmp.eq.f32.partialorder %v1001_v3, 8.507059e+37 }
 0x27f   :  { %1398 = vmatpush.msrb.mxu3 %v3311_v21  ;;  %vm1021_vm15 = vcmp.eq.f32.partialorder %v1020_v37, 8.507059e+37 }
 0x280   :  { %v2355_v28 = vpop.eup %2354  ;;  %1359 = vmatpush.msra.mxu1 %v3316_v38  ;;  %1379 = vmatpush.msra.mxu2 %v3318_v44 }
 0x281   :  { %v3449_v36 = vadd.f32 1.0, %v2355_v28  ;;  %1399 = vmatpush.msrb.mxu3 %v3320_v51 }
 0x282   :  { %v2357_v10 = vpop.eup %2356  ;;  %1360 = vmatpush.msra.mxu1 %v3325_v59  ;;  %1380 = vmatpush.msra.mxu2 %v3327_v15 }
 0x283   :  { %v2359_v17 = vpop.eup %2358  ;;  %v993_v29 = vmul.f32 %v2357_v10, %v3432_v13  ;;  %2360 = vrcp.f32 %v3449_v36  ;;  %1400 = vmatpush.msrb.mxu3 %v3329_v48  ;;  %vm998_vm8 = vweird.f32 %v2357_v10  ;;  %vm1036_vm1 = vweird.f32 %v3449_v36 }
 0x284   :  { %v1012_v28 = vmul.f32 %v2359_v17, %v3435_v42  ;;  %2362 = vtanh.f32 %v986_v18  ;;  %1361 = vmatpush.msra.mxu1 %v3334_v34  ;;  %1381 = vmatpush.msra.mxu2 %v3336_v57  ;;  %vm1017_vm9 = vweird.f32 %v2359_v17  ;;  %vm999_vm12 = vmor %vm997_vm10, %vm998_vm8 }
 0x285   :  { %v994_v53 = vsub.f32 1.0, %v993_v29  ;;  %1401 = vmatpush.msrb.mxu3 %v3338_v52  ;;  %vm1018_vm13 = vmor %vm1016_vm11, %vm1017_vm9  ;;  %v1023_v52 = vor.u32 1.1754944e-38, %v1022_v4  ;;  %v1042_v4 = vand.u32 2147483648, %v3449_v36 }
 0x286   :  { %v1013_v23 = vsub.f32 1.0, %v1012_v28  ;;  %1362 = vmatpush.msra.mxu1 %v3343_v14  ;;  %1382 = vmatpush.msra.mxu2 %v3345_v24 }
 0x287   :  { %v995_v43 = vmul.f32 %v2357_v10, %v994_v53  ;;  %1402 = vmatpush.msrb.mxu3 %v3347_v56  ;;  %v1004_v53 = vor.u32 1.1754944e-38, %v1003_v58 }
 0x288   :  { %v1014_v29 = vmul.f32 %v2359_v17, %v1013_v23  ;;  %1363 = vmatpush.msra.mxu1 %v3352_v47  ;;  %1383 = vmatpush.msra.mxu2 %v3354_v0 }
 0x289   :  { %v2361_v28 = vpop.eup %2360  ;;  %v996_v18 = vadd.f32 %v2357_v10, %v995_v43  ;;  %1403 = vmatpush.msrb.mxu3 %v3356_v1 }
 0x28a   :  { %v1015_v57 = vadd.f32 %v2359_v17, %v1014_v29  ;;  %v1032_v23 = vmul.f32 %v2361_v28, %v3449_v36  ;;  %v2363_v43 = vpop.eup %2362  ;;  %1364 = vmatpush.msra.mxu1 %v3361_v22  ;;  %1384 = vmatpush.msra.mxu2 %v3363_v35  ;;  %vm1037_vm0 = vweird.f32 %v2361_v28 }
 0x28b   :  { %v1000_v14 = vsel %vm999_vm12, %v2357_v10, %v996_v18  ;;  %1404 = vmatpush.msrb.mxu3 %v3365_v46  ;;  %vm1038_vm2 = vmor %vm1036_vm1, %vm1037_vm0 }
 0x28c   :  { %v1005_v13 = vsel %vm1002_vm14, %v1004_v53, %v1000_v14  ;;  %v1019_v56 = vsel %vm1018_vm13, %v2359_v17, %v1015_v57  ;;  %v1033_v42 = vsub.f32 1.0, %v1032_v23  ;;  %1365 = vmatpush.msra.mxu1 %v3370_v25  ;;  %1385 = vmatpush.msra.mxu2 %v3372_v2 }
 0x28d   :  { %v1024_v58 = vsel %vm1021_vm15, %v1023_v52, %v1019_v56  ;;  %v1047_v29 = vmul.f32 %v2363_v43, %v1005_v13  ;;  %1405 = vmatpush.msrb.mxu3 %v3374_v63  ;;  %v1043_v52 = vor.u32 1.1754944e-38, %v1042_v4 }
 0x28e   :  { %v1046_v10 = vmul.f32 %v1024_v58, %v3258_v62  ;;  %v1034_v3 = vmul.f32 %v2361_v28, %v1033_v42  ;;  %1366 = vmatpush.msra.mxu1 %v3381_v20  ;;  %1386 = vmatpush.msra.mxu2 %v3383_v55  ;;  %v1040_v62 = vand.u32 2147483647, %v3449_v36 }
 0x28f   :  { %1406 = vmatpush.msrb.mxu3 %v3385_v19 }
 0x290   :  { %v3486_v17 = vadd.f32 %v1047_v29, %v1046_v10  ;;  %v1035_v37 = vadd.f32 %v2361_v28, %v1034_v3  ;;  %1367 = vmatpush.msra.mxu1 %v3390_v27  ;;  %1387 = vmatpush.msra.mxu2 %v3392_v60  ;;  %vm1041_vm3 = vcmp.eq.f32.partialorder %v1040_v62, 8.507059e+37 }
 0x291   :  { %1407 = vmatpush.msrb.mxu3 %v3394_v49 }
 0x292   :  { %2364 = vtanh.f32 %v3486_v17  ;;  %1368 = vmatpush.msra.mxu1 %v3398_v50  ;;  %v1039_v57 = vsel %vm1038_vm2, %v2361_v28, %v1035_v37  ;;  %1388 = vmatpush.msra.mxu2 %v3400_v30 }
 0x293   :  { %1408 = vmatpush.msrb.mxu3 %v3402_v31  ;;  %v1044_v56 = vsel %vm1041_vm3, %v1043_v52, %v1039_v57 }
 0x294   :  { %1369 = vmatpush.msra.mxu1 %v3405_v41  ;;  %1389 = vmatpush.msra.mxu2 %v3407_v40 }
 0x295   :  { %1409 = vmatpush.msrb.mxu3 %v3411_v39 }
 0x296   :  { %1370 = vmatpush.msra.mxu1 %v3415_v7  ;;  %1390 = vmatpush.msra.mxu2 %v3417_v12 }
 0x297   :  { %1410 = vmatpush.msrb.mxu3 %v3421_v26 }
 0x298   :  { %v2365_v14 = vpop.eup %2364  ;;  %1371 = vmatpush.msra.mxu1 %v3424_v33  ;;  %1391 = vmatpush.msra.mxu2 %v3426_v8 }
 0x299   :  { %v3505_v36 = vmul.f32 %v2365_v14, %v1044_v56  ;;  %1411 = vmatpush.msrb.mxu3 %v3430_v11  ;;  %v3581_v56 = vld [vmem:[#allocation12 + $0x1c0] sm:$0xff] }
 0x29b   :  { %1136 = vmatmul.f32.vlgmr.msrb.gmra.mxu0 %v3505_v36  ;;  %1156 = vmatmul.f32.vlgmr.msrb.gmra.mxu1 %v3505_v36 }
 0x29c   :  { %1176 = vmatmul.f32.vlgmr.msrb.gmra.mxu2 %v3505_v36  ;;  %1196 = vmatmul.f32.vlgmr.msra.gmra.mxu3 %v3505_v36 }
 0x29d   :  { %1572 = vmatpush.msrb.mxu1 %v3289_v45  ;;  %1592 = vmatpush.msrb.mxu2 %v3291_v54  ;;  %v3986_v45 = vld [vmem:[#allocation47_spill] sm:$0xff]  ;;  %v3987_v54 = vld [vmem:[#allocation48_spill] sm:$0xff] }
 0x29e   :  { %1612 = vmatpush.msra.mxu3 %v3293_v5  ;;  %v3988_v5 = vld [vmem:[#allocation49_spill] sm:$0xff] }
 0x29f   :  { %1573 = vmatpush.msrb.mxu1 %v3298_v61  ;;  %1593 = vmatpush.msrb.mxu2 %v3300_v9  ;;  %v3989_v61 = vld [vmem:[#allocation50_spill] sm:$0xff] }
 0x2a0   :  { %1613 = vmatpush.msra.mxu3 %v3302_v16 }
 0x2a1   :  { %1574 = vmatpush.msrb.mxu1 %v3307_v32  ;;  %1594 = vmatpush.msrb.mxu2 %v3309_v6  ;;  %v3990_v32 = vld [vmem:[#allocation28_spill] sm:$0xff]  ;;  %v3991_v6 = vld [vmem:[#allocation34_spill] sm:$0xff] }
 0x2a2   :  { %1614 = vmatpush.msra.mxu3 %v3311_v21 }
 0x2a3   :  { %1575 = vmatpush.msrb.mxu1 %v3316_v38  ;;  %1595 = vmatpush.msrb.mxu2 %v3318_v44  ;;  %v3992_v44 = vld [vmem:[#allocation30_spill] sm:$0xff] }
 0x2a4   :  { %1615 = vmatpush.msra.mxu3 %v3320_v51 }
 0x2a5   :  { %1576 = vmatpush.msrb.mxu1 %v3325_v59  ;;  %1596 = vmatpush.msrb.mxu2 %v3327_v15 }
 0x2a6   :  { %1616 = vmatpush.msra.mxu3 %v3329_v48 }
 0x2a7   :  { %1577 = vmatpush.msrb.mxu1 %v3334_v34  ;;  %1597 = vmatpush.msrb.mxu2 %v3986_v45  ;;  %v3584_v45 = vld [vmem:[#allocation12 + $0x1a0] sm:$0xff] }
 0x2a8   :  { %1617 = vmatpush.msra.mxu3 %v3987_v54  ;;  %v3587_v54 = vld [vmem:[#allocation12 + $0x180] sm:$0xff] }
 0x2a9   :  { %1578 = vmatpush.msrb.mxu1 %v3988_v5  ;;  %1598 = vmatpush.msrb.mxu2 %v3345_v24  ;;  %v3590_v5 = vld [vmem:[#allocation12 + $0x160] sm:$0xff] }
 0x2aa   :  { %1618 = vmatpush.msra.mxu3 %v3989_v61  ;;  %v3593_v61 = vld [vmem:[#allocation12 + $0x140] sm:$0xff] }
 0x2ab   :  { %1579 = vmatpush.msrb.mxu1 %v3352_v47  ;;  %1599 = vmatpush.msrb.mxu2 %v3354_v0  ;;  %v3993_v0 = vld [vmem:[#allocation35_spill] sm:$0xff] }
 0x2ac   :  { %1619 = vmatpush.msra.mxu3 %v3356_v1 }
 0x2ad   :  { %1580 = vmatpush.msrb.mxu1 %v3361_v22  ;;  %1600 = vmatpush.msrb.mxu2 %v3363_v35 }
 0x2ae   :  { %1620 = vmatpush.msra.mxu3 %v3365_v46 }
 0x2af   :  { %1581 = vmatpush.msrb.mxu1 %v3370_v25  ;;  %1601 = vmatpush.msrb.mxu2 %v3372_v2 }
 0x2b0   :  { %1621 = vmatpush.msra.mxu3 %v3374_v63 }
 0x2b1   :  { %1582 = vmatpush.msrb.mxu1 %v3381_v20  ;;  %1602 = vmatpush.msrb.mxu2 %v3383_v55 }
 0x2b2   :  { %1622 = vmatpush.msra.mxu3 %v3385_v19 }
 0x2b3   :  { %1583 = vmatpush.msrb.mxu1 %v3390_v27  ;;  %1603 = vmatpush.msrb.mxu2 %v3392_v60 }
 0x2b4   :  { %1623 = vmatpush.msra.mxu3 %v3394_v49 }
 0x2b5   :  { %1584 = vmatpush.msrb.mxu1 %v3398_v50  ;;  %1604 = vmatpush.msrb.mxu2 %v3400_v30 }
 0x2b6   :  { %1624 = vmatpush.msra.mxu3 %v3402_v31 }
 0x2b7   :  { %1585 = vmatpush.msrb.mxu1 %v3405_v41  ;;  %1605 = vmatpush.msrb.mxu2 %v3407_v40 }
 0x2b8   :  { %1625 = vmatpush.msra.mxu3 %v3411_v39 }
 0x2b9   :  { %1586 = vmatpush.msrb.mxu1 %v3415_v7  ;;  %1606 = vmatpush.msrb.mxu2 %v3417_v12 }
 0x2ba   :  { %1626 = vmatpush.msra.mxu3 %v3421_v26 }
 0x2bb   :  { %1587 = vmatpush.msrb.mxu1 %v3424_v33  ;;  %1607 = vmatpush.msrb.mxu2 %v3426_v8 }
 0x2bc   :  { %1627 = vmatpush.msra.mxu3 %v3430_v11 }
 0x318   :  { %v1137_v9 = vpop.f32.mrf.mxu0  ;;  %v1157_v16 = vpop.f32.mrf.mxu1 }
 0x319   :  { %v1200_v41 = vadd.f32 %v1137_v9, %v3990_v32  ;;  %v1201_v40 = vadd.f32 %v1157_v16, %v3991_v6  ;;  %v3596_v9 = vld [vmem:[#allocation12 + $0x120] sm:$0xff] }
 0x31a   :  { %v3599_v16 = vld [vmem:[#allocation12 + $0x100] sm:$0xff] }
 0x31b   :  { %v2273_v21 = vmul.f32 -1.442695, %v1200_v41  ;;  %v2274_v38 = vmul.f32 -1.442695, %v1201_v40  ;;  %v3602_v32 = vld [vmem:[#allocation12 + $0xe0] sm:$0xff] }
 0x31c   :  { %v3605_v40 = vld [vmem:[#allocation12 + $0xc0] sm:$0xff] }
 0x31d   :  { %2366 = vpow2.f32 %v2273_v21  ;;  %v3994_v21 = vld [vmem:[#allocation25_spill] sm:$0xff] }
 0x31e   :  { %2368 = vpow2.f32 %v2274_v38 }
 0x31f   :  { %v1197_v7 = vpop.f32.mrf.mxu3  ;;  %v1177_v48 = vpop.f32.mrf.mxu2 }
 0x320   :  { %v1203_v51 = vadd.f32 %v1197_v7, %v3992_v44  ;;  %v1202_v1 = vadd.f32 %v1177_v48, %v3993_v0  ;;  %v3995_v7 = vld [vmem:[#allocation37_spill] sm:$0xff] }
 0x322   :  { %v2275_v26 = vmul.f32 -1.442695, %v1203_v51  ;;  %v3610_v51 = vld [vmem:[#allocation12 + $0xa0] sm:$0xff] }
 0x323   :  { %v2367_v59 = vpop.eup %2366 }
 0x324   :  { %v2369_v33 = vpop.eup %2368  ;;  %v1207_v15 = vadd.f32 1.0, %v2367_v59  ;;  %2370 = vpow2.f32 %v2275_v26 }
 0x325   :  { %v1226_v8 = vadd.f32 1.0, %v2369_v33  ;;  %v3613_v33 = vld [vmem:[#allocation12 + $0x80] sm:$0xff] }
 0x326   :  { %2372 = vrcp.f32 %v1207_v15  ;;  %v1219_v63 = vand.u32 2147483648, %v1207_v15  ;;  %v1217_v19 = vand.u32 2147483647, %v1207_v15  ;;  %vm1213_vm6 = vweird.f32 %v1207_v15 }
 0x327   :  { %2374 = vrcp.f32 %v1226_v8  ;;  %v1238_v20 = vand.u32 2147483648, %v1226_v8  ;;  %v1236_v60 = vand.u32 2147483647, %v1226_v8  ;;  %vm1232_vm7 = vweird.f32 %v1226_v8 }
 0x328   :  { %v1220_v30 = vor.u32 1.1754944e-38, %v1219_v63  ;;  %vm1218_vm10 = vcmp.eq.f32.partialorder %v1217_v19, 8.507059e+37  ;;  %v3997_v19 = vld [vmem:[#allocation38_spill] sm:$0xff] }
 0x329   :  { %v1239_v12 = vor.u32 1.1754944e-38, %v1238_v20  ;;  %vm1237_vm11 = vcmp.eq.f32.partialorder %v1236_v60, 8.507059e+37 }
 0x32a   :  { %v2371_v34 = vpop.eup %2370 }
 0x32b   :  { %v1246_v24 = vadd.f32 1.0, %v2371_v34  ;;  %v3996_v34 = vld [vmem:[#allocation31_spill] sm:$0xff] }
 0x32c   :  { %v2373_v47 = vpop.eup %2372 }
 0x32d   :  { %v2375_v22 = vpop.eup %2374  ;;  %v1209_v35 = vmul.f32 %v2373_v47, %v1207_v15  ;;  %2376 = vrcp.f32 %v1246_v24  ;;  %vm1214_vm4 = vweird.f32 %v2373_v47  ;;  %v1258_v3 = vand.u32 2147483648, %v1246_v24  ;;  %v3615_v15 = vld [vmem:[#allocation12 + $0x60] sm:$0xff] }
 0x32e   :  { %v1228_v46 = vmul.f32 %v2375_v22, %v1226_v8  ;;  %2378 = vtanh.f32 %v1202_v1  ;;  %vm1233_vm5 = vweird.f32 %v2375_v22  ;;  %vm1215_vm8 = vmor %vm1213_vm6, %vm1214_vm4  ;;  %vm1252_vm13 = vweird.f32 %v1246_v24  ;;  %v3618_v8 = vld [vmem:[#allocation12 + $0x40] sm:$0xff] }
 0x32f   :  { %v1210_v25 = vsub.f32 1.0, %v1209_v35  ;;  %vm1234_vm9 = vmor %vm1232_vm7, %vm1233_vm5  ;;  %v1256_v37 = vand.u32 2147483647, %v1246_v24  ;;  %v1259_v62 = vor.u32 1.1754944e-38, %v1258_v3  ;;  %v3625_v1 = vld [vmem:[#allocation12] sm:$0xff] }
 0x330   :  { %v1229_v2 = vsub.f32 1.0, %v1228_v46 }
 0x331   :  { %v1211_v55 = vmul.f32 %v2373_v47, %v1210_v25  ;;  %vm1257_vm15 = vcmp.eq.f32.partialorder %v1256_v37, 8.507059e+37 }
 0x332   :  { %v1230_v27 = vmul.f32 %v2375_v22, %v1229_v2 }
 0x333   :  { %v2377_v49 = vpop.eup %2376  ;;  %v1212_v50 = vadd.f32 %v2373_v47, %v1211_v55 }
 0x334   :  { %v1231_v31 = vadd.f32 %v2375_v22, %v1230_v27  ;;  %v1248_v39 = vmul.f32 %v2377_v49, %v1246_v24  ;;  %v2379_v28 = vpop.eup %2378  ;;  %vm1253_vm12 = vweird.f32 %v2377_v49 }
 0x335   :  { %v1216_v11 = vsel %vm1215_vm8, %v2373_v47, %v1212_v50  ;;  %vm1254_vm14 = vmor %vm1252_vm13, %vm1253_vm12  ;;  %v3622_v47 = vld [vmem:[#allocation12 + $0x20] sm:$0xff] }
 0x336   :  { %v1221_v18 = vsel %vm1218_vm10, %v1220_v30, %v1216_v11  ;;  %v1235_v53 = vsel %vm1234_vm9, %v2375_v22, %v1231_v31  ;;  %v1249_v23 = vsub.f32 1.0, %v1248_v39 }
 0x337   :  { %v1240_v43 = vsel %vm1237_vm11, %v1239_v12, %v1235_v53  ;;  %v1263_v13 = vmul.f32 %v2379_v28, %v1221_v18 }
 0x338   :  { %v1262_v42 = vmul.f32 %v1240_v43, %v3486_v17  ;;  %v1250_v58 = vmul.f32 %v2377_v49, %v1249_v23  ;;  %v3578_v17 = vld [vmem:[#allocation12 + $0x1e0] sm:$0xff] }
 0x339   :  { %1552 = vmatpush.msrb.mxu0 %v3578_v17 }
 0x33a   :  { %v3569_v29 = vadd.f32 %v1263_v13, %v1262_v42  ;;  %v1251_v10 = vadd.f32 %v2377_v49, %v1250_v58 }
 0x33b   :  { %1553 = vmatpush.msrb.mxu0 %v3581_v56 }
 0x33c   :  { %2380 = vtanh.f32 %v3569_v29  ;;  %v1255_v4 = vsel %vm1254_vm14, %v2377_v49, %v1251_v10 }
 0x33d   :  { %v1260_v52 = vsel %vm1257_vm15, %v1259_v62, %v1255_v4  ;;  %1554 = vmatpush.msrb.mxu0 %v3584_v45 }
 0x33f   :  { %1555 = vmatpush.msrb.mxu0 %v3587_v54 }
 0x341   :  { %1556 = vmatpush.msrb.mxu0 %v3590_v5 }
 0x342   :  { %v2381_v57 = vpop.eup %2380 }
 0x343   :  { %v3572_v14 = vmul.f32 %v2381_v57, %v1260_v52  ;;  %1557 = vmatpush.msrb.mxu0 %v3593_v61 }
 0x345   :  { %1352 = vmatmul.f32.vlgmr.msra.gmra.mxu0 %v3572_v14  ;;  %1372 = vmatmul.f32.vlgmr.msra.gmra.mxu1 %v3572_v14 }
 0x346   :  { %1392 = vmatmul.f32.vlgmr.msra.gmra.mxu2 %v3572_v14  ;;  %1412 = vmatmul.f32.vlgmr.msrb.gmra.mxu3 %v3572_v14 }
 0x347   :  { %1558 = vmatpush.msrb.mxu0 %v3596_v9 }
 0x349   :  { %1559 = vmatpush.msrb.mxu0 %v3599_v16 }
 0x34b   :  { %1560 = vmatpush.msrb.mxu0 %v3602_v32 }
 0x34d   :  { %1561 = vmatpush.msrb.mxu0 %v3605_v40 }
 0x34f   :  { %1562 = vmatpush.msrb.mxu0 %v3610_v51 }
 0x351   :  { %1563 = vmatpush.msrb.mxu0 %v3613_v33 }
 0x353   :  { %1564 = vmatpush.msrb.mxu0 %v3615_v15 }
 0x355   :  { %1565 = vmatpush.msrb.mxu0 %v3618_v8 }
 0x357   :  { %1566 = vmatpush.msrb.mxu0 %v3622_v47 }
 0x359   :  { %1567 = vmatpush.msrb.mxu0 %v3625_v1 }
 0x35b   :  { %1768 = vmatpush.msra.mxu0 %v3578_v17 }
 0x35d   :  { %1769 = vmatpush.msra.mxu0 %v3581_v56 }
 0x35f   :  { %1770 = vmatpush.msra.mxu0 %v3584_v45 }
 0x361   :  { %1771 = vmatpush.msra.mxu0 %v3587_v54 }
 0x363   :  { %1772 = vmatpush.msra.mxu0 %v3590_v5 }
 0x365   :  { %1773 = vmatpush.msra.mxu0 %v3593_v61 }
 0x367   :  { %1774 = vmatpush.msra.mxu0 %v3596_v9 }
 0x369   :  { %1775 = vmatpush.msra.mxu0 %v3599_v16 }
 0x36b   :  { %1776 = vmatpush.msra.mxu0 %v3602_v32 }
 0x36d   :  { %1777 = vmatpush.msra.mxu0 %v3605_v40 }
 0x36f   :  { %1778 = vmatpush.msra.mxu0 %v3610_v51 }
 0x371   :  { %1779 = vmatpush.msra.mxu0 %v3613_v33 }
 0x373   :  { %1780 = vmatpush.msra.mxu0 %v3615_v15 }
 0x375   :  { %1781 = vmatpush.msra.mxu0 %v3618_v8 }
 0x377   :  { %1782 = vmatpush.msra.mxu0 %v3622_v47 }
 0x379   :  { %1783 = vmatpush.msra.mxu0 %v3625_v1 }
 0x3c2   :  { %v1353_v41 = vpop.f32.mrf.mxu0  ;;  %v1373_v6 = vpop.f32.mrf.mxu1 }
 0x3c3   :  { %v1416_v38 = vadd.f32 %v1353_v41, %v3994_v21  ;;  %v1417_v44 = vadd.f32 %v1373_v6, %v3995_v7 }
 0x3c5   :  { %v2276_v26 = vmul.f32 -1.442695, %v1416_v38  ;;  %v2277_v59 = vmul.f32 -1.442695, %v1417_v44 }
 0x3c7   :  { %2382 = vpow2.f32 %v2276_v26 }
 0x3c8   :  { %2384 = vpow2.f32 %v2277_v59 }
 0x3c9   :  { %v1413_v48 = vpop.f32.mrf.mxu3  ;;  %v1393_v2 = vpop.f32.mrf.mxu2 }
 0x3ca   :  { %v1419_v24 = vadd.f32 %v1413_v48, %v3996_v34  ;;  %v1418_v27 = vadd.f32 %v1393_v2, %v3997_v19  ;;  %v3735_v2 = vld [vmem:[#allocation12 + $0x108] sm:$0xff]  ;;  %v3746_v19 = vld [vmem:[#allocation12 + $0xf0] sm:$0xff] }
 0x3cc   :  { %v2278_v0 = vmul.f32 -1.442695, %v1419_v24 }
 0x3cd   :  { %v2383_v22 = vpop.eup %2382 }
 0x3ce   :  { %v2385_v35 = vpop.eup %2384  ;;  %v1423_v46 = vadd.f32 1.0, %v2383_v22  ;;  %2386 = vpow2.f32 %v2278_v0  ;;  %v3717_v0 = vld [vmem:[#allocation12 + $0x148] sm:$0xff]  ;;  %v3721_v22 = vld [vmem:[#allocation12 + $0x158] sm:$0xff] }
 0x3cf   :  { %v1442_v25 = vadd.f32 1.0, %v2385_v35  ;;  %v3726_v35 = vld [vmem:[#allocation12 + $0x128] sm:$0xff] }
 0x3d0   :  { %2388 = vrcp.f32 %v1423_v46  ;;  %v1435_v39 = vand.u32 2147483648, %v1423_v46  ;;  %v1433_v28 = vand.u32 2147483647, %v1423_v46  ;;  %vm1429_vm2 = vweird.f32 %v1423_v46 }
 0x3d1   :  { %2390 = vrcp.f32 %v1442_v25  ;;  %v1454_v12 = vand.u32 2147483648, %v1442_v25  ;;  %v1452_v53 = vand.u32 2147483647, %v1442_v25  ;;  %vm1448_vm3 = vweird.f32 %v1442_v25 }
 0x3d2   :  { %v1436_v13 = vor.u32 1.1754944e-38, %v1435_v39  ;;  %vm1434_vm6 = vcmp.eq.f32.partialorder %v1433_v28, 8.507059e+37  ;;  %v3998_v39 = vld [vmem:[#allocation26_spill] sm:$0xff] }
 0x3d3   :  { %v1455_v10 = vor.u32 1.1754944e-38, %v1454_v12  ;;  %vm1453_vm7 = vcmp.eq.f32.partialorder %v1452_v53, 8.507059e+37  ;;  %v3766_v53 = vld [vmem:[#allocation12 + $0xb0] sm:$0xff] }
 0x3d4   :  { %v2387_v63 = vpop.eup %2386 }
 0x3d5   :  { %v1462_v20 = vadd.f32 1.0, %v2387_v63  ;;  %v3737_v63 = vld [vmem:[#allocation12 + $0x110] sm:$0xff] }
 0x3d6   :  { %v2389_v55 = vpop.eup %2388 }
 0x3d7   :  { %v2391_v60 = vpop.eup %2390  ;;  %v1425_v49 = vmul.f32 %v2389_v55, %v1423_v46  ;;  %2392 = vrcp.f32 %v1462_v20  ;;  %vm1430_vm0 = vweird.f32 %v2389_v55  ;;  %v1474_v44 = vand.u32 2147483648, %v1462_v20  ;;  %v3728_v46 = vld [vmem:[#allocation12 + $0x130] sm:$0xff] }
 0x3d8   :  { %v1444_v50 = vmul.f32 %v2391_v60, %v1442_v25  ;;  %2394 = vtanh.f32 %v1418_v27  ;;  %vm1449_vm1 = vweird.f32 %v2391_v60  ;;  %vm1431_vm4 = vmor %vm1429_vm2, %vm1430_vm0  ;;  %vm1468_vm9 = vweird.f32 %v1462_v20  ;;  %v3730_v25 = vld [vmem:[#allocation12 + $0x138] sm:$0xff] }
 0x3d9   :  { %v1426_v30 = vsub.f32 1.0, %v1425_v49  ;;  %vm1450_vm5 = vmor %vm1448_vm3, %vm1449_vm1  ;;  %v1472_v26 = vand.u32 2147483647, %v1462_v20  ;;  %v1475_v59 = vor.u32 1.1754944e-38, %v1474_v44  ;;  %v3748_v27 = vld [vmem:[#allocation12 + $0xf8] sm:$0xff]  ;;  %v3800_v44 = vld [vmem:[#allocation12 + $0x30] sm:$0xff] }
 0x3da   :  { %v1445_v31 = vsub.f32 1.0, %v1444_v50  ;;  %v3753_v50 = vld [vmem:[#allocation12 + $0xc8] sm:$0xff] }
 0x3db   :  { %v1427_v11 = vmul.f32 %v2389_v55, %v1426_v30  ;;  %vm1473_vm11 = vcmp.eq.f32.partialorder %v1472_v26, 8.507059e+37  ;;  %v3755_v30 = vld [vmem:[#allocation12 + $0xd0] sm:$0xff]  ;;  %v3804_v26 = vld [vmem:[#allocation12 + $0x38] sm:$0xff] }
 0x3dc   :  { %v1446_v18 = vmul.f32 %v2391_v60, %v1445_v31  ;;  %v3757_v31 = vld [vmem:[#allocation12 + $0xd8] sm:$0xff] }
 0x3dd   :  { %v2393_v23 = vpop.eup %2392  ;;  %v1428_v43 = vadd.f32 %v2389_v55, %v1427_v11  ;;  %v3999_v11 = vld [vmem:[#allocation39_spill] sm:$0xff] }
 0x3de   :  { %v1447_v42 = vadd.f32 %v2391_v60, %v1446_v18  ;;  %v1464_v58 = vmul.f32 %v2393_v23, %v1462_v20  ;;  %v2395_v37 = vpop.eup %2394  ;;  %vm1469_vm8 = vweird.f32 %v2393_v23  ;;  %v3739_v20 = vld [vmem:[#allocation12 + $0x118] sm:$0xff]  ;;  %v3764_v18 = vld [vmem:[#allocation12 + $0xa8] sm:$0xff] }
 0x3df   :  { %v1432_v3 = vsel %vm1431_vm4, %v2389_v55, %v1428_v43  ;;  %vm1470_vm10 = vmor %vm1468_vm9, %vm1469_vm8  ;;  %v3744_v55 = vld [vmem:[#allocation12 + $0xe8] sm:$0xff] }
 0x3e0   :  { %v1437_v4 = vsel %vm1434_vm6, %v1436_v13, %v1432_v3  ;;  %v1451_v62 = vsel %vm1450_vm5, %v2391_v60, %v1447_v42  ;;  %v1465_v57 = vsub.f32 1.0, %v1464_v58  ;;  %v3773_v42 = vld [vmem:[#allocation12 + $0x88] sm:$0xff]  ;;  %v3775_v58 = vld [vmem:[#allocation12 + $0x90] sm:$0xff] }
 0x3e1   :  { %v1456_v52 = vsel %vm1453_vm7, %v1455_v10, %v1451_v62  ;;  %v1479_v41 = vmul.f32 %v2395_v37, %v1437_v4  ;;  %v3777_v10 = vld [vmem:[#allocation12 + $0x98] sm:$0xff]  ;;  %v3781_v3 = vld [vmem:[#allocation12 + $0x68] sm:$0xff]  ;;  %v3783_v37 = vld [vmem:[#allocation12 + $0x70] sm:$0xff] }
 0x3e2   :  { %v1478_v6 = vmul.f32 %v1456_v52, %v3569_v29  ;;  %v1466_v21 = vmul.f32 %v2393_v23, %v1465_v57  ;;  %v3785_v4 = vld [vmem:[#allocation12 + $0x78] sm:$0xff]  ;;  %v3788_v62 = vld [vmem:[#allocation12 + $0x48] sm:$0xff]  ;;  %v3790_v57 = vld [vmem:[#allocation12 + $0x50] sm:$0xff] }
 0x3e4   :  { %v3641_v38 = vadd.f32 %v1479_v41, %v1478_v6  ;;  %v1467_v7 = vadd.f32 %v2393_v23, %v1466_v21  ;;  %v3794_v41 = vld [vmem:[#allocation12 + $0x58] sm:$0xff]  ;;  %v4000_v6 = vld [vmem:[#allocation32_spill] sm:$0xff] }
 0x3e6   :  { %2396 = vtanh.f32 %v3641_v38  ;;  %v1471_v29 = vsel %vm1470_vm10, %v2393_v23, %v1467_v7  ;;  %v3768_v23 = vld [vmem:[#allocation12 + $0xb8] sm:$0xff]  ;;  %v3798_v7 = vld [vmem:[#allocation12 + $0x28] sm:$0xff] }
 0x3e7   :  { %v1476_v34 = vsel %vm1473_vm11, %v1475_v59, %v1471_v29  ;;  %v3807_v59 = vld [vmem:[#allocation12 + $0x8] sm:$0xff] }
 0x3ec   :  { %v2397_v48 = vpop.eup %2396 }
 0x3ed   :  { %v3649_v24 = vmul.f32 %v2397_v48, %v1476_v34  ;;  %v3809_v48 = vld [vmem:[#allocation12 + $0x10] sm:$0xff] }
 0x3ef   :  { %1568 = vmatmul.f32.vlgmr.msrb.gmra.mxu0 %v3649_v24  ;;  %1588 = vmatmul.f32.vlgmr.msrb.gmra.mxu1 %v3649_v24 }
 0x3f0   :  { %1608 = vmatmul.f32.vlgmr.msrb.gmra.mxu2 %v3649_v24  ;;  %1628 = vmatmul.f32.vlgmr.msra.gmra.mxu3 %v3649_v24 }
 0x3f1   :  { %1984 = vmatpush.msrb.mxu0 %v3578_v17  ;;  %v3672_v17 = vld [vmem:[#allocation12 + $0x1e8] sm:$0xff] }
 0x3f2   :  { %1788 = vmatpush.msra.mxu1 %v3672_v17 }
 0x3f3   :  { %1985 = vmatpush.msrb.mxu0 %v3581_v56  ;;  %v3674_v56 = vld [vmem:[#allocation12 + $0x1f0] sm:$0xff] }
 0x3f4   :  { %1808 = vmatpush.msra.mxu2 %v3674_v56 }
 0x3f5   :  { %1986 = vmatpush.msrb.mxu0 %v3584_v45  ;;  %v3676_v45 = vld [vmem:[#allocation12 + $0x1f8] sm:$0xff] }
 0x3f6   :  { %1828 = vmatpush.msrb.mxu3 %v3676_v45 }
 0x3f7   :  { %1987 = vmatpush.msrb.mxu0 %v3587_v54  ;;  %v3681_v54 = vld [vmem:[#allocation12 + $0x1c8] sm:$0xff] }
 0x3f8   :  { %1789 = vmatpush.msra.mxu1 %v3681_v54 }
 0x3f9   :  { %1988 = vmatpush.msrb.mxu0 %v3590_v5  ;;  %v3683_v5 = vld [vmem:[#allocation12 + $0x1d0] sm:$0xff] }
 0x3fa   :  { %1809 = vmatpush.msra.mxu2 %v3683_v5 }
 0x3fb   :  { %1989 = vmatpush.msrb.mxu0 %v3593_v61  ;;  %v3685_v61 = vld [vmem:[#allocation12 + $0x1d8] sm:$0xff] }
 0x3fc   :  { %1829 = vmatpush.msrb.mxu3 %v3685_v61 }
 0x3fd   :  { %1990 = vmatpush.msrb.mxu0 %v3596_v9  ;;  %v3690_v9 = vld [vmem:[#allocation12 + $0x1a8] sm:$0xff] }
 0x3fe   :  { %1790 = vmatpush.msra.mxu1 %v3690_v9 }
 0x3ff   :  { %1991 = vmatpush.msrb.mxu0 %v3599_v16  ;;  %v3692_v16 = vld [vmem:[#allocation12 + $0x1b0] sm:$0xff] }
 0x400   :  { %1810 = vmatpush.msra.mxu2 %v3692_v16 }
 0x401   :  { %1992 = vmatpush.msrb.mxu0 %v3602_v32  ;;  %v3694_v32 = vld [vmem:[#allocation12 + $0x1b8] sm:$0xff] }
 0x402   :  { %1830 = vmatpush.msrb.mxu3 %v3694_v32 }
 0x403   :  { %1993 = vmatpush.msrb.mxu0 %v3605_v40  ;;  %v3699_v40 = vld [vmem:[#allocation12 + $0x188] sm:$0xff] }
 0x404   :  { %1791 = vmatpush.msra.mxu1 %v3699_v40 }
 0x405   :  { %1994 = vmatpush.msrb.mxu0 %v3610_v51  ;;  %v3701_v51 = vld [vmem:[#allocation12 + $0x190] sm:$0xff] }
 0x406   :  { %1811 = vmatpush.msra.mxu2 %v3701_v51 }
 0x407   :  { %1995 = vmatpush.msrb.mxu0 %v3613_v33  ;;  %v3703_v33 = vld [vmem:[#allocation12 + $0x198] sm:$0xff] }
 0x408   :  { %1831 = vmatpush.msrb.mxu3 %v3703_v33 }
 0x409   :  { %1996 = vmatpush.msrb.mxu0 %v3615_v15  ;;  %v3708_v15 = vld [vmem:[#allocation12 + $0x168] sm:$0xff] }
 0x40a   :  { %1792 = vmatpush.msra.mxu1 %v3708_v15 }
 0x40b   :  { %1997 = vmatpush.msrb.mxu0 %v3618_v8  ;;  %v3710_v8 = vld [vmem:[#allocation12 + $0x170] sm:$0xff] }
 0x40c   :  { %1812 = vmatpush.msra.mxu2 %v3710_v8  ;;  %1793 = vmatpush.msra.mxu1 %v3717_v0 }
 0x40d   :  { %1998 = vmatpush.msrb.mxu0 %v3622_v47  ;;  %v3712_v47 = vld [vmem:[#allocation12 + $0x178] sm:$0xff] }
 0x40e   :  { %1832 = vmatpush.msrb.mxu3 %v3712_v47  ;;  %1794 = vmatpush.msra.mxu1 %v3726_v35 }
 0x40f   :  { %1999 = vmatpush.msrb.mxu0 %v3625_v1  ;;  %v3719_v1 = vld [vmem:[#allocation12 + $0x150] sm:$0xff] }
 0x410   :  { %1813 = vmatpush.msra.mxu2 %v3719_v1  ;;  %1833 = vmatpush.msrb.mxu3 %v3721_v22 }
 0x411   :  { %1795 = vmatpush.msra.mxu1 %v3735_v2 }
 0x412   :  { %1814 = vmatpush.msra.mxu2 %v3728_v46  ;;  %1834 = vmatpush.msrb.mxu3 %v3730_v25 }
 0x413   :  { %1796 = vmatpush.msra.mxu1 %v3744_v55 }
 0x414   :  { %1815 = vmatpush.msra.mxu2 %v3737_v63  ;;  %1835 = vmatpush.msrb.mxu3 %v3739_v20 }
 0x415   :  { %1797 = vmatpush.msra.mxu1 %v3753_v50 }
 0x416   :  { %1816 = vmatpush.msra.mxu2 %v3746_v19  ;;  %1836 = vmatpush.msrb.mxu3 %v3748_v27 }
 0x417   :  { %1798 = vmatpush.msra.mxu1 %v3764_v18 }
 0x418   :  { %1817 = vmatpush.msra.mxu2 %v3755_v30  ;;  %1837 = vmatpush.msrb.mxu3 %v3757_v31 }
 0x419   :  { %1799 = vmatpush.msra.mxu1 %v3773_v42 }
 0x41a   :  { %1818 = vmatpush.msra.mxu2 %v3766_v53  ;;  %1838 = vmatpush.msrb.mxu3 %v3768_v23 }
 0x41b   :  { %1800 = vmatpush.msra.mxu1 %v3781_v3 }
 0x41c   :  { %1819 = vmatpush.msra.mxu2 %v3775_v58  ;;  %1839 = vmatpush.msrb.mxu3 %v3777_v10 }
 0x41d   :  { %1801 = vmatpush.msra.mxu1 %v3788_v62 }
 0x41e   :  { %1820 = vmatpush.msra.mxu2 %v3783_v37  ;;  %1840 = vmatpush.msrb.mxu3 %v3785_v4 }
 0x41f   :  { %1802 = vmatpush.msra.mxu1 %v3798_v7 }
 0x420   :  { %1821 = vmatpush.msra.mxu2 %v3790_v57  ;;  %1841 = vmatpush.msrb.mxu3 %v3794_v41 }
 0x421   :  { %1803 = vmatpush.msra.mxu1 %v3807_v59 }
 0x422   :  { %1822 = vmatpush.msra.mxu2 %v3800_v44  ;;  %1842 = vmatpush.msrb.mxu3 %v3804_v26 }
 0x423   :  { %2004 = vmatpush.msrb.mxu1 %v3672_v17 }
 0x424   :  { %1823 = vmatpush.msra.mxu2 %v3809_v48 }
 0x425   :  { %2005 = vmatpush.msrb.mxu1 %v3681_v54 }
 0x426   :  { %2024 = vmatpush.msrb.mxu2 %v3674_v56  ;;  %v4001_v56 = vld [vmem:[#allocation40_spill] sm:$0xff] }
 0x427   :  { %2006 = vmatpush.msrb.mxu1 %v3690_v9 }
 0x428   :  { %2025 = vmatpush.msrb.mxu2 %v3683_v5 }
 0x429   :  { %2007 = vmatpush.msrb.mxu1 %v3699_v40 }
 0x42a   :  { %2026 = vmatpush.msrb.mxu2 %v3692_v16 }
 0x42b   :  { %2008 = vmatpush.msrb.mxu1 %v3708_v15 }
 0x42c   :  { %2027 = vmatpush.msrb.mxu2 %v3701_v51 }
 0x42d   :  { %2009 = vmatpush.msrb.mxu1 %v3717_v0 }
 0x42e   :  { %2028 = vmatpush.msrb.mxu2 %v3710_v8 }
 0x42f   :  { %2010 = vmatpush.msrb.mxu1 %v3726_v35 }
 0x430   :  { %2029 = vmatpush.msrb.mxu2 %v3719_v1 }
 0x431   :  { %2011 = vmatpush.msrb.mxu1 %v3735_v2 }
 0x432   :  { %2030 = vmatpush.msrb.mxu2 %v3728_v46 }
 0x433   :  { %2012 = vmatpush.msrb.mxu1 %v3744_v55 }
 0x434   :  { %2031 = vmatpush.msrb.mxu2 %v3737_v63 }
 0x435   :  { %2013 = vmatpush.msrb.mxu1 %v3753_v50 }
 0x436   :  { %2032 = vmatpush.msrb.mxu2 %v3746_v19 }
 0x437   :  { %2014 = vmatpush.msrb.mxu1 %v3764_v18  ;;  %v2157_v18 = vld [vmem:[#allocation13 + $0x78] sm:$0xff] }
 0x438   :  { %2033 = vmatpush.msrb.mxu2 %v3755_v30 }
 0x439   :  { %2015 = vmatpush.msrb.mxu1 %v3773_v42  ;;  %v2154_v42 = vld [vmem:[#allocation13 + $0x60] sm:$0xff] }
 0x43a   :  { %2034 = vmatpush.msrb.mxu2 %v3766_v53  ;;  %v2156_v53 = vld [vmem:[#allocation13 + $0x70] sm:$0xff] }
 0x43b   :  { %2016 = vmatpush.msrb.mxu1 %v3781_v3 }
 0x43c   :  { %2035 = vmatpush.msrb.mxu2 %v3775_v58  ;;  %v2153_v58 = vld [vmem:[#allocation13 + $0x58] sm:$0xff] }
 0x43d   :  { %2017 = vmatpush.msrb.mxu1 %v3788_v62 }
 0x43e   :  { %2036 = vmatpush.msrb.mxu2 %v3783_v37  ;;  %v2152_v37 = vld [vmem:[#allocation13 + $0x50] sm:$0xff] }
 0x43f   :  { %2018 = vmatpush.msrb.mxu1 %v3798_v7  ;;  %v2151_v7 = vld [vmem:[#allocation13 + $0x48] sm:$0xff] }
 0x440   :  { %2037 = vmatpush.msrb.mxu2 %v3790_v57  ;;  %v4003_v57 = vld [vmem:[#allocation41_spill] sm:$0xff] }
 0x441   :  { %2019 = vmatpush.msrb.mxu1 %v3807_v59  ;;  %v2150_v59 = vld [vmem:[#allocation13 + $0x40] sm:$0xff] }
 0x442   :  { %2038 = vmatpush.msrb.mxu2 %v3800_v44 }
 0x444   :  { %2039 = vmatpush.msrb.mxu2 %v3809_v48  ;;  %v2149_v48 = vld [vmem:[#allocation13 + $0x38] sm:$0xff] }
 0x46c   :  { %v1569_v60 = vpop.f32.mrf.mxu0  ;;  %v1589_v49 = vpop.f32.mrf.mxu1 }
 0x46d   :  { %v1632_v12 = vadd.f32 %v1569_v60, %v3998_v39  ;;  %v1633_v28 = vadd.f32 %v1589_v49, %v3999_v11  ;;  %v3813_v60 = vld [vmem:[#allocation12 + $0x18] sm:$0xff] }
 0x46e   :  { %1843 = vmatpush.msrb.mxu3 %v3813_v60 }
 0x46f   :  { %v2279_v43 = vmul.f32 -1.442695, %v1632_v12  ;;  %v2280_v13 = vmul.f32 -1.442695, %v1633_v28 }
 0x470   :  { %2044 = vmatpush.msra.mxu3 %v3676_v45 }
 0x471   :  { %2398 = vpow2.f32 %v2279_v43 }
 0x472   :  { %2400 = vpow2.f32 %v2280_v13  ;;  %2045 = vmatpush.msra.mxu3 %v3685_v61 }
 0x473   :  { %v1629_v52 = vpop.f32.mrf.mxu3  ;;  %v1609_v11 = vpop.f32.mrf.mxu2 }
 0x474   :  { %v1635_v21 = vadd.f32 %v1629_v52, %v4000_v6  ;;  %2046 = vmatpush.msra.mxu3 %v3694_v32  ;;  %v1634_v13 = vadd.f32 %v1609_v11, %v4001_v56 }
 0x476   :  { %v2281_v29 = vmul.f32 -1.442695, %v1635_v21  ;;  %2047 = vmatpush.msra.mxu3 %v3703_v33 }
 0x477   :  { %v2399_v34 = vpop.eup %2398 }
 0x478   :  { %v2401_v49 = vpop.eup %2400  ;;  %v3815_v39 = vadd.f32 1.0, %v2399_v34  ;;  %2402 = vpow2.f32 %v2281_v29  ;;  %2048 = vmatpush.msra.mxu3 %v3712_v47 }
 0x479   :  { %v3818_v12 = vadd.f32 1.0, %v2401_v49 }
 0x47a   :  { %2404 = vrcp.f32 %v3815_v39  ;;  %v1651_v16 = vand.u32 2147483648, %v3815_v39  ;;  %v1649_v51 = vand.u32 2147483647, %v3815_v39  ;;  %2049 = vmatpush.msra.mxu3 %v3721_v22  ;;  %vm1645_vm14 = vweird.f32 %v3815_v39 }
 0x47b   :  { %2406 = vrcp.f32 %v3818_v12  ;;  %v1670_v32 = vand.u32 2147483648, %v3818_v12  ;;  %v1668_v15 = vand.u32 2147483647, %v3818_v12  ;;  %vm1664_vm15 = vweird.f32 %v3818_v12 }
 0x47c   :  { %2050 = vmatpush.msra.mxu3 %v3730_v25  ;;  %v1652_v0 = vor.u32 1.1754944e-38, %v1651_v16  ;;  %vm1650_vm2 = vcmp.eq.f32.partialorder %v1649_v51, 8.507059e+37 }
 0x47d   :  { %v1671_v52 = vor.u32 1.1754944e-38, %v1670_v32  ;;  %vm1669_vm3 = vcmp.eq.f32.partialorder %v1668_v15, 8.507059e+37  ;;  %v4005_v15 = vld [vmem:[#allocation42_spill] sm:$0xff] }
 0x47e   :  { %v2403_v28 = vpop.eup %2402  ;;  %2051 = vmatpush.msra.mxu3 %v3739_v20 }
 0x47f   :  { %v3832_v43 = vadd.f32 1.0, %v2403_v28  ;;  %v2147_v28 = vld [vmem:[#allocation13 + $0x28] sm:$0xff] }
 0x480   :  { %v2405_v17 = vpop.eup %2404  ;;  %2052 = vmatpush.msra.mxu3 %v3748_v27 }
 0x481   :  { %v2407_v45 = vpop.eup %2406  ;;  %v1641_v54 = vmul.f32 %v2405_v17, %v3815_v39  ;;  %2408 = vrcp.f32 %v3832_v43  ;;  %vm1646_vm12 = vweird.f32 %v2405_v17  ;;  %vm1684_vm5 = vweird.f32 %v3832_v43 }
 0x482   :  { %v1660_v5 = vmul.f32 %v2407_v45, %v3818_v12  ;;  %2410 = vtanh.f32 %v1634_v13  ;;  %vm1665_vm13 = vweird.f32 %v2407_v45  ;;  %vm1647_vm0 = vmor %vm1645_vm14, %vm1646_vm12  ;;  %2053 = vmatpush.msra.mxu3 %v3757_v31  ;;  %v1688_v55 = vand.u32 2147483647, %v3832_v43  ;;  %v4004_v12 = vld [vmem:[#allocation33_spill] sm:$0xff] }
 0x483   :  { %v1642_v61 = vsub.f32 1.0, %v1641_v54  ;;  %vm1666_vm1 = vmor %vm1664_vm15, %vm1665_vm13 }
 0x484   :  { %v1661_v9 = vsub.f32 1.0, %v1660_v5  ;;  %2054 = vmatpush.msra.mxu3 %v3768_v23  ;;  %vm1689_vm7 = vcmp.eq.f32.partialorder %v1688_v55, 8.507059e+37  ;;  %v2155_v23 = vld [vmem:[#allocation13 + $0x68] sm:$0xff]  ;;  %v2145_v5 = vld [vmem:[#allocation13 + $0x18] sm:$0xff] }
 0x485   :  { %v1643_v40 = vmul.f32 %v2405_v17, %v1642_v61  ;;  %v2144_v61 = vld [vmem:[#allocation13 + $0x10] sm:$0xff] }
 0x486   :  { %v1662_v33 = vmul.f32 %v2407_v45, %v1661_v9  ;;  %2055 = vmatpush.msra.mxu3 %v3777_v10  ;;  %v2143_v9 = vld [vmem:[#allocation13 + $0x8] sm:$0xff] }
 0x487   :  { %v2409_v8 = vpop.eup %2408  ;;  %v1644_v47 = vadd.f32 %v2405_v17, %v1643_v40  ;;  %v2142_v40 = vld [vmem:[#allocation13] sm:$0xff] }
 0x488   :  { %v1663_v1 = vadd.f32 %v2407_v45, %v1662_v33  ;;  %v1680_v22 = vmul.f32 %v2409_v8, %v3832_v43  ;;  %v2411_v46 = vpop.eup %2410  ;;  %vm1685_vm4 = vweird.f32 %v2409_v8  ;;  %2056 = vmatpush.msra.mxu3 %v3785_v4  ;;  %v4002_v4 = vld [vmem:[#allocation27_spill] sm:$0xff] }
 0x489   :  { %v1648_v35 = vsel %vm1647_vm0, %v2405_v17, %v1644_v47  ;;  %vm1686_vm6 = vmor %vm1684_vm5, %vm1685_vm4  ;;  %v2146_v17 = vld [vmem:[#allocation13 + $0x20] sm:$0xff] }
 0x48a   :  { %v1653_v6 = vsel %vm1650_vm2, %v1652_v0, %v1648_v35  ;;  %v1667_v25 = vsel %vm1666_vm1, %v2407_v45, %v1663_v1  ;;  %v1681_v21 = vsub.f32 1.0, %v1680_v22  ;;  %2057 = vmatpush.msra.mxu3 %v3794_v41 }
 0x48b   :  { %v1672_v29 = vsel %vm1669_vm3, %v1671_v52, %v1667_v25  ;;  %v1695_v34 = vmul.f32 %v2411_v46, %v1653_v6 }
 0x48c   :  { %v1694_v2 = vmul.f32 %v1672_v29, %v3641_v38  ;;  %v1682_v49 = vmul.f32 %v2409_v8, %v1681_v21  ;;  %v1690_v38 = vand.u32 2147483648, %v3832_v43  ;;  %2058 = vmatpush.msra.mxu3 %v3804_v26 }
 0x48e   :  { %v3869_v63 = vadd.f32 %v1695_v34, %v1694_v2  ;;  %v1683_v20 = vadd.f32 %v2409_v8, %v1682_v49  ;;  %v1691_v27 = vor.u32 1.1754944e-38, %v1690_v38  ;;  %2059 = vmatpush.msra.mxu3 %v3813_v60  ;;  %v2148_v60 = vld [vmem:[#allocation13 + $0x30] sm:$0xff] }
 0x490   :  { %2412 = vtanh.f32 %v3869_v63  ;;  %v1687_v19 = vsel %vm1686_vm6, %v2409_v8, %v1683_v20 }
 0x491   :  { %v1692_v30 = vsel %vm1689_vm7, %v1691_v27, %v1687_v19 }
 0x496   :  { %v2413_v50 = vpop.eup %2412 }
 0x497   :  { %v3888_v31 = vmul.f32 %v2413_v50, %v1692_v30 }
 0x499   :  { %1784 = vmatmul.f32.vlgmr.msra.gmra.mxu0 %v3888_v31  ;;  %1804 = vmatmul.f32.vlgmr.msra.gmra.mxu1 %v3888_v31 }
 0x49a   :  { %1824 = vmatmul.f32.vlgmr.msra.gmra.mxu2 %v3888_v31  ;;  %1844 = vmatmul.f32.vlgmr.msrb.gmra.mxu3 %v3888_v31 }
 0x49b   :  { %2162 = vmatpush.msra.mxu0 %v2157_v18 }
 0x49d   :  { %2163 = vmatpush.msra.mxu0 %v2156_v53 }
 0x49f   :  { %2164 = vmatpush.msra.mxu0 %v2155_v23 }
 0x4a1   :  { %2165 = vmatpush.msra.mxu0 %v2154_v42 }
 0x4a3   :  { %2166 = vmatpush.msra.mxu0 %v2153_v58 }
 0x4a5   :  { %2167 = vmatpush.msra.mxu0 %v2152_v37 }
 0x4a7   :  { %2168 = vmatpush.msra.mxu0 %v2151_v7 }
 0x4a9   :  { %2169 = vmatpush.msra.mxu0 %v2150_v59 }
 0x4ab   :  { %2170 = vmatpush.msra.mxu0 %v2149_v48 }
 0x4ad   :  { %2171 = vmatpush.msra.mxu0 %v2148_v60  ;;  %v4008_v60 = vld [vmem:[#allocation29_spill] sm:$0xff] }
 0x4af   :  { %2172 = vmatpush.msra.mxu0 %v2147_v28 }
 0x4b1   :  { %2173 = vmatpush.msra.mxu0 %v2146_v17 }
 0x4b3   :  { %2174 = vmatpush.msra.mxu0 %v2145_v5 }
 0x4b5   :  { %2175 = vmatpush.msra.mxu0 %v2144_v61 }
 0x4b7   :  { %2176 = vmatpush.msra.mxu0 %v2143_v9 }
 0x4b9   :  { %2177 = vmatpush.msra.mxu0 %v2142_v40 }
 0x516   :  { %v1785_v10 = vpop.f32.mrf.mxu0  ;;  %v1805_v3 = vpop.f32.mrf.mxu1 }
 0x517   :  { %v1848_v62 = vadd.f32 %v1785_v10, %v4002_v4  ;;  %v1849_v41 = vadd.f32 %v1805_v3, %v4003_v57 }
 0x519   :  { %v2282_v44 = vmul.f32 -1.442695, %v1848_v62  ;;  %v2283_v26 = vmul.f32 -1.442695, %v1849_v41 }
 0x51b   :  { %2414 = vpow2.f32 %v2282_v44 }
 0x51c   :  { %2416 = vpow2.f32 %v2283_v26  ;;  %v4007_v26 = vld [vmem:[#allocation46_spill] sm:$0xff] }
 0x51d   :  { %v1845_v39 = vpop.f32.mrf.mxu3  ;;  %v1825_v16 = vpop.f32.mrf.mxu2 }
 0x51e   :  { %v1851_v11 = vadd.f32 %v1845_v39, %v4004_v12  ;;  %v1850_v8 = vadd.f32 %v1825_v16, %v4005_v15  ;;  %v4009_v12 = vld [vmem:[#allocation43_spill] sm:$0xff]  ;;  %v4011_v15 = vld [vmem:[#allocation44_spill] sm:$0xff] }
 0x520   :  { %v2284_v43 = vmul.f32 -1.442695, %v1851_v11 }
 0x521   :  { %v2415_v56 = vpop.eup %2414 }
 0x522   :  { %v2417_v13 = vpop.eup %2416  ;;  %v1855_v45 = vadd.f32 1.0, %v2415_v56  ;;  %2418 = vpow2.f32 %v2284_v43 }
 0x523   :  { %v1874_v54 = vadd.f32 1.0, %v2417_v13 }
 0x524   :  { %2420 = vrcp.f32 %v1855_v45  ;;  %v1867_v35 = vand.u32 2147483648, %v1855_v45  ;;  %v1865_v25 = vand.u32 2147483647, %v1855_v45  ;;  %vm1861_vm10 = vweird.f32 %v1855_v45 }
 0x525   :  { %2422 = vrcp.f32 %v1874_v54  ;;  %v1886_v46 = vand.u32 2147483648, %v1874_v54  ;;  %v1884_v29 = vand.u32 2147483647, %v1874_v54  ;;  %vm1880_vm11 = vweird.f32 %v1874_v54 }
 0x526   :  { %v1868_v49 = vor.u32 1.1754944e-38, %v1867_v35  ;;  %vm1866_vm14 = vcmp.eq.f32.partialorder %v1865_v25, 8.507059e+37 }
 0x527   :  { %v1887_v55 = vor.u32 1.1754944e-38, %v1886_v46  ;;  %vm1885_vm15 = vcmp.eq.f32.partialorder %v1884_v29, 8.507059e+37 }
 0x528   :  { %v2419_v32 = vpop.eup %2418 }
 0x529   :  { %v1894_v51 = vadd.f32 1.0, %v2419_v32 }
 0x52a   :  { %v2421_v33 = vpop.eup %2420 }
 0x52b   :  { %v2423_v47 = vpop.eup %2422  ;;  %v1857_v0 = vmul.f32 %v2421_v33, %v1855_v45  ;;  %2424 = vrcp.f32 %v1894_v51  ;;  %vm1862_vm8 = vweird.f32 %v2421_v33  ;;  %v1906_v37 = vand.u32 2147483648, %v1894_v51 }
 0x52c   :  { %v1876_v1 = vmul.f32 %v2423_v47, %v1874_v54  ;;  %2426 = vtanh.f32 %v1850_v8  ;;  %vm1881_vm9 = vweird.f32 %v2423_v47  ;;  %vm1863_vm12 = vmor %vm1861_vm10, %vm1862_vm8  ;;  %vm1900_vm1 = vweird.f32 %v1894_v51 }
 0x52d   :  { %v1858_v22 = vsub.f32 1.0, %v1857_v0  ;;  %vm1882_vm13 = vmor %vm1880_vm11, %vm1881_vm9  ;;  %v1904_v4 = vand.u32 2147483647, %v1894_v51  ;;  %v1907_v57 = vor.u32 1.1754944e-38, %v1906_v37 }
 0x52e   :  { %v1877_v52 = vsub.f32 1.0, %v1876_v1 }
 0x52f   :  { %v1859_v6 = vmul.f32 %v2421_v33, %v1858_v22  ;;  %vm1905_vm3 = vcmp.eq.f32.partialorder %v1904_v4, 8.507059e+37 }
 0x530   :  { %v1878_v21 = vmul.f32 %v2423_v47, %v1877_v52 }
 0x531   :  { %v2425_v34 = vpop.eup %2424  ;;  %v1860_v2 = vadd.f32 %v2421_v33, %v1859_v6 }
 0x532   :  { %v1879_v20 = vadd.f32 %v2423_v47, %v1878_v21  ;;  %v1896_v38 = vmul.f32 %v2425_v34, %v1894_v51  ;;  %v2427_v27 = vpop.eup %2426  ;;  %vm1901_vm0 = vweird.f32 %v2425_v34 }
 0x533   :  { %v1864_v19 = vsel %vm1863_vm12, %v2421_v33, %v1860_v2  ;;  %vm1902_vm2 = vmor %vm1900_vm1, %vm1901_vm0 }
 0x534   :  { %v1869_v50 = vsel %vm1866_vm14, %v1868_v49, %v1864_v19  ;;  %v1883_v30 = vsel %vm1882_vm13, %v2423_v47, %v1879_v20  ;;  %v1897_v18 = vsub.f32 1.0, %v1896_v38 }
 0x535   :  { %v1888_v53 = vsel %vm1885_vm15, %v1887_v55, %v1883_v30  ;;  %v1911_v23 = vmul.f32 %v2427_v27, %v1869_v50 }
 0x536   :  { %v1910_v42 = vmul.f32 %v1888_v53, %v3869_v63  ;;  %v1898_v58 = vmul.f32 %v2425_v34, %v1897_v18  ;;  %v4006_v63 = vld [vmem:[#allocation45_spill] sm:$0xff] }
 0x538   :  { %v3904_v10 = vadd.f32 %v1911_v23, %v1910_v42  ;;  %v1899_v3 = vadd.f32 %v2425_v34, %v1898_v58 }
 0x53a   :  { %2428 = vtanh.f32 %v3904_v10  ;;  %v1903_v62 = vsel %vm1902_vm2, %v2425_v34, %v1899_v3 }
 0x53b   :  { %v1908_v7 = vsel %vm1905_vm3, %v1907_v57, %v1903_v62 }
 0x540   :  { %v2429_v41 = vpop.eup %2428 }
 0x541   :  { %v1914_v44 = vmul.f32 %v2429_v41, %v1908_v7 }
 0x543   :  { %2000 = vmatmul.f32.vlgmr.msrb.gmra.mxu0 %v1914_v44  ;;  %2020 = vmatmul.f32.vlgmr.msrb.gmra.mxu1 %v1914_v44 }
 0x544   :  { %2040 = vmatmul.f32.vlgmr.msrb.gmra.mxu2 %v1914_v44  ;;  %2060 = vmatmul.f32.vlgmr.msra.gmra.mxu3 %v1914_v44 }
 0x54b   :  { %2178 = vmatmul.f32.vlgmr.msra.gmra.mxu0 %v4006_v63 }
 0x553   :  { %2181 = vmatmul.f32.gmra.mxu0 %v4007_v26 }
 0x55b   :  { %2184 = vmatmul.f32.gmra.mxu0 %v3505_v36  ;;  %v3918_v36 = vld [vmem:[%s3950_s7] ss:$0 sm:$0xff]  ;;  %s2684_s7 = smov [#allocation16]  }
 0x55c   :  { %s2229_s24 = sshll.u32 %s2684_s7, 4  ;;  %s2230_s24 = int_to_ptr.vmem [resolvable:$true] %s2229_s24 }
 0x563   :  { %2187 = vmatmul.f32.gmra.mxu0 %v3572_v14 }
 0x56b   :  { %2190 = vmatmul.f32.gmra.mxu0 %v3649_v24  ;;  %v4010_v24 = vld [vmem:[#allocation36_spill] sm:$0xff] }
 0x573   :  { %2193 = vmatmul.f32.gmra.mxu0 %v3888_v31 }
 0x57b   :  { %2196 = vmatmul.f32.gmra.mxu0 %v1914_v44 }
 0x5c0   :  { %v2001_v59 = vpop.f32.mrf.mxu0  ;;  %v2021_v48 = vpop.f32.mrf.mxu1 }
 0x5c1   :  { %v2064_v39 = vadd.f32 %v2001_v59, %v4008_v60  ;;  %v2065_v11 = vadd.f32 %v2021_v48, %v4009_v12 }
 0x5c3   :  { %v2285_v28 = vmul.f32 -1.442695, %v2064_v39  ;;  %v2286_v43 = vmul.f32 -1.442695, %v2065_v11 }
 0x5c5   :  { %2430 = vpow2.f32 %v2285_v28 }
 0x5c6   :  { %2432 = vpow2.f32 %v2286_v43 }
 0x5c7   :  { %v2061_v14 = vpop.f32.mrf.mxu3  ;;  %v2041_v16 = vpop.f32.mrf.mxu2 }
 0x5c8   :  { %v2067_v17 = vadd.f32 %v2061_v14, %v4010_v24  ;;  %v2179_v31 = vpop.f32.mrf.mxu0  ;;  %v2066_v8 = vadd.f32 %v2041_v16, %v4011_v15 }
 0x5c9   :  { %v2180_v56 = vadd.f32 %v3918_v36, %v2179_v31 }
 0x5ca   :  { %v2287_v13 = vmul.f32 -1.442695, %v2067_v17 }
 0x5cb   :  { %v2431_v45 = vpop.eup %2430  ;;  %2203 = vst [vmem:[#allocation15] sm:$0xff] %v2180_v56 }
 0x5cc   :  { %v2433_v54 = vpop.eup %2432  ;;  %v2071_v5 = vadd.f32 1.0, %v2431_v45  ;;  %2434 = vpow2.f32 %v2287_v13 }
 0x5cd   :  { %v2090_v61 = vadd.f32 1.0, %v2433_v54 }
 0x5ce   :  { %2436 = vrcp.f32 %v2071_v5  ;;  %v2081_v35 = vand.u32 2147483647, %v2071_v5  ;;  %v2083_v46 = vand.u32 2147483648, %v2071_v5  ;;  %vm2077_vm6 = vweird.f32 %v2071_v5 }
 0x5cf   :  { %2438 = vrcp.f32 %v2090_v61  ;;  %v2102_v25 = vand.u32 2147483648, %v2090_v61  ;;  %v2100_v2 = vand.u32 2147483647, %v2090_v61  ;;  %vm2096_vm7 = vweird.f32 %v2090_v61 }
 0x5d0   :  { %v2182_v9 = vpop.f32.mrf.mxu0  ;;  %v2084_v38 = vor.u32 1.1754944e-38, %v2083_v46  ;;  %vm2082_vm10 = vcmp.eq.f32.partialorder %v2081_v35, 8.507059e+37 }
 0x5d1   :  { %v2183_v32 = vadd.f32 %v3918_v36, %v2182_v9  ;;  %v2103_v27 = vor.u32 1.1754944e-38, %v2102_v25  ;;  %vm2101_vm11 = vcmp.eq.f32.partialorder %v2100_v2, 8.507059e+37 }
 0x5d2   :  { %v2435_v40 = vpop.eup %2434 }
 0x5d3   :  { %v2110_v51 = vadd.f32 1.0, %v2435_v40  ;;  %2204 = vst [vmem:[#allocation15 + $0x8] sm:$0xff] %v2183_v32 }
 0x5d4   :  { %v2437_v33 = vpop.eup %2436 }
 0x5d5   :  { %v2439_v47 = vpop.eup %2438  ;;  %v2073_v0 = vmul.f32 %v2437_v33, %v2071_v5  ;;  %2440 = vrcp.f32 %v2110_v51  ;;  %vm2078_vm4 = vweird.f32 %v2437_v33  ;;  %v2122_v7 = vand.u32 2147483648, %v2110_v51 }
 0x5d6   :  { %v2092_v1 = vmul.f32 %v2439_v47, %v2090_v61  ;;  %2442 = vtanh.f32 %v2066_v8  ;;  %vm2097_vm5 = vweird.f32 %v2439_v47  ;;  %vm2079_vm8 = vmor %vm2077_vm6, %vm2078_vm4  ;;  %vm2116_vm13 = vweird.f32 %v2110_v51 }
 0x5d7   :  { %v2074_v22 = vsub.f32 1.0, %v2073_v0  ;;  %vm2098_vm9 = vmor %vm2096_vm7, %vm2097_vm5  ;;  %v2120_v44 = vand.u32 2147483647, %v2110_v51  ;;  %v2123_v59 = vor.u32 1.1754944e-38, %v2122_v7 }
 0x5d8   :  { %v2093_v52 = vsub.f32 1.0, %v2092_v1  ;;  %v2185_v6 = vpop.f32.mrf.mxu0 }
 0x5d9   :  { %v2075_v21 = vmul.f32 %v2437_v33, %v2074_v22  ;;  %v2186_v29 = vadd.f32 %v3918_v36, %v2185_v6  ;;  %vm2121_vm15 = vcmp.eq.f32.partialorder %v2120_v44, 8.507059e+37 }
 0x5da   :  { %v2094_v34 = vmul.f32 %v2439_v47, %v2093_v52 }
 0x5db   :  { %v2441_v49 = vpop.eup %2440  ;;  %v2076_v20 = vadd.f32 %v2437_v33, %v2075_v21  ;;  %2205 = vst [vmem:[#allocation15 + $0x10] sm:$0xff] %v2186_v29 }
 0x5dc   :  { %v2095_v55 = vadd.f32 %v2439_v47, %v2094_v34  ;;  %v2112_v19 = vmul.f32 %v2441_v49, %v2110_v51  ;;  %v2443_v30 = vpop.eup %2442  ;;  %vm2117_vm12 = vweird.f32 %v2441_v49 }
 0x5dd   :  { %v2080_v50 = vsel %vm2079_vm8, %v2437_v33, %v2076_v20  ;;  %vm2118_vm14 = vmor %vm2116_vm13, %vm2117_vm12 }
 0x5de   :  { %v2085_v18 = vsel %vm2082_vm10, %v2084_v38, %v2080_v50  ;;  %v2099_v53 = vsel %vm2098_vm9, %v2439_v47, %v2095_v55  ;;  %v2113_v23 = vsub.f32 1.0, %v2112_v19 }
 0x5df   :  { %v2104_v42 = vsel %vm2101_vm11, %v2103_v27, %v2099_v53  ;;  %v2127_v58 = vmul.f32 %v2443_v30, %v2085_v18 }
 0x5e0   :  { %v2126_v3 = vmul.f32 %v2104_v42, %v3904_v10  ;;  %v2188_v37 = vpop.f32.mrf.mxu0  ;;  %v2114_v4 = vmul.f32 %v2441_v49, %v2113_v23 }
 0x5e1   :  { %v2189_v62 = vadd.f32 %v3918_v36, %v2188_v37 }
 0x5e2   :  { %v2128_v57 = vadd.f32 %v2127_v58, %v2126_v3  ;;  %v2115_v41 = vadd.f32 %v2441_v49, %v2114_v4 }
 0x5e3   :  { %2206 = vst [vmem:[#allocation15 + $0x18] sm:$0xff] %v2189_v62 }
 0x5e4   :  { %2133 = vst [vmem:[#allocation18] sm:$0xff] %v2128_v57  ;;  %2444 = vtanh.f32 %v2128_v57  ;;  %v2119_v63 = vsel %vm2118_vm14, %v2441_v49, %v2115_v41 }
 0x5e5   :  { %v2124_v60 = vsel %vm2121_vm15, %v2123_v59, %v2119_v63 }
 0x5e8   :  { %v2191_v26 = vpop.f32.mrf.mxu0 }
 0x5e9   :  { %v2192_v48 = vadd.f32 %v3918_v36, %v2191_v26 }
 0x5ea   :  { %v2445_v10 = vpop.eup %2444 }
 0x5eb   :  { %2207 = vst [vmem:[#allocation15 + $0x20] sm:$0xff] %v2192_v48  ;;  %v2130_v39 = vmul.f32 %v2445_v10, %v2124_v60 }
 0x5ed   :  { %2199 = vmatmul.f32.gmra.mxu0 %v2130_v39  ;;  %2132 = vst [vmem:[#allocation16] sm:$0xff] %v2130_v39 }
 0x5ee   :  { %2234 = dma.vmem_to_hbm [thread:$0]  %s2230_s24, 128, %s2232_s1, [#allocation17]  }
 0x5ef   :  { %2245 = dma.vmem_to_hbm [thread:$0]  %s2241_s28, 128, %s2243_s3, [#allocation17]  }
 0x5f0   :  { %v2194_v12 = vpop.f32.mrf.mxu0 }
 0x5f1   :  { %v2195_v11 = vadd.f32 %v3918_v36, %v2194_v12 }
 0x5f3   :  { %2208 = vst [vmem:[#allocation15 + $0x28] sm:$0xff] %v2195_v11 }
 0x5f8   :  { %v2197_v28 = vpop.f32.mrf.mxu0 }
 0x5f9   :  { %v2198_v43 = vadd.f32 %v3918_v36, %v2197_v28 }
 0x5fb   :  { %2209 = vst [vmem:[#allocation15 + $0x30] sm:$0xff] %v2198_v43 }
 0x66a   :  { %v2200_v14 = vpop.f32.mrf.mxu0 }
 0x66b   :  { %v2201_v24 = vadd.f32 %v3918_v36, %v2200_v14 }
 0x66d   :  { %2210 = vst [vmem:[#allocation15 + $0x38] sm:$0xff] %v2201_v24 }
 0x66e   :  { %2223 = dma.vmem_to_hbm [thread:$0]  %s2216_s13, 1024, %s2218_s16, [#allocation6], %s2679_s11, %s2679_s11, %s2680_s12  }
 0x66f   :  { %2670 = dma.done.wait [#allocation6], 1024  }
 0x670   :  { %2671 = vsyncadd [#allocation6], 4294966272 }
 0x671   :  { %2672 = dma.done.wait [#allocation17], 256  }
 0x672   :  { %2673 = vsyncadd [#allocation17], 4294967040 }
 0x673   :  { %2258 = vsyncpa [#allocation5], 1 }
 0x674   :  { %2259 = vsyncpa [#allocation8], 1 }
 0x675   :  { %2260 = vsyncpa [#allocation11], 1 }
 0x676   :  { %2261 = vsyncpa [#allocation14], 1 }
 0x677   :  { %2262 = vsyncpa [#allocation6], 1 }
 0x678   :  { %2263 = vsyncpa [#allocation17], 1 }

</bundles_post_ra>
